<compile_context>
chip_gen: v7x
topology: tpu7x:2x2x1
jax: 0.10.0
libtpu: 0.0.40
codegen_flags: <defaults>
</compile_context>

<pallas_src>
import functools

import jax
import jax.numpy as jnp
from jax.experimental import pallas as pl
from jax.experimental.pallas import tpu as pltpu

_LANES = 128
_ACC_GROUPS = 4                  # independent accumulation chains per step
_ROW_ALIGN = 8 * _ACC_GROUPS     # 32: also covers bf16(16)/int8(32) sublane packing
_FAST_PATH_BYTES = 1 << 20       # below ~1 MiB, a fused XLA reduction wins
_BLOCK_BYTES = 4 << 20           # ~4 MiB per input per grid step


def _num_tensorcores():
    """Best-effort TensorCores-per-chip (v5e/v6e: 1, v7x: 2). Defaults to 1."""
    try:
        kind = jax.devices()[0].device_kind.lower()
    except Exception:
        return 1
    # Known single-TensorCore (or megacore-handled) generations -> 1.
    if any(tag in kind for tag in ("v2", "v3", "v4", "v5", "v6")):
        return 1
    try:
        info = pltpu.get_tpu_info()
    except Exception:
        return 1
    for name in ("num_tensorcores", "tensorcores_per_chip",
                 "num_cores_per_chip", "cores_per_chip"):
        val = getattr(info, name, None)
        if isinstance(val, int) and 1 <= val <= 4:
            return val
    return 1


def _log_frob_kernel(pred_ref, target_ref, out_ref, *, rows, steps, needs_mask):
    i = pl.program_id(0)          # shard axis (one row-range per TensorCore)
    k = pl.program_id(1)          # reduction axis ("arbitrary")

    @pl.when(k == 0)
    def _():
        out_ref[...] = jnp.zeros_like(out_ref)

    d = pred_ref[...].astype(jnp.float32) - target_ref[...].astype(jnp.float32)
    sq = d * d

    block_rows = pred_ref.shape[0]

    def _accumulate(vals):
        # _ACC_GROUPS independent add chains, folded at the end: keeps the
        # per-vreg dependency chain short so VPU latency stays hidden under DMA.
        part = jnp.sum(vals.reshape(-1, _ACC_GROUPS, 8, _LANES), axis=0)
        out_ref[...] += jnp.sum(part, axis=0)[None, :, :]

    if needs_mask:
        # Static: only emitted when block coverage exceeds `rows`. The mask is
        # applied only on steps that actually touch out-of-range rows (the
        # ragged tail block and any clamped duplicate tail blocks).
        blk = i * steps + k
        touches_tail = (blk + 1) * block_rows > rows

        @pl.when(touches_tail)
        def _():
            row_idx = blk * block_rows + jax.lax.broadcasted_iota(
                jnp.int32, sq.shape, 0)
            _accumulate(jnp.where(row_idx < rows, sq, 0.0))

        @pl.when(jnp.logical_not(touches_tail))
        def _():
            _accumulate(sq)
    else:
        _accumulate(sq)


def log_frobenius_norm_loss(pred, target, eps=1e-8):
    assert pred.shape == target.shape
    eps = jnp.float32(eps)
    n = pred.size
    if n == 0:
        return jnp.log(eps)

    itemsize = jnp.dtype(pred.dtype).itemsize

    # Tiny-input fast path: pallas launch / pipeline fixed cost dominates.
    if n * itemsize < _FAST_PATH_BYTES:
        d = pred.astype(jnp.float32) - target.astype(jnp.float32)
        return jnp.log(jnp.sqrt(jnp.sum(d * d)) + eps)

    # Flatten to a lane-dense (rows, 128) view; pure reshape (no HBM copy)
    # whenever numel is a multiple of 128 (the common case).
    p_flat = pred.reshape(-1)
    t_flat = target.reshape(-1)
    if n % _LANES != 0:
        # TODO(synk): ragged lane tail still materializes a padded copy; only
        # hit when numel % 128 != 0 (zeros contribute 0 to the sum of squares).
        pad = (-n) % _LANES
        p_flat = jnp.pad(p_flat, (0, pad))
        t_flat = jnp.pad(t_flat, (0, pad))
    rows = p_flat.size // _LANES
    p2 = p_flat.reshape(rows, _LANES)
    t2 = t_flat.reshape(rows, _LANES)

    # ~4 MiB per input per grid step. The fast path guarantees rows >= 1024,
    # so block_rows is always a positive multiple of _ROW_ALIGN and <= rows.
    target_rows = _BLOCK_BYTES // (_LANES * itemsize)
    block_rows = min(target_rows, (rows // _ROW_ALIGN) * _ROW_ALIGN)
    total_blocks = -(-rows // block_rows)

    # Shard rows across TensorCores only when the chip actually has >1 TC
    # (v7x). On v5e/v6e the shard axis would just add a redundant clamped
    # tail DMA plus per-step masking.
    num_shards = 1
    core_parallel = getattr(pltpu, "CORE_PARALLEL", None)
    if core_parallel is not None and total_blocks >= 2:
        ncores = _num_tensorcores()
        if ncores > 1:
            num_shards = ncores

    steps = -(-total_blocks // num_shards)
    needs_mask = (num_shards * steps * block_rows) != rows
    dim_sem = ((core_parallel, "arbitrary") if num_shards > 1
               else ("arbitrary", "arbitrary"))

    def in_map(i, k):
        blk = i * steps + k
        if num_shards * steps > total_blocks:    # static: clamp duplicate tails
            blk = jnp.minimum(blk, total_blocks - 1)
        return (blk, 0)

    partials = pl.pallas_call(
        functools.partial(
            _log_frob_kernel, rows=rows, steps=steps, needs_mask=needs_mask),
        out_shape=jax.ShapeDtypeStruct((num_shards, 8, _LANES), jnp.float32),
        grid_spec=pltpu.PrefetchScalarGridSpec(
            num_scalar_prefetch=0,
            grid=(num_shards, steps),
            in_specs=[
                pl.BlockSpec((block_rows, _LANES), in_map),
                pl.BlockSpec((block_rows, _LANES), in_map),
            ],
            out_specs=pl.BlockSpec((1, 8, _LANES), lambda i, k: (i, 0, 0)),
        ),
        compiler_params=pltpu.CompilerParams(
            dimension_semantics=dim_sem,
            vmem_limit_bytes=48 * 1024 * 1024,
        ),
        cost_estimate=pl.CostEstimate(
            flops=3 * n, transcendentals=0, bytes_accessed=2 * n * itemsize),
    )(p2, t2)

    total = jnp.sum(partials)
    return jnp.log(jnp.sqrt(total) + eps)


if __name__ == "__main__":
    def ref_loss(p, t, eps=1e-8):
        d = p.astype(jnp.float32) - t.astype(jnp.float32)
        return jnp.log(jnp.sqrt(jnp.sum(d * d)) + jnp.float32(eps))

    key = jax.random.PRNGKey(0)
    shapes = [
        (2, 4, 16, 16),     # tiny (module's typical use) -> jnp fast path
        (2, 4, 256, 256),   # 2 MiB -> Pallas path, single block
        (2, 3, 185, 241),   # >1 MiB, numel % 128 != 0 -> pad + ragged-tail mask
    ]
    for idx, shape in enumerate(shapes):
        k1, k2 = jax.random.split(jax.random.fold_in(key, idx))
        pred = jax.random.normal(k1, shape, dtype=jnp.float32)
        target = jax.random.normal(k2, shape, dtype=jnp.float32)

        loss = jax.block_until_ready(log_frobenius_norm_loss(pred, target))
        ref = jax.block_until_ready(ref_loss(pred, target))
        assert jnp.allclose(loss, ref, rtol=1e-5, atol=1e-5), (shape, loss, ref)

    print("KERNEL_OK")
</pallas_src>

<mosaic_0001>
module attributes {stable_mosaic.version = 11 : i64} {
  func.func @_log_frob_kernel(%arg0: i32, %arg1: i32, %arg2: memref<4096x128xf32, #tpu.memory_space<vmem>>, %arg3: memref<4096x128xf32, #tpu.memory_space<vmem>>, %arg4: memref<1x8x128xf32, #tpu.memory_space<vmem>>) attributes {dimension_semantics = [#tpu.dimension_semantics<arbitrary>, #tpu.dimension_semantics<arbitrary>], iteration_bounds = array<i64: 1, 1>, scalar_prefetch = 0 : i64, scratch_operands = 0 : i64, tpu.core_type = #tpu.core_type<tc>, window_params = [{transform_indices = @transform_0, window_bounds = array<i64: 4096, 128>}, {transform_indices = @transform_1, window_bounds = array<i64: 4096, 128>}, {transform_indices = @transform_2, window_bounds = array<i64: 1, 8, 128>}]} {
    %c0_i32 = arith.constant 0 : i32
    %0 = arith.cmpi eq, %arg1, %c0_i32 : i32
    %1 = arith.extui %0 : i1 to i32
    %c0_i32_0 = arith.constant 0 : i32
    %2 = arith.cmpi ne, %1, %c0_i32_0 : i32
    scf.if %2 {
      %cst_11 = arith.constant 0.000000e+00 : f32
      %14 = vector.broadcast %cst_11 : f32 to vector<1x8x128xf32>
      %c0_12 = arith.constant 0 : index
      %c0_13 = arith.constant 0 : index
      %c0_14 = arith.constant 0 : index
      %15 = vector.load %arg4[%c0_12, %c0_13, %c0_14] : memref<1x8x128xf32, #tpu.memory_space<vmem>>, vector<1x8x128xf32>
      tpu.vector_store %arg4[%c0_12, %c0_13, %c0_14], %14 {strides = array<i32>} : memref<1x8x128xf32, #tpu.memory_space<vmem>>, vector<1x8x128xf32>,
    } else {
    }
    %c0 = arith.constant 0 : index
    %c0_1 = arith.constant 0 : index
    %3 = vector.load %arg2[%c0, %c0_1] : memref<4096x128xf32, #tpu.memory_space<vmem>>, vector<4096x128xf32>
    %c0_2 = arith.constant 0 : index
    %c0_3 = arith.constant 0 : index
    %4 = vector.load %arg3[%c0_2, %c0_3] : memref<4096x128xf32, #tpu.memory_space<vmem>>, vector<4096x128xf32>
    %5 = arith.subf %3, %4 : vector<4096x128xf32>
    %6 = arith.mulf %5, %5 : vector<4096x128xf32>
    %7 = vector.shape_cast %6 : vector<4096x128xf32> to vector<128x4x8x128xf32>
    %cst = arith.constant dense<0.000000e+00> : vector<4x8x128xf32>
    %8 = vector.multi_reduction <add>, %7, %cst [0] : vector<128x4x8x128xf32> to vector<4x8x128xf32>
    %c0_4 = arith.constant 0 : index
    %c0_5 = arith.constant 0 : index
    %c0_6 = arith.constant 0 : index
    %9 = vector.load %arg4[%c0_4, %c0_5, %c0_6] : memref<1x8x128xf32, #tpu.memory_space<vmem>>, vector<1x8x128xf32>
    %cst_7 = arith.constant dense<0.000000e+00> : vector<8x128xf32>
    %10 = vector.multi_reduction <add>, %8, %cst_7 [0] : vector<4x8x128xf32> to vector<8x128xf32>
    %11 = vector.shape_cast %10 : vector<8x128xf32> to vector<1x8x128xf32>
    %12 = arith.addf %9, %11 : vector<1x8x128xf32>
    %c0_8 = arith.constant 0 : index
    %c0_9 = arith.constant 0 : index
    %c0_10 = arith.constant 0 : index
    %13 = vector.load %arg4[%c0_8, %c0_9, %c0_10] : memref<1x8x128xf32, #tpu.memory_space<vmem>>, vector<1x8x128xf32>
    tpu.vector_store %arg4[%c0_8, %c0_9, %c0_10], %12 {strides = array<i32>} : memref<1x8x128xf32, #tpu.memory_space<vmem>>, vector<1x8x128xf32>,
    return
  }
  func.func @transform_0(%arg0: i32, %arg1: i32) -> (i32, i32) {
    %c1_i32 = arith.constant 1 : i32
    %0 = arith.muli %arg0, %c1_i32 : i32
    %1 = arith.addi %0, %arg1 : i32
    %c0_i32 = arith.constant 0 : i32
    %c0_i32_0 = arith.constant 0 : i32
    return %1, %c0_i32 : i32, i32
  }
  func.func @transform_1(%arg0: i32, %arg1: i32) -> (i32, i32) {
    %c1_i32 = arith.constant 1 : i32
    %0 = arith.muli %arg0, %c1_i32 : i32
    %1 = arith.addi %0, %arg1 : i32
    %c0_i32 = arith.constant 0 : i32
    %c0_i32_0 = arith.constant 0 : i32
    return %1, %c0_i32 : i32, i32
  }
  func.func @transform_2(%arg0: i32, %arg1: i32) -> (i32, i32, i32) {
    %c0_i32 = arith.constant 0 : i32
    %c0_i32_0 = arith.constant 0 : i32
    %c0_i32_1 = arith.constant 0 : i32
    return %arg0, %c0_i32, %c0_i32_0 : i32, i32, i32
  }
}

</mosaic_0001>

<bundles_post_ra>
// kernel: tpu_custom_call.1
= control target key start
LH: loop header
LB: loop body
LE: loop exit
PB: predicated region body
PF: predicated region fallthrough
CT: control target
= control target key end

     0   :  { %7 = vsyncpa [#allocation3], 0  ;;  %s5284_s0 = inlined_call_operand.hbm [shape: f32[4096,128], index: 0, kind: input, shape index: {}]   ;;  %s5285_s1 = inlined_call_operand.hbm [shape: f32[4096,128], index: 1, kind: input, shape index: {}]   ;;  %s5286_s2 = inlined_call_operand.hbm [shape: f32[1,8,128], index: 2, kind: output, shape index: {}]  }
   0x1   :  { %8 = vsyncpa [#allocation6], 0 }
   0x2   :  { %9 = vsyncpa [#allocation4], 0  ;;  %s2713_s9 = smov [#allocation2]   ;;  %s2641_s13 = scalar_lea.hbm %s5284_s0, 65536 }
   0x3   :  { %s19_s10 = sshll.u32 %s2713_s9, 4  ;;  %p2642_p0 = scmp.ne.s32.totalorder %s5284_s0, %s2641_s13  ;;  %s20_s10 = int_to_ptr.vmem [resolvable:$true] %s19_s10 }
   0x4   :  { %p2645_p1 = scmp.lt.u32.totalorder %s2641_s13, %s5284_s0 }
   0x6   :  { %p2647_p2 = pnand %p2645_p1, %p2642_p0 }
   0x8   :  { %2650 = shalt.err (!%p2647_p2)
}
   0x9   :  { %s2651_s18 = scalar_lea.vmem %s20_s10, 65536  ;;  %p2656_p4 = scmp.lt.s32.totalorder %s20_s10, %s20_s10 }
   0xa   :  { %p2652_p3 = scmp.ne.s32.totalorder %s20_s10, %s2651_s18  ;;  %p2657_p5 = scmp.lt.s32.totalorder %s2651_s18, %s2651_s18 }
   0xc   :  { %p2658_p6 = por %p2657_p5, %p2656_p4 }
   0xe   :  { %p2659_p7 = pnand %p2658_p6, %p2652_p3 }
  0x10   :  { %2662 = shalt.err (!%p2659_p7)
}
  0x11   :  { %s2714_s19 = smov 128   ;;  %s2715_s20 = smov 8  }
  0x12   :  { %25 = dma.hbm_to_vmem [thread:$0]  %s5284_s0, 65536, %s20_s10, [#allocation3], %s2714_s19, %s2714_s19, %s2715_s20  }
  0x13   :  { %s2716_s23 = smov [#allocation5]   ;;  %s2663_s27 = scalar_lea.hbm %s5285_s1, 65536 }
  0x14   :  { %s35_s24 = sshll.u32 %s2716_s23, 4  ;;  %p2664_p8 = scmp.ne.s32.totalorder %s5285_s1, %s2663_s27  ;;  %s36_s24 = int_to_ptr.vmem [resolvable:$true] %s35_s24 }
  0x15   :  { %p2667_p9 = scmp.lt.u32.totalorder %s2663_s27, %s5285_s1 }
  0x17   :  { %p2669_p10 = pnand %p2667_p9, %p2664_p8 }
  0x19   :  { %2672 = shalt.err (!%p2669_p10)
}
  0x1a   :  { %s2673_s4 = scalar_lea.vmem %s36_s24, 65536  ;;  %p2678_p12 = scmp.lt.s32.totalorder %s36_s24, %s36_s24 }
  0x1b   :  { %p2674_p11 = scmp.ne.s32.totalorder %s36_s24, %s2673_s4  ;;  %p2679_p13 = scmp.lt.s32.totalorder %s2673_s4, %s2673_s4 }
  0x1d   :  { %p2680_p0 = por %p2679_p13, %p2678_p12 }
  0x1f   :  { %p2681_p1 = pnand %p2680_p0, %p2674_p11 }
  0x21   :  { %2684 = shalt.err (!%p2681_p1)
}
  0x22   :  { %41 = dma.hbm_to_vmem [thread:$0]  %s5285_s1, 65536, %s36_s24, [#allocation6], %s2714_s19, %s2714_s19, %s2715_s20  }
  0x23   :  { %2707 = dma.done.wait [#allocation3], 65536  }
  0x24   :  { %2708 = vsyncadd [#allocation3], 4294901760 }
  0x25   :  { %2709 = dma.done.wait [#allocation6], 65536  }
  0x26   :  { %2710 = vsyncadd [#allocation6], 4294901760  ;;  %v57_v0 = vld [vmem:[#allocation2] sm:$0xff]  ;;  %v58_v1 = vld [vmem:[#allocation2 + $0x8] sm:$0xff]  ;;  %s2717_s1 = smov [#allocation7]  }
  0x27   :  { %v569_v2 = vld [vmem:[#allocation5] sm:$0xff]  ;;  %v59_v3 = vld [vmem:[#allocation2 + $0x10] sm:$0xff]  ;;  %v60_v4 = vld [vmem:[#allocation2 + $0x18] sm:$0xff]  ;;  %s2625_s6 = sshll.u32 %s2717_s1, 4  ;;  %s2626_s6 = int_to_ptr.vmem [resolvable:$true] %s2625_s6 }
  0x28   :  { %v570_v5 = vld [vmem:[#allocation5 + $0x8] sm:$0xff]  ;;  %v61_v6 = vld [vmem:[#allocation2 + $0x20] sm:$0xff]  ;;  %v63_v8 = vld [vmem:[#allocation2 + $0x30] sm:$0xff]  ;;  %v1081_v14 = vsub.f32 %v57_v0, %v569_v2  ;;  %s2685_s7 = scalar_lea.vmem %s2626_s6, 128  ;;  %p2690_p3 = scmp.lt.s32.totalorder %s2626_s6, %s2626_s6 }
  0x29   :  { %v62_v7 = vld [vmem:[#allocation2 + $0x28] sm:$0xff]  ;;  %v571_v9 = vld [vmem:[#allocation5 + $0x10] sm:$0xff]  ;;  %v64_v10 = vld [vmem:[#allocation2 + $0x38] sm:$0xff]  ;;  %v1082_v21 = vsub.f32 %v58_v1, %v570_v5  ;;  %p2686_p2 = scmp.ne.s32.totalorder %s2626_s6, %s2685_s7  ;;  %p2691_p4 = scmp.lt.s32.totalorder %s2685_s7, %s2685_s7 }
  0x2a   :  { %v65_v11 = vld [vmem:[#allocation2 + $0x40] sm:$0xff]  ;;  %v66_v12 = vld [vmem:[#allocation2 + $0x48] sm:$0xff]  ;;  %v572_v13 = vld [vmem:[#allocation5 + $0x18] sm:$0xff]  ;;  %v1083_v28 = vsub.f32 %v59_v3, %v571_v9  ;;  %v2757_v45 = vmul.f32 %v1081_v14, %v1081_v14 }
  0x2b   :  { %v67_v15 = vld [vmem:[#allocation2 + $0x50] sm:$0xff]  ;;  %v68_v16 = vld [vmem:[#allocation2 + $0x58] sm:$0xff]  ;;  %v69_v17 = vld [vmem:[#allocation2 + $0x60] sm:$0xff]  ;;  %v1084_v35 = vsub.f32 %v60_v4, %v572_v13  ;;  %v2765_v55 = vmul.f32 %v1082_v21, %v1082_v21  ;;  %p2692_p5 = por %p2691_p4, %p2690_p3 }
  0x2c   :  { %v573_v18 = vld [vmem:[#allocation5 + $0x20] sm:$0xff]  ;;  %v574_v19 = vld [vmem:[#allocation5 + $0x28] sm:$0xff]  ;;  %v575_v20 = vld [vmem:[#allocation5 + $0x30] sm:$0xff]  ;;  %5287 = vst [vmem:[#allocation11_spill] sm:$0xff] %v2757_v45  ;;  %v2773_v1 = vmul.f32 %v1083_v28, %v1083_v28 }
  0x2d   :  { %v70_v22 = vld [vmem:[#allocation2 + $0x68] sm:$0xff]  ;;  %v71_v23 = vld [vmem:[#allocation2 + $0x70] sm:$0xff]  ;;  %v72_v24 = vld [vmem:[#allocation2 + $0x78] sm:$0xff]  ;;  %v1085_v42 = vsub.f32 %v61_v6, %v573_v18  ;;  %v1086_v43 = vsub.f32 %v62_v7, %v574_v19  ;;  %v1087_v44 = vsub.f32 %v63_v8, %v575_v20  ;;  %5288 = vst [vmem:[#allocation12_spill] sm:$0xff] %v2765_v55  ;;  %p2693_p6 = pnand %p2692_p5, %p2686_p2 }
  0x2e   :  { %v576_v25 = vld [vmem:[#allocation5 + $0x38] sm:$0xff]  ;;  %v577_v26 = vld [vmem:[#allocation5 + $0x40] sm:$0xff]  ;;  %v578_v27 = vld [vmem:[#allocation5 + $0x48] sm:$0xff]  ;;  %5289 = vst [vmem:[#allocation13_spill] sm:$0xff] %v2773_v1 }
  0x2f   :  { %v73_v29 = vld [vmem:[#allocation2 + $0x80] sm:$0xff]  ;;  %v74_v30 = vld [vmem:[#allocation2 + $0x88] sm:$0xff]  ;;  %v75_v31 = vld [vmem:[#allocation2 + $0x90] sm:$0xff]  ;;  %v2759_v52 = vsub.f32 %v64_v10, %v576_v25  ;;  %v2761_v53 = vsub.f32 %v65_v11, %v577_v26  ;;  %v2763_v54 = vsub.f32 %v66_v12, %v578_v27  ;;  %v2781_v11 = vmul.f32 %v1084_v35, %v1084_v35 }
  0x30   :  { %v579_v32 = vld [vmem:[#allocation5 + $0x50] sm:$0xff]  ;;  %v580_v33 = vld [vmem:[#allocation5 + $0x58] sm:$0xff]  ;;  %v581_v34 = vld [vmem:[#allocation5 + $0x60] sm:$0xff]  ;;  %v2789_v21 = vmul.f32 %v1085_v42, %v1085_v42 }
  0x31   :  { %v76_v36 = vld [vmem:[#allocation2 + $0x98] sm:$0xff]  ;;  %v77_v37 = vld [vmem:[#allocation2 + $0xa0] sm:$0xff]  ;;  %v78_v38 = vld [vmem:[#allocation2 + $0xa8] sm:$0xff]  ;;  %v2767_v62 = vsub.f32 %v67_v15, %v579_v32  ;;  %v2769_v63 = vsub.f32 %v68_v16, %v580_v33  ;;  %v2771_v0 = vsub.f32 %v69_v17, %v581_v34  ;;  %5290 = vst [vmem:[#allocation14_spill] sm:$0xff] %v2781_v11 }
  0x32   :  { %v582_v39 = vld [vmem:[#allocation5 + $0x68] sm:$0xff]  ;;  %v583_v40 = vld [vmem:[#allocation5 + $0x70] sm:$0xff]  ;;  %v584_v41 = vld [vmem:[#allocation5 + $0x78] sm:$0xff]  ;;  %5291 = vst [vmem:[#allocation15_spill] sm:$0xff] %v2789_v21 }
  0x33   :  { %v79_v46 = vld [vmem:[#allocation2 + $0xb0] sm:$0xff]  ;;  %v80_v47 = vld [vmem:[#allocation2 + $0xb8] sm:$0xff]  ;;  %v81_v48 = vld [vmem:[#allocation2 + $0xc0] sm:$0xff]  ;;  %v2775_v8 = vsub.f32 %v70_v22, %v582_v39  ;;  %v2777_v9 = vsub.f32 %v71_v23, %v583_v40  ;;  %v2779_v10 = vsub.f32 %v72_v24, %v584_v41 }
  0x34   :  { %v585_v49 = vld [vmem:[#allocation5 + $0x80] sm:$0xff]  ;;  %v586_v50 = vld [vmem:[#allocation5 + $0x88] sm:$0xff]  ;;  %v587_v51 = vld [vmem:[#allocation5 + $0x90] sm:$0xff] }
  0x35   :  { %v82_v56 = vld [vmem:[#allocation2 + $0xc8] sm:$0xff]  ;;  %v83_v57 = vld [vmem:[#allocation2 + $0xd0] sm:$0xff]  ;;  %v84_v58 = vld [vmem:[#allocation2 + $0xd8] sm:$0xff]  ;;  %v2783_v18 = vsub.f32 %v73_v29, %v585_v49  ;;  %v2785_v19 = vsub.f32 %v74_v30, %v586_v50  ;;  %v2787_v20 = vsub.f32 %v75_v31, %v587_v51  ;;  %v2797_v29 = vmul.f32 %v1086_v43, %v1086_v43 }
  0x36   :  { %v588_v59 = vld [vmem:[#allocation5 + $0x98] sm:$0xff]  ;;  %v589_v60 = vld [vmem:[#allocation5 + $0xa0] sm:$0xff]  ;;  %v590_v61 = vld [vmem:[#allocation5 + $0xa8] sm:$0xff] }
  0x37   :  { %v85_v2 = vld [vmem:[#allocation2 + $0xe0] sm:$0xff]  ;;  %v86_v3 = vld [vmem:[#allocation2 + $0xe8] sm:$0xff]  ;;  %v87_v4 = vld [vmem:[#allocation2 + $0xf0] sm:$0xff]  ;;  %v2791_v28 = vsub.f32 %v76_v36, %v588_v59  ;;  %v2793_v32 = vsub.f32 %v77_v37, %v589_v60  ;;  %v2795_v33 = vsub.f32 %v78_v38, %v590_v61  ;;  %5292 = vst [vmem:[#allocation16_spill] sm:$0xff] %v2797_v29  ;;  %v2805_v36 = vmul.f32 %v1087_v44, %v1087_v44 }
  0x38   :  { %v591_v5 = vld [vmem:[#allocation5 + $0xb0] sm:$0xff]  ;;  %v592_v6 = vld [vmem:[#allocation5 + $0xb8] sm:$0xff]  ;;  %v593_v7 = vld [vmem:[#allocation5 + $0xc0] sm:$0xff] }
  0x39   :  { %v88_v12 = vld [vmem:[#allocation2 + $0xf8] sm:$0xff]  ;;  %v89_v13 = vld [vmem:[#allocation2 + $0x100] sm:$0xff]  ;;  %v90_v14 = vld [vmem:[#allocation2 + $0x108] sm:$0xff]  ;;  %v2799_v41 = vsub.f32 %v79_v46, %v591_v5  ;;  %v2801_v42 = vsub.f32 %v80_v47, %v592_v6  ;;  %v2803_v49 = vsub.f32 %v81_v48, %v593_v7  ;;  %5293 = vst [vmem:[#allocation17_spill] sm:$0xff] %v2805_v36  ;;  %v2815_v46 = vmul.f32 %v2759_v52, %v2759_v52 }
  0x3a   :  { %v594_v15 = vld [vmem:[#allocation5 + $0xc8] sm:$0xff]  ;;  %v595_v16 = vld [vmem:[#allocation5 + $0xd0] sm:$0xff]  ;;  %v596_v17 = vld [vmem:[#allocation5 + $0xd8] sm:$0xff] }
  0x3b   :  { %v91_v22 = vld [vmem:[#allocation2 + $0x110] sm:$0xff]  ;;  %v92_v23 = vld [vmem:[#allocation2 + $0x118] sm:$0xff]  ;;  %v93_v24 = vld [vmem:[#allocation2 + $0x120] sm:$0xff]  ;;  %v2807_v60 = vsub.f32 %v82_v56, %v594_v15  ;;  %v2809_v61 = vsub.f32 %v83_v57, %v595_v16  ;;  %v2811_v11 = vsub.f32 %v84_v58, %v596_v17  ;;  %5294 = vst [vmem:[#allocation18_spill] sm:$0xff] %v2815_v46  ;;  %v2825_v57 = vmul.f32 %v2761_v53, %v2761_v53 }
  0x3c   :  { %v597_v25 = vld [vmem:[#allocation5 + $0xe0] sm:$0xff]  ;;  %v598_v26 = vld [vmem:[#allocation5 + $0xe8] sm:$0xff]  ;;  %v599_v27 = vld [vmem:[#allocation5 + $0xf0] sm:$0xff] }
  0x3d   :  { %v94_v30 = vld [vmem:[#allocation2 + $0x128] sm:$0xff]  ;;  %v95_v34 = vld [vmem:[#allocation2 + $0x130] sm:$0xff]  ;;  %v96_v31 = vld [vmem:[#allocation2 + $0x138] sm:$0xff]  ;;  %v2817_v36 = vsub.f32 %v85_v2, %v597_v25  ;;  %v2819_v1 = vsub.f32 %v86_v3, %v598_v26  ;;  %v2821_v56 = vsub.f32 %v87_v4, %v599_v27  ;;  %5295 = vst [vmem:[#allocation19_spill] sm:$0xff] %v2825_v57  ;;  %v2835_v3 = vmul.f32 %v2763_v54, %v2763_v54 }
  0x3e   :  { %v600_v35 = vld [vmem:[#allocation5 + $0xf8] sm:$0xff]  ;;  %v601_v39 = vld [vmem:[#allocation5 + $0x100] sm:$0xff]  ;;  %v602_v40 = vld [vmem:[#allocation5 + $0x108] sm:$0xff] }
  0x3f   :  { %v97_v37 = vld [vmem:[#allocation2 + $0x140] sm:$0xff]  ;;  %v98_v50 = vld [vmem:[#allocation2 + $0x148] sm:$0xff]  ;;  %v99_v38 = vld [vmem:[#allocation2 + $0x150] sm:$0xff]  ;;  %v2827_v29 = vsub.f32 %v88_v12, %v600_v35  ;;  %v2829_v55 = vsub.f32 %v89_v13, %v601_v39  ;;  %v2831_v2 = vsub.f32 %v90_v14, %v602_v40  ;;  %5298 = vst [vmem:[#allocation22_spill] sm:$0xff] %v2835_v3  ;;  %v2845_v13 = vmul.f32 %v2767_v62, %v2767_v62 }
  0x40   :  { %v603_v51 = vld [vmem:[#allocation5 + $0x110] sm:$0xff]  ;;  %v604_v43 = vld [vmem:[#allocation5 + $0x118] sm:$0xff]  ;;  %v605_v59 = vld [vmem:[#allocation5 + $0x120] sm:$0xff] }
  0x41   :  { %v100_v47 = vld [vmem:[#allocation2 + $0x158] sm:$0xff]  ;;  %v101_v48 = vld [vmem:[#allocation2 + $0x160] sm:$0xff]  ;;  %v102_v44 = vld [vmem:[#allocation2 + $0x168] sm:$0xff]  ;;  %5296 = vst [vmem:[#allocation20_spill] sm:$0xff] %v2829_v55  ;;  %v2837_v21 = vsub.f32 %v91_v22, %v603_v51  ;;  %v2839_v45 = vsub.f32 %v92_v23, %v604_v43  ;;  %v2841_v12 = vsub.f32 %v93_v24, %v605_v59  ;;  %v2855_v23 = vmul.f32 %v2769_v63, %v2769_v63 }
  0x42   :  { %v606_v5 = vld [vmem:[#allocation5 + $0x128] sm:$0xff]  ;;  %v607_v6 = vld [vmem:[#allocation5 + $0x130] sm:$0xff]  ;;  %v608_v7 = vld [vmem:[#allocation5 + $0x138] sm:$0xff]  ;;  %5297 = vst [vmem:[#allocation21_spill] sm:$0xff] %v2831_v2 }
  0x43   :  { %v103_v58 = vld [vmem:[#allocation2 + $0x170] sm:$0xff]  ;;  %v104_v15 = vld [vmem:[#allocation2 + $0x178] sm:$0xff]  ;;  %v105_v52 = vld [vmem:[#allocation2 + $0x180] sm:$0xff]  ;;  %5299 = vst [vmem:[#allocation23_spill] sm:$0xff] %v2839_v45  ;;  %v2847_v2 = vsub.f32 %v94_v30, %v606_v5  ;;  %v2849_v55 = vsub.f32 %v95_v34, %v607_v6  ;;  %v2851_v22 = vsub.f32 %v96_v31, %v608_v7  ;;  %v2865_v34 = vmul.f32 %v2771_v0, %v2771_v0 }
  0x44   :  { %v609_v16 = vld [vmem:[#allocation5 + $0x140] sm:$0xff]  ;;  %v610_v17 = vld [vmem:[#allocation5 + $0x148] sm:$0xff]  ;;  %v611_v46 = vld [vmem:[#allocation5 + $0x150] sm:$0xff]  ;;  %5300 = vst [vmem:[#allocation24_spill] sm:$0xff] %v2841_v12 }
  0x45   :  { %v106_v4 = vld [vmem:[#allocation2 + $0x188] sm:$0xff]  ;;  %v107_v25 = vld [vmem:[#allocation2 + $0x190] sm:$0xff]  ;;  %v108_v53 = vld [vmem:[#allocation2 + $0x198] sm:$0xff]  ;;  %5301 = vst [vmem:[#allocation25_spill] sm:$0xff] %v2845_v13  ;;  %v2857_v12 = vsub.f32 %v97_v37, %v609_v16  ;;  %v2859_v45 = vsub.f32 %v98_v50, %v610_v17  ;;  %v2861_v30 = vsub.f32 %v99_v38, %v611_v46  ;;  %v2875_v50 = vmul.f32 %v2775_v8, %v2775_v8 }
  0x46   :  { %v612_v26 = vld [vmem:[#allocation5 + $0x158] sm:$0xff]  ;;  %v613_v27 = vld [vmem:[#allocation5 + $0x160] sm:$0xff]  ;;  %v614_v57 = vld [vmem:[#allocation5 + $0x168] sm:$0xff]  ;;  %5302 = vst [vmem:[#allocation26_spill] sm:$0xff] %v2849_v55 }
  0x47   :  { %v109_v14 = vld [vmem:[#allocation2 + $0x1a0] sm:$0xff]  ;;  %v110_v35 = vld [vmem:[#allocation2 + $0x1a8] sm:$0xff]  ;;  %v111_v54 = vld [vmem:[#allocation2 + $0x1b0] sm:$0xff]  ;;  %5303 = vst [vmem:[#allocation27_spill] sm:$0xff] %v2851_v22  ;;  %v2867_v22 = vsub.f32 %v100_v47, %v612_v26  ;;  %v2869_v55 = vsub.f32 %v101_v48, %v613_v27  ;;  %v2871_v37 = vsub.f32 %v102_v44, %v614_v57  ;;  %v2885_v48 = vmul.f32 %v2777_v9, %v2777_v9 }
  0x48   :  { %v615_v39 = vld [vmem:[#allocation5 + $0x170] sm:$0xff]  ;;  %v616_v40 = vld [vmem:[#allocation5 + $0x178] sm:$0xff]  ;;  %v617_v3 = vld [vmem:[#allocation5 + $0x180] sm:$0xff]  ;;  %5304 = vst [vmem:[#allocation28_spill] sm:$0xff] %v2855_v23 }
  0x49   :  { %v112_v24 = vld [vmem:[#allocation2 + $0x1b8] sm:$0xff]  ;;  %v113_v51 = vld [vmem:[#allocation2 + $0x1c0] sm:$0xff]  ;;  %v114_v62 = vld [vmem:[#allocation2 + $0x1c8] sm:$0xff]  ;;  %5305 = vst [vmem:[#allocation29_spill] sm:$0xff] %v2859_v45  ;;  %v2879_v45 = vsub.f32 %v104_v15, %v616_v40  ;;  %v2881_v47 = vsub.f32 %v105_v52, %v617_v3  ;;  %v2895_v15 = vmul.f32 %v2779_v10, %v2779_v10 }
  0x4a   :  { %v618_v43 = vld [vmem:[#allocation5 + $0x188] sm:$0xff]  ;;  %v619_v59 = vld [vmem:[#allocation5 + $0x190] sm:$0xff]  ;;  %v620_v13 = vld [vmem:[#allocation5 + $0x198] sm:$0xff]  ;;  %5306 = vst [vmem:[#allocation30_spill] sm:$0xff] %v2861_v30  ;;  %v2877_v30 = vsub.f32 %v103_v58, %v615_v39 }
  0x4b   :  { %5307 = vst [vmem:[#allocation31_spill] sm:$0xff] %v2865_v34  ;;  %v115_v31 = vld [vmem:[#allocation2 + $0x1d0] sm:$0xff]  ;;  %v116_v5 = vld [vmem:[#allocation2 + $0x1d8] sm:$0xff]  ;;  %v117_v63 = vld [vmem:[#allocation2 + $0x1e0] sm:$0xff]  ;;  %v2891_v58 = vsub.f32 %v108_v53, %v620_v13 }
  0x4c   :  { %v621_v6 = vld [vmem:[#allocation5 + $0x1a0] sm:$0xff]  ;;  %v622_v7 = vld [vmem:[#allocation5 + $0x1a8] sm:$0xff]  ;;  %v623_v23 = vld [vmem:[#allocation5 + $0x1b0] sm:$0xff]  ;;  %5308 = vst [vmem:[#allocation32_spill] sm:$0xff] %v2869_v55  ;;  %v2889_v55 = vsub.f32 %v107_v25, %v619_v59  ;;  %v2905_v25 = vmul.f32 %v2783_v18, %v2783_v18 }
  0x4d   :  { %5309 = vst [vmem:[#allocation33_spill] sm:$0xff] %v2871_v37  ;;  %5310 = vst [vmem:[#allocation34_spill] sm:$0xff] %v2875_v50  ;;  %v118_v38 = vld [vmem:[#allocation2 + $0x1e8] sm:$0xff]  ;;  %v119_v46 = vld [vmem:[#allocation2 + $0x1f0] sm:$0xff]  ;;  %v2887_v37 = vsub.f32 %v106_v4, %v618_v43  ;;  %v2901_v4 = vsub.f32 %v111_v54, %v623_v23 }
  0x4e   :  { %v120_v0 = vld [vmem:[#allocation2 + $0x1f8] sm:$0xff]  ;;  %v625_v17 = vld [vmem:[#allocation5 + $0x1c0] sm:$0xff]  ;;  %v626_v34 = vld [vmem:[#allocation5 + $0x1c8] sm:$0xff]  ;;  %5311 = vst [vmem:[#allocation35_spill] sm:$0xff] %v2879_v45  ;;  %v2899_v45 = vsub.f32 %v110_v35, %v622_v7  ;;  %v2915_v35 = vmul.f32 %v2785_v19, %v2785_v19 }
  0x4f   :  { %v624_v16 = vld [vmem:[#allocation5 + $0x1b8] sm:$0xff]  ;;  %5312 = vst [vmem:[#allocation36_spill] sm:$0xff] %v2881_v47  ;;  %5313 = vst [vmem:[#allocation37_spill] sm:$0xff] %v2885_v48  ;;  %v121_v44 = vld [vmem:[#allocation2 + $0x200] sm:$0xff]  ;;  %v2897_v47 = vsub.f32 %v109_v14, %v621_v6  ;;  %v2911_v14 = vsub.f32 %v114_v62, %v626_v34 }
  0x50   :  { %v122_v57 = vld [vmem:[#allocation2 + $0x208] sm:$0xff]  ;;  %v123_v8 = vld [vmem:[#allocation2 + $0x210] sm:$0xff]  ;;  %v628_v27 = vld [vmem:[#allocation5 + $0x1d8] sm:$0xff]  ;;  %5314 = vst [vmem:[#allocation38_spill] sm:$0xff] %v2889_v55  ;;  %v2909_v55 = vsub.f32 %v113_v51, %v625_v17  ;;  %v2925_v51 = vmul.f32 %v2787_v20, %v2787_v20 }
  0x51   :  { %v627_v26 = vld [vmem:[#allocation5 + $0x1d0] sm:$0xff]  ;;  %v629_v50 = vld [vmem:[#allocation5 + $0x1e0] sm:$0xff]  ;;  %5315 = vst [vmem:[#allocation39_spill] sm:$0xff] %v2891_v58  ;;  %5316 = vst [vmem:[#allocation40_spill] sm:$0xff] %v2895_v15  ;;  %v2907_v58 = vsub.f32 %v112_v24, %v624_v16 }
  0x52   :  { %v124_v52 = vld [vmem:[#allocation2 + $0x218] sm:$0xff]  ;;  %v125_v3 = vld [vmem:[#allocation2 + $0x220] sm:$0xff]  ;;  %v126_v9 = vld [vmem:[#allocation2 + $0x228] sm:$0xff]  ;;  %5317 = vst [vmem:[#allocation41_spill] sm:$0xff] %v2899_v45  ;;  %v2919_v45 = vsub.f32 %v116_v5, %v628_v27  ;;  %v2921_v24 = vsub.f32 %v117_v63, %v629_v50  ;;  %v2935_v5 = vmul.f32 %v2791_v28, %v2791_v28 }
  0x53   :  { %v630_v39 = vld [vmem:[#allocation5 + $0x1e8] sm:$0xff]  ;;  %v631_v40 = vld [vmem:[#allocation5 + $0x1f0] sm:$0xff]  ;;  %v632_v48 = vld [vmem:[#allocation5 + $0x1f8] sm:$0xff]  ;;  %5318 = vst [vmem:[#allocation42_spill] sm:$0xff] %v2901_v4  ;;  %v2917_v4 = vsub.f32 %v115_v31, %v627_v26 }
  0x54   :  { %5319 = vst [vmem:[#allocation43_spill] sm:$0xff] %v2905_v25  ;;  %v127_v53 = vld [vmem:[#allocation2 + $0x230] sm:$0xff]  ;;  %v128_v13 = vld [vmem:[#allocation2 + $0x238] sm:$0xff]  ;;  %v129_v10 = vld [vmem:[#allocation2 + $0x240] sm:$0xff]  ;;  %v2931_v31 = vsub.f32 %v120_v0, %v632_v48 }
  0x55   :  { %v633_v43 = vld [vmem:[#allocation5 + $0x200] sm:$0xff]  ;;  %v634_v59 = vld [vmem:[#allocation5 + $0x208] sm:$0xff]  ;;  %v635_v15 = vld [vmem:[#allocation5 + $0x210] sm:$0xff]  ;;  %5320 = vst [vmem:[#allocation44_spill] sm:$0xff] %v2909_v55  ;;  %v2929_v55 = vsub.f32 %v119_v46, %v631_v40  ;;  %v2945_v46 = vmul.f32 %v2793_v32, %v2793_v32 }
  0x56   :  { %5321 = vst [vmem:[#allocation45_spill] sm:$0xff] %v2911_v14  ;;  %5322 = vst [vmem:[#allocation46_spill] sm:$0xff] %v2915_v35  ;;  %v130_v54 = vld [vmem:[#allocation2 + $0x248] sm:$0xff]  ;;  %v131_v23 = vld [vmem:[#allocation2 + $0x250] sm:$0xff]  ;;  %v2927_v14 = vsub.f32 %v118_v38, %v630_v39  ;;  %v2941_v38 = vsub.f32 %v123_v8, %v635_v15 }
  0x57   :  { %v132_v18 = vld [vmem:[#allocation2 + $0x258] sm:$0xff]  ;;  %v637_v7 = vld [vmem:[#allocation5 + $0x220] sm:$0xff]  ;;  %v638_v25 = vld [vmem:[#allocation5 + $0x228] sm:$0xff]  ;;  %5323 = vst [vmem:[#allocation47_spill] sm:$0xff] %v2919_v45  ;;  %v2939_v45 = vsub.f32 %v122_v57, %v634_v59  ;;  %v2955_v57 = vmul.f32 %v2795_v33, %v2795_v33 }
  0x58   :  { %v636_v6 = vld [vmem:[#allocation5 + $0x218] sm:$0xff]  ;;  %5324 = vst [vmem:[#allocation48_spill] sm:$0xff] %v2921_v24  ;;  %5325 = vst [vmem:[#allocation49_spill] sm:$0xff] %v2925_v51  ;;  %v133_v62 = vld [vmem:[#allocation2 + $0x260] sm:$0xff]  ;;  %v2937_v24 = vsub.f32 %v121_v44, %v633_v43  ;;  %v2951_v44 = vsub.f32 %v126_v9, %v638_v25 }
  0x59   :  { %v134_v34 = vld [vmem:[#allocation2 + $0x268] sm:$0xff]  ;;  %v135_v19 = vld [vmem:[#allocation2 + $0x270] sm:$0xff]  ;;  %v640_v17 = vld [vmem:[#allocation5 + $0x238] sm:$0xff]  ;;  %5326 = vst [vmem:[#allocation50_spill] sm:$0xff] %v2929_v55  ;;  %v2949_v55 = vsub.f32 %v125_v3, %v637_v7  ;;  %v2965_v3 = vmul.f32 %v2799_v41, %v2799_v41 }
  0x5a   :  { %v639_v16 = vld [vmem:[#allocation5 + $0x230] sm:$0xff]  ;;  %v641_v35 = vld [vmem:[#allocation5 + $0x240] sm:$0xff]  ;;  %5327 = vst [vmem:[#allocation51_spill] sm:$0xff] %v2931_v31  ;;  %5328 = vst [vmem:[#allocation52_spill] sm:$0xff] %v2935_v5  ;;  %v2947_v31 = vsub.f32 %v124_v52, %v636_v6 }
  0x5b   :  { %v136_v63 = vld [vmem:[#allocation2 + $0x278] sm:$0xff]  ;;  %v137_v50 = vld [vmem:[#allocation2 + $0x280] sm:$0xff]  ;;  %v138_v20 = vld [vmem:[#allocation2 + $0x288] sm:$0xff]  ;;  %5329 = vst [vmem:[#allocation53_spill] sm:$0xff] %v2939_v45  ;;  %v2959_v45 = vsub.f32 %v128_v13, %v640_v17  ;;  %v2961_v52 = vsub.f32 %v129_v10, %v641_v35  ;;  %v2975_v13 = vmul.f32 %v2801_v42, %v2801_v42 }
  0x5c   :  { %v642_v26 = vld [vmem:[#allocation5 + $0x248] sm:$0xff]  ;;  %v643_v27 = vld [vmem:[#allocation5 + $0x250] sm:$0xff]  ;;  %v644_v51 = vld [vmem:[#allocation5 + $0x258] sm:$0xff]  ;;  %5330 = vst [vmem:[#allocation54_spill] sm:$0xff] %v2941_v38  ;;  %v2957_v38 = vsub.f32 %v127_v53, %v639_v16 }
  0x5d   :  { %5331 = vst [vmem:[#allocation55_spill] sm:$0xff] %v2945_v46  ;;  %v139_v0 = vld [vmem:[#allocation2 + $0x290] sm:$0xff]  ;;  %v140_v48 = vld [vmem:[#allocation2 + $0x298] sm:$0xff]  ;;  %v141_v28 = vld [vmem:[#allocation2 + $0x2a0] sm:$0xff]  ;;  %v2971_v53 = vsub.f32 %v132_v18, %v644_v51 }
  0x5e   :  { %v645_v39 = vld [vmem:[#allocation5 + $0x260] sm:$0xff]  ;;  %v646_v40 = vld [vmem:[#allocation5 + $0x268] sm:$0xff]  ;;  %v647_v5 = vld [vmem:[#allocation5 + $0x270] sm:$0xff]  ;;  %5332 = vst [vmem:[#allocation56_spill] sm:$0xff] %v2949_v55  ;;  %v2969_v55 = vsub.f32 %v131_v23, %v643_v27  ;;  %v2985_v23 = vmul.f32 %v2803_v49, %v2803_v49 }
  0x5f   :  { %5333 = vst [vmem:[#allocation57_spill] sm:$0xff] %v2951_v44  ;;  %5334 = vst [vmem:[#allocation58_spill] sm:$0xff] %v2955_v57  ;;  %v142_v8 = vld [vmem:[#allocation2 + $0x2a8] sm:$0xff]  ;;  %v143_v15 = vld [vmem:[#allocation2 + $0x2b0] sm:$0xff]  ;;  %v2967_v44 = vsub.f32 %v130_v54, %v642_v26  ;;  %v2981_v54 = vsub.f32 %v135_v19, %v647_v5 }
  0x60   :  { %v144_v32 = vld [vmem:[#allocation2 + $0x2b8] sm:$0xff]  ;;  %v649_v59 = vld [vmem:[#allocation5 + $0x280] sm:$0xff]  ;;  %v650_v46 = vld [vmem:[#allocation5 + $0x288] sm:$0xff]  ;;  %5335 = vst [vmem:[#allocation59_spill] sm:$0xff] %v2959_v45  ;;  %v2979_v45 = vsub.f32 %v134_v34, %v646_v40  ;;  %v2995_v34 = vmul.f32 %v2807_v60, %v2807_v60 }
  0x61   :  { %v648_v43 = vld [vmem:[#allocation5 + $0x278] sm:$0xff]  ;;  %5336 = vst [vmem:[#allocation60_spill] sm:$0xff] %v2961_v52  ;;  %5337 = vst [vmem:[#allocation61_spill] sm:$0xff] %v2965_v3  ;;  %v145_v9 = vld [vmem:[#allocation2 + $0x2c0] sm:$0xff]  ;;  %v2977_v52 = vsub.f32 %v133_v62, %v645_v39  ;;  %v2991_v62 = vsub.f32 %v138_v20, %v650_v46 }
  0x62   :  { %v146_v25 = vld [vmem:[#allocation2 + $0x2c8] sm:$0xff]  ;;  %v147_v33 = vld [vmem:[#allocation2 + $0x2d0] sm:$0xff]  ;;  %v652_v7 = vld [vmem:[#allocation5 + $0x298] sm:$0xff]  ;;  %5338 = vst [vmem:[#allocation62_spill] sm:$0xff] %v2969_v55  ;;  %v2989_v55 = vsub.f32 %v137_v50, %v649_v59  ;;  %v3005_v50 = vmul.f32 %v2809_v61, %v2809_v61 }
  0x63   :  { %v651_v6 = vld [vmem:[#allocation5 + $0x290] sm:$0xff]  ;;  %v653_v57 = vld [vmem:[#allocation5 + $0x2a0] sm:$0xff]  ;;  %5339 = vst [vmem:[#allocation63_spill] sm:$0xff] %v2971_v53  ;;  %5340 = vst [vmem:[#allocation64_spill] sm:$0xff] %v2975_v13  ;;  %v2987_v53 = vsub.f32 %v136_v63, %v648_v43 }
  0x64   :  { %v148_v10 = vld [vmem:[#allocation2 + $0x2d8] sm:$0xff]  ;;  %v149_v35 = vld [vmem:[#allocation2 + $0x2e0] sm:$0xff]  ;;  %v150_v41 = vld [vmem:[#allocation2 + $0x2e8] sm:$0xff]  ;;  %5341 = vst [vmem:[#allocation65_spill] sm:$0xff] %v2979_v45  ;;  %v2999_v45 = vsub.f32 %v140_v48, %v652_v7  ;;  %v3001_v63 = vsub.f32 %v141_v28, %v653_v57  ;;  %v3015_v48 = vmul.f32 %v2811_v11, %v2811_v11 }
  0x65   :  { %v654_v16 = vld [vmem:[#allocation5 + $0x2a8] sm:$0xff]  ;;  %v655_v17 = vld [vmem:[#allocation5 + $0x2b0] sm:$0xff]  ;;  %v656_v3 = vld [vmem:[#allocation5 + $0x2b8] sm:$0xff]  ;;  %5342 = vst [vmem:[#allocation66_spill] sm:$0xff] %v2981_v54  ;;  %v2997_v54 = vsub.f32 %v139_v0, %v651_v6 }
  0x66   :  { %5343 = vst [vmem:[#allocation67_spill] sm:$0xff] %v2985_v23  ;;  %v151_v18 = vld [vmem:[#allocation2 + $0x2f0] sm:$0xff]  ;;  %v152_v51 = vld [vmem:[#allocation2 + $0x2f8] sm:$0xff]  ;;  %v153_v42 = vld [vmem:[#allocation2 + $0x300] sm:$0xff]  ;;  %v3011_v0 = vsub.f32 %v144_v32, %v656_v3 }
  0x67   :  { %v657_v26 = vld [vmem:[#allocation5 + $0x2c0] sm:$0xff]  ;;  %v658_v27 = vld [vmem:[#allocation5 + $0x2c8] sm:$0xff]  ;;  %v659_v13 = vld [vmem:[#allocation5 + $0x2d0] sm:$0xff]  ;;  %5344 = vst [vmem:[#allocation68_spill] sm:$0xff] %v2989_v55  ;;  %v3009_v55 = vsub.f32 %v143_v15, %v655_v17  ;;  %v3025_v15 = vmul.f32 %v2817_v36, %v2817_v36 }
  0x68   :  { %5345 = vst [vmem:[#allocation69_spill] sm:$0xff] %v2991_v62  ;;  %5346 = vst [vmem:[#allocation70_spill] sm:$0xff] %v2995_v34  ;;  %v154_v19 = vld [vmem:[#allocation2 + $0x308] sm:$0xff]  ;;  %v155_v5 = vld [vmem:[#allocation2 + $0x310] sm:$0xff]  ;;  %v3007_v62 = vsub.f32 %v142_v8, %v654_v16  ;;  %v3021_v8 = vsub.f32 %v147_v33, %v659_v13 }
  0x69   :  { %v156_v49 = vld [vmem:[#allocation2 + $0x318] sm:$0xff]  ;;  %v661_v40 = vld [vmem:[#allocation5 + $0x2e0] sm:$0xff]  ;;  %v662_v23 = vld [vmem:[#allocation5 + $0x2e8] sm:$0xff]  ;;  %5347 = vst [vmem:[#allocation71_spill] sm:$0xff] %v2999_v45  ;;  %v3019_v45 = vsub.f32 %v146_v25, %v658_v27  ;;  %v3035_v25 = vmul.f32 %v2819_v1, %v2819_v1 }
  0x6a   :  { %v660_v39 = vld [vmem:[#allocation5 + $0x2d8] sm:$0xff]  ;;  %5348 = vst [vmem:[#allocation72_spill] sm:$0xff] %v3001_v63  ;;  %5349 = vst [vmem:[#allocation73_spill] sm:$0xff] %v3005_v50  ;;  %v157_v20 = vld [vmem:[#allocation2 + $0x320] sm:$0xff]  ;;  %v3017_v63 = vsub.f32 %v145_v9, %v657_v26  ;;  %v3031_v9 = vsub.f32 %v150_v41, %v662_v23 }
  0x6b   :  { %v158_v46 = vld [vmem:[#allocation2 + $0x328] sm:$0xff]  ;;  %v159_v60 = vld [vmem:[#allocation2 + $0x330] sm:$0xff]  ;;  %v664_v59 = vld [vmem:[#allocation5 + $0x2f8] sm:$0xff]  ;;  %5350 = vst [vmem:[#allocation74_spill] sm:$0xff] %v3009_v55  ;;  %v3029_v55 = vsub.f32 %v149_v35, %v661_v40  ;;  %v3045_v35 = vmul.f32 %v2821_v56, %v2821_v56 }
  0x6c   :  { %v663_v43 = vld [vmem:[#allocation5 + $0x2f0] sm:$0xff]  ;;  %v665_v34 = vld [vmem:[#allocation5 + $0x300] sm:$0xff]  ;;  %5351 = vst [vmem:[#allocation75_spill] sm:$0xff] %v3011_v0  ;;  %5352 = vst [vmem:[#allocation76_spill] sm:$0xff] %v3015_v48  ;;  %v3027_v0 = vsub.f32 %v148_v10, %v660_v39 }
  0x6d   :  { %v160_v28 = vld [vmem:[#allocation2 + $0x338] sm:$0xff]  ;;  %v161_v57 = vld [vmem:[#allocation2 + $0x340] sm:$0xff]  ;;  %v162_v61 = vld [vmem:[#allocation2 + $0x348] sm:$0xff]  ;;  %5353 = vst [vmem:[#allocation77_spill] sm:$0xff] %v3019_v45  ;;  %v3039_v45 = vsub.f32 %v152_v51, %v664_v59  ;;  %v3041_v10 = vsub.f32 %v153_v42, %v665_v34  ;;  %v3055_v51 = vmul.f32 %v2827_v29, %v2827_v29 }
  0x6e   :  { %v666_v6 = vld [vmem:[#allocation5 + $0x308] sm:$0xff]  ;;  %v667_v7 = vld [vmem:[#allocation5 + $0x310] sm:$0xff]  ;;  %v668_v50 = vld [vmem:[#allocation5 + $0x318] sm:$0xff]  ;;  %5354 = vst [vmem:[#allocation78_spill] sm:$0xff] %v3021_v8  ;;  %v3037_v8 = vsub.f32 %v151_v18, %v663_v43 }
  0x6f   :  { %5355 = vst [vmem:[#allocation79_spill] sm:$0xff] %v3025_v15  ;;  %v163_v32 = vld [vmem:[#allocation2 + $0x350] sm:$0xff]  ;;  %v164_v3 = vld [vmem:[#allocation2 + $0x358] sm:$0xff]  ;;  %v165_v11 = vld [vmem:[#allocation2 + $0x360] sm:$0xff]  ;;  %v3051_v18 = vsub.f32 %v156_v49, %v668_v50 }
  0x70   :  { %v669_v16 = vld [vmem:[#allocation5 + $0x320] sm:$0xff]  ;;  %v670_v17 = vld [vmem:[#allocation5 + $0x328] sm:$0xff]  ;;  %v671_v48 = vld [vmem:[#allocation5 + $0x330] sm:$0xff]  ;;  %5356 = vst [vmem:[#allocation80_spill] sm:$0xff] %v3029_v55  ;;  %v3049_v55 = vsub.f32 %v155_v5, %v667_v7 }
  0x71   :  { %5357 = vst [vmem:[#allocation81_spill] sm:$0xff] %v3031_v9  ;;  %5358 = vst [vmem:[#allocation82_spill] sm:$0xff] %v3035_v25  ;;  %v166_v33 = vld [vmem:[#allocation2 + $0x368] sm:$0xff]  ;;  %v167_v13 = vld [vmem:[#allocation2 + $0x370] sm:$0xff]  ;;  %v3047_v9 = vsub.f32 %v154_v19, %v666_v6  ;;  %v3061_v19 = vsub.f32 %v159_v60, %v671_v48 }
  0x72   :  { %v168_v36 = vld [vmem:[#allocation2 + $0x378] sm:$0xff]  ;;  %v673_v27 = vld [vmem:[#allocation5 + $0x340] sm:$0xff]  ;;  %v674_v15 = vld [vmem:[#allocation5 + $0x348] sm:$0xff]  ;;  %5359 = vst [vmem:[#allocation83_spill] sm:$0xff] %v3039_v45  ;;  %v3059_v45 = vsub.f32 %v158_v46, %v670_v17 }
  0x73   :  { %v672_v26 = vld [vmem:[#allocation5 + $0x338] sm:$0xff]  ;;  %5360 = vst [vmem:[#allocation84_spill] sm:$0xff] %v3041_v10  ;;  %5361 = vst [vmem:[#allocation85_spill] sm:$0xff] %v3045_v35  ;;  %v169_v41 = vld [vmem:[#allocation2 + $0x380] sm:$0xff]  ;;  %v3057_v10 = vsub.f32 %v157_v20, %v669_v16  ;;  %v3071_v20 = vsub.f32 %v162_v61, %v674_v15 }
  0x74   :  { %v170_v23 = vld [vmem:[#allocation2 + $0x388] sm:$0xff]  ;;  %v171_v1 = vld [vmem:[#allocation2 + $0x390] sm:$0xff]  ;;  %v676_v40 = vld [vmem:[#allocation5 + $0x358] sm:$0xff]  ;;  %5362 = vst [vmem:[#allocation86_spill] sm:$0xff] %v3047_v9  ;;  %v3069_v9 = vsub.f32 %v161_v57, %v673_v27  ;;  %v3085_v57 = vmul.f32 %v2837_v21, %v2837_v21 }
  0x75   :  { %v675_v39 = vld [vmem:[#allocation5 + $0x350] sm:$0xff]  ;;  %v677_v25 = vld [vmem:[#allocation5 + $0x360] sm:$0xff]  ;;  %5363 = vst [vmem:[#allocation87_spill] sm:$0xff] %v3049_v55  ;;  %5364 = vst [vmem:[#allocation88_spill] sm:$0xff] %v3051_v18  ;;  %v3067_v55 = vsub.f32 %v160_v28, %v672_v26 }
  0x76   :  { %5365 = vst [vmem:[#allocation89_spill] sm:$0xff] %v3055_v51  ;;  %v172_v42 = vld [vmem:[#allocation2 + $0x398] sm:$0xff]  ;;  %v173_v34 = vld [vmem:[#allocation2 + $0x3a0] sm:$0xff]  ;;  %v174_v56 = vld [vmem:[#allocation2 + $0x3a8] sm:$0xff]  ;;  %v3081_v28 = vsub.f32 %v165_v11, %v677_v25 }
  0x77   :  { %v678_v43 = vld [vmem:[#allocation5 + $0x368] sm:$0xff]  ;;  %v679_v59 = vld [vmem:[#allocation5 + $0x370] sm:$0xff]  ;;  %v680_v35 = vld [vmem:[#allocation5 + $0x378] sm:$0xff]  ;;  %5366 = vst [vmem:[#allocation90_spill] sm:$0xff] %v3057_v10  ;;  %v3079_v10 = vsub.f32 %v164_v3, %v676_v40 }
  0x78   :  { %5367 = vst [vmem:[#allocation91_spill] sm:$0xff] %v3059_v45  ;;  %5368 = vst [vmem:[#allocation92_spill] sm:$0xff] %v3061_v19  ;;  %v5369_v5 = vld [vmem:[#allocation20_spill] sm:$0xff]  ;;  %v176_v6 = vld [vmem:[#allocation2 + $0x3b8] sm:$0xff]  ;;  %v3077_v45 = vsub.f32 %v163_v32, %v675_v39  ;;  %v3091_v32 = vsub.f32 %v168_v36, %v680_v35 }
  0x79   :  { %v3065_v49 = vmul.f32 %v5369_v5, %v5369_v5  ;;  %v175_v50 = vld [vmem:[#allocation2 + $0x3b0] sm:$0xff]  ;;  %v177_v29 = vld [vmem:[#allocation2 + $0x3c0] sm:$0xff]  ;;  %v682_v51 = vld [vmem:[#allocation5 + $0x388] sm:$0xff]  ;;  %5371 = vst [vmem:[#allocation93_spill] sm:$0xff] %v3069_v9  ;;  %v3089_v9 = vsub.f32 %v167_v13, %v679_v59 }
  0x7a   :  { %v681_v7 = vld [vmem:[#allocation5 + $0x380] sm:$0xff]  ;;  %v683_v18 = vld [vmem:[#allocation5 + $0x390] sm:$0xff]  ;;  %5372 = vst [vmem:[#allocation94_spill] sm:$0xff] %v3071_v20  ;;  %v5373_v46 = vld [vmem:[#allocation21_spill] sm:$0xff]  ;;  %v3087_v20 = vsub.f32 %v166_v33, %v678_v43 }
  0x7b   :  { %5370 = vst [vmem:[#allocation20_spill] sm:$0xff] %v3065_v49  ;;  %v3075_v60 = vmul.f32 %v5373_v46, %v5373_v46  ;;  %v178_v48 = vld [vmem:[#allocation2 + $0x3c8] sm:$0xff]  ;;  %v179_v16 = vld [vmem:[#allocation2 + $0x3d0] sm:$0xff]  ;;  %v180_v17 = vld [vmem:[#allocation2 + $0x3d8] sm:$0xff]  ;;  %v3101_v33 = vsub.f32 %v171_v1, %v683_v18 }
  0x7c   :  { %v684_v5 = vld [vmem:[#allocation5 + $0x398] sm:$0xff]  ;;  %v685_v49 = vld [vmem:[#allocation5 + $0x3a0] sm:$0xff]  ;;  %v686_v19 = vld [vmem:[#allocation5 + $0x3a8] sm:$0xff]  ;;  %5375 = vst [vmem:[#allocation95_spill] sm:$0xff] %v3077_v45  ;;  %v3099_v45 = vsub.f32 %v170_v23, %v682_v51  ;;  %v3115_v23 = vmul.f32 %v2847_v2, %v2847_v2 }
  0x7d   :  { %5374 = vst [vmem:[#allocation21_spill] sm:$0xff] %v3075_v60  ;;  %5376 = vst [vmem:[#allocation96_spill] sm:$0xff] %v3079_v10  ;;  %v181_v61 = vld [vmem:[#allocation2 + $0x3e0] sm:$0xff]  ;;  %v182_v15 = vld [vmem:[#allocation2 + $0x3e8] sm:$0xff]  ;;  %v3097_v10 = vsub.f32 %v169_v41, %v681_v7  ;;  %v3111_v41 = vsub.f32 %v174_v56, %v686_v19 }
  0x7e   :  { %5377 = vst [vmem:[#allocation97_spill] sm:$0xff] %v3081_v28  ;;  %5378 = vst [vmem:[#allocation98_spill] sm:$0xff] %v3085_v57  ;;  %v183_v26 = vld [vmem:[#allocation2 + $0x3f0] sm:$0xff]  ;;  %v688_v46 = vld [vmem:[#allocation5 + $0x3b8] sm:$0xff] }
  0x7f   :  { %v687_v27 = vld [vmem:[#allocation5 + $0x3b0] sm:$0xff]  ;;  %v689_v60 = vld [vmem:[#allocation5 + $0x3c0] sm:$0xff]  ;;  %5379 = vst [vmem:[#allocation99_spill] sm:$0xff] %v3087_v20  ;;  %5380 = vst [vmem:[#allocation100_spill] sm:$0xff] %v3089_v9  ;;  %v3107_v9 = vsub.f32 %v172_v42, %v684_v5  ;;  %v3109_v20 = vsub.f32 %v173_v34, %v685_v49 }
  0x80   :  { %5381 = vst [vmem:[#allocation101_spill] sm:$0xff] %v3091_v32  ;;  %v5382_v3 = vld [vmem:[#allocation23_spill] sm:$0xff]  ;;  %v184_v25 = vld [vmem:[#allocation2 + $0x3f8] sm:$0xff]  ;;  %v185_v39 = vld [vmem:[#allocation2 + $0x400] sm:$0xff]  ;;  %v3121_v42 = vsub.f32 %v177_v29, %v689_v60 }
  0x81   :  { %v3095_v11 = vmul.f32 %v5382_v3, %v5382_v3  ;;  %v186_v21 = vld [vmem:[#allocation2 + $0x408] sm:$0xff]  ;;  %v691_v57 = vld [vmem:[#allocation5 + $0x3d0] sm:$0xff]  ;;  %v692_v28 = vld [vmem:[#allocation5 + $0x3d8] sm:$0xff]  ;;  %5384 = vst [vmem:[#allocation102_spill] sm:$0xff] %v3099_v45  ;;  %v3119_v45 = vsub.f32 %v176_v6, %v688_v46 }
  0x82   :  { %v690_v40 = vld [vmem:[#allocation5 + $0x3c8] sm:$0xff]  ;;  %5385 = vst [vmem:[#allocation103_spill] sm:$0xff] %v3101_v33  ;;  %v5386_v13 = vld [vmem:[#allocation24_spill] sm:$0xff]  ;;  %v188_v43 = vld [vmem:[#allocation2 + $0x418] sm:$0xff]  ;;  %v3117_v33 = vsub.f32 %v175_v50, %v687_v27  ;;  %v3131_v50 = vsub.f32 %v180_v17, %v692_v28 }
  0x83   :  { %5383 = vst [vmem:[#allocation23_spill] sm:$0xff] %v3095_v11  ;;  %v3105_v36 = vmul.f32 %v5386_v13, %v5386_v13  ;;  %v187_v35 = vld [vmem:[#allocation2 + $0x410] sm:$0xff]  ;;  %v189_v59 = vld [vmem:[#allocation2 + $0x420] sm:$0xff]  ;;  %v694_v11 = vld [vmem:[#allocation5 + $0x3e8] sm:$0xff] }
  0x84   :  { %v693_v3 = vld [vmem:[#allocation5 + $0x3e0] sm:$0xff]  ;;  %v695_v32 = vld [vmem:[#allocation5 + $0x3f0] sm:$0xff]  ;;  %5388 = vst [vmem:[#allocation104_spill] sm:$0xff] %v3107_v9  ;;  %5389 = vst [vmem:[#allocation105_spill] sm:$0xff] %v3109_v20  ;;  %v3127_v20 = vsub.f32 %v178_v48, %v690_v40  ;;  %v3129_v9 = vsub.f32 %v179_v16, %v691_v57  ;;  %v3145_v16 = vmul.f32 %v2857_v12, %v2857_v12 }
  0x85   :  { %5387 = vst [vmem:[#allocation24_spill] sm:$0xff] %v3105_v36  ;;  %5390 = vst [vmem:[#allocation106_spill] sm:$0xff] %v3111_v41  ;;  %v190_v1 = vld [vmem:[#allocation2 + $0x428] sm:$0xff]  ;;  %v191_v18 = vld [vmem:[#allocation2 + $0x430] sm:$0xff]  ;;  %v3141_v48 = vsub.f32 %v183_v26, %v695_v32 }
  0x86   :  { %5391 = vst [vmem:[#allocation107_spill] sm:$0xff] %v3115_v23  ;;  %v192_v51 = vld [vmem:[#allocation2 + $0x438] sm:$0xff]  ;;  %v697_v13 = vld [vmem:[#allocation5 + $0x400] sm:$0xff]  ;;  %v698_v36 = vld [vmem:[#allocation5 + $0x408] sm:$0xff] }
  0x87   :  { %v696_v7 = vld [vmem:[#allocation5 + $0x3f8] sm:$0xff]  ;;  %5392 = vst [vmem:[#allocation108_spill] sm:$0xff] %v3117_v33  ;;  %5393 = vst [vmem:[#allocation109_spill] sm:$0xff] %v3119_v45  ;;  %v5395_v34 = vld [vmem:[#allocation26_spill] sm:$0xff]  ;;  %v3137_v45 = vsub.f32 %v181_v61, %v693_v3  ;;  %v3139_v33 = vsub.f32 %v182_v15, %v694_v11  ;;  %v3151_v61 = vsub.f32 %v186_v21, %v698_v36 }
  0x88   :  { %5394 = vst [vmem:[#allocation110_spill] sm:$0xff] %v3121_v42  ;;  %v3125_v56 = vmul.f32 %v5395_v34, %v5395_v34  ;;  %v193_v19 = vld [vmem:[#allocation2 + $0x440] sm:$0xff]  ;;  %v194_v49 = vld [vmem:[#allocation2 + $0x448] sm:$0xff]  ;;  %v195_v2 = vld [vmem:[#allocation2 + $0x450] sm:$0xff] }
  0x89   :  { %v699_v5 = vld [vmem:[#allocation5 + $0x410] sm:$0xff]  ;;  %v700_v23 = vld [vmem:[#allocation5 + $0x418] sm:$0xff]  ;;  %v701_v41 = vld [vmem:[#allocation5 + $0x420] sm:$0xff]  ;;  %5397 = vst [vmem:[#allocation111_spill] sm:$0xff] %v3129_v9  ;;  %v3149_v9 = vsub.f32 %v185_v39, %v697_v13 }
  0x8a   :  { %5396 = vst [vmem:[#allocation26_spill] sm:$0xff] %v3125_v56  ;;  %5398 = vst [vmem:[#allocation112_spill] sm:$0xff] %v3131_v50  ;;  %v5399_v6 = vld [vmem:[#allocation27_spill] sm:$0xff]  ;;  %v196_v60 = vld [vmem:[#allocation2 + $0x458] sm:$0xff]  ;;  %v3147_v50 = vsub.f32 %v184_v25, %v696_v7  ;;  %v3161_v25 = vsub.f32 %v189_v59, %v701_v41 }
  0x8b   :  { %v3135_v29 = vmul.f32 %v5399_v6, %v5399_v6  ;;  %v197_v27 = vld [vmem:[#allocation2 + $0x460] sm:$0xff]  ;;  %v198_v46 = vld [vmem:[#allocation2 + $0x468] sm:$0xff]  ;;  %v703_v56 = vld [vmem:[#allocation5 + $0x430] sm:$0xff]  ;;  %5401 = vst [vmem:[#allocation113_spill] sm:$0xff] %v3137_v45  ;;  %v3159_v45 = vsub.f32 %v188_v43, %v700_v23  ;;  %v3175_v43 = vmul.f32 %v2867_v22, %v2867_v22 }
  0x8c   :  { %v702_v34 = vld [vmem:[#allocation5 + $0x428] sm:$0xff]  ;;  %v704_v42 = vld [vmem:[#allocation5 + $0x438] sm:$0xff]  ;;  %5402 = vst [vmem:[#allocation114_spill] sm:$0xff] %v3139_v33  ;;  %5403 = vst [vmem:[#allocation115_spill] sm:$0xff] %v3141_v48  ;;  %v3157_v33 = vsub.f32 %v187_v35, %v699_v5 }
  0x8d   :  { %5400 = vst [vmem:[#allocation27_spill] sm:$0xff] %v3135_v29  ;;  %5404 = vst [vmem:[#allocation116_spill] sm:$0xff] %v3145_v16  ;;  %v199_v17 = vld [vmem:[#allocation2 + $0x470] sm:$0xff]  ;;  %v200_v28 = vld [vmem:[#allocation2 + $0x478] sm:$0xff]  ;;  %v3171_v35 = vsub.f32 %v192_v51, %v704_v42 }
  0x8e   :  { %v201_v57 = vld [vmem:[#allocation2 + $0x480] sm:$0xff]  ;;  %v706_v6 = vld [vmem:[#allocation5 + $0x448] sm:$0xff]  ;;  %v707_v29 = vld [vmem:[#allocation5 + $0x450] sm:$0xff]  ;;  %5405 = vst [vmem:[#allocation117_spill] sm:$0xff] %v3147_v50  ;;  %v3169_v50 = vsub.f32 %v191_v18, %v703_v56 }
  0x8f   :  { %v705_v40 = vld [vmem:[#allocation5 + $0x440] sm:$0xff]  ;;  %5406 = vst [vmem:[#allocation118_spill] sm:$0xff] %v3149_v9  ;;  %5407 = vst [vmem:[#allocation119_spill] sm:$0xff] %v3151_v61  ;;  %v5408_v15 = vld [vmem:[#allocation29_spill] sm:$0xff]  ;;  %v3167_v9 = vsub.f32 %v190_v1, %v702_v34  ;;  %v3181_v1 = vsub.f32 %v195_v2, %v707_v29 }
  0x90   :  { %v3155_v26 = vmul.f32 %v5408_v15, %v5408_v15  ;;  %v202_v32 = vld [vmem:[#allocation2 + $0x488] sm:$0xff]  ;;  %v203_v11 = vld [vmem:[#allocation2 + $0x490] sm:$0xff]  ;;  %v204_v12 = vld [vmem:[#allocation2 + $0x498] sm:$0xff]  ;;  %5410 = vst [vmem:[#allocation120_spill] sm:$0xff] %v3159_v45  ;;  %v3179_v45 = vsub.f32 %v194_v49, %v706_v6 }
  0x91   :  { %v708_v3 = vld [vmem:[#allocation5 + $0x458] sm:$0xff]  ;;  %v709_v16 = vld [vmem:[#allocation5 + $0x460] sm:$0xff]  ;;  %v710_v48 = vld [vmem:[#allocation5 + $0x468] sm:$0xff]  ;;  %5411 = vst [vmem:[#allocation121_spill] sm:$0xff] %v3161_v25  ;;  %v3177_v25 = vsub.f32 %v193_v19, %v705_v40 }
  0x92   :  { %5409 = vst [vmem:[#allocation29_spill] sm:$0xff] %v3155_v26  ;;  %v5412_v39 = vld [vmem:[#allocation30_spill] sm:$0xff]  ;;  %v206_v7 = vld [vmem:[#allocation2 + $0x4a8] sm:$0xff]  ;;  %v207_v13 = vld [vmem:[#allocation2 + $0x4b0] sm:$0xff]  ;;  %v3191_v19 = vsub.f32 %v198_v46, %v710_v48 }
  0x93   :  { %v3165_v21 = vmul.f32 %v5412_v39, %v5412_v39  ;;  %v205_v36 = vld [vmem:[#allocation2 + $0x4a0] sm:$0xff]  ;;  %v711_v15 = vld [vmem:[#allocation5 + $0x470] sm:$0xff]  ;;  %v712_v26 = vld [vmem:[#allocation5 + $0x478] sm:$0xff]  ;;  %5414 = vst [vmem:[#allocation122_spill] sm:$0xff] %v3167_v9  ;;  %v3189_v9 = vsub.f32 %v197_v27, %v709_v16  ;;  %v3205_v27 = vmul.f32 %v2877_v30, %v2877_v30 }
  0x94   :  { %v713_v61 = vld [vmem:[#allocation5 + $0x480] sm:$0xff]  ;;  %5415 = vst [vmem:[#allocation123_spill] sm:$0xff] %v3169_v50  ;;  %5416 = vst [vmem:[#allocation124_spill] sm:$0xff] %v3171_v35  ;;  %v208_v59 = vld [vmem:[#allocation2 + $0x4b8] sm:$0xff]  ;;  %v3187_v50 = vsub.f32 %v196_v60, %v708_v3 }
  0x95   :  { %5413 = vst [vmem:[#allocation30_spill] sm:$0xff] %v3165_v21  ;;  %5417 = vst [vmem:[#allocation125_spill] sm:$0xff] %v3175_v43  ;;  %v209_v41 = vld [vmem:[#allocation2 + $0x4c0] sm:$0xff]  ;;  %v210_v23 = vld [vmem:[#allocation2 + $0x4c8] sm:$0xff]  ;;  %v3201_v60 = vsub.f32 %v201_v57, %v713_v61 }
  0x96   :  { %v714_v5 = vld [vmem:[#allocation5 + $0x488] sm:$0xff]  ;;  %v715_v39 = vld [vmem:[#allocation5 + $0x490] sm:$0xff]  ;;  %v716_v21 = vld [vmem:[#allocation5 + $0x498] sm:$0xff]  ;;  %5418 = vst [vmem:[#allocation126_spill] sm:$0xff] %v3177_v25  ;;  %v3199_v25 = vsub.f32 %v200_v28, %v712_v26 }
  0x97   :  { %5419 = vst [vmem:[#allocation127_spill] sm:$0xff] %v3179_v45  ;;  %5420 = vst [vmem:[#allocation128_spill] sm:$0xff] %v3181_v1  ;;  %v5421_v18 = vld [vmem:[#allocation32_spill] sm:$0xff]  ;;  %v212_v56 = vld [vmem:[#allocation2 + $0x4d8] sm:$0xff]  ;;  %v3197_v45 = vsub.f32 %v199_v17, %v711_v15  ;;  %v3211_v17 = vsub.f32 %v204_v12, %v716_v21 }
  0x98   :  { %v3185_v51 = vmul.f32 %v5421_v18, %v5421_v18  ;;  %v211_v42 = vld [vmem:[#allocation2 + $0x4d0] sm:$0xff]  ;;  %v213_v22 = vld [vmem:[#allocation2 + $0x4e0] sm:$0xff]  ;;  %v718_v43 = vld [vmem:[#allocation5 + $0x4a8] sm:$0xff]  ;;  %5423 = vst [vmem:[#allocation129_spill] sm:$0xff] %v3189_v9  ;;  %v3209_v9 = vsub.f32 %v203_v11, %v715_v39 }
  0x99   :  { %v717_v34 = vld [vmem:[#allocation5 + $0x4a0] sm:$0xff]  ;;  %v719_v35 = vld [vmem:[#allocation5 + $0x4b0] sm:$0xff]  ;;  %5424 = vst [vmem:[#allocation130_spill] sm:$0xff] %v3191_v19  ;;  %v5425_v49 = vld [vmem:[#allocation33_spill] sm:$0xff] }
  0x9a   :  { %5422 = vst [vmem:[#allocation32_spill] sm:$0xff] %v3185_v51  ;;  %v3195_v2 = vmul.f32 %v5425_v49, %v5425_v49  ;;  %v214_v29 = vld [vmem:[#allocation2 + $0x4e8] sm:$0xff]  ;;  %v215_v40 = vld [vmem:[#allocation2 + $0x4f0] sm:$0xff]  ;;  %v216_v6 = vld [vmem:[#allocation2 + $0x4f8] sm:$0xff] }
  0x9b   :  { %v720_v18 = vld [vmem:[#allocation5 + $0x4b8] sm:$0xff]  ;;  %v721_v51 = vld [vmem:[#allocation5 + $0x4c0] sm:$0xff]  ;;  %v722_v1 = vld [vmem:[#allocation5 + $0x4c8] sm:$0xff]  ;;  %5427 = vst [vmem:[#allocation131_spill] sm:$0xff] %v3197_v45  ;;  %v3217_v45 = vsub.f32 %v205_v36, %v717_v34 }
  0x9c   :  { %5426 = vst [vmem:[#allocation33_spill] sm:$0xff] %v3195_v2  ;;  %5428 = vst [vmem:[#allocation132_spill] sm:$0xff] %v3199_v25  ;;  %v217_v46 = vld [vmem:[#allocation2 + $0x500] sm:$0xff]  ;;  %v218_v48 = vld [vmem:[#allocation2 + $0x508] sm:$0xff]  ;;  %v3207_v2 = vsub.f32 %v202_v32, %v714_v5  ;;  %v3221_v32 = vsub.f32 %v207_v13, %v719_v35  ;;  %v3231_v36 = vsub.f32 %v210_v23, %v722_v1 }
  0x9d   :  { %5429 = vst [vmem:[#allocation133_spill] sm:$0xff] %v3201_v60  ;;  %5430 = vst [vmem:[#allocation134_spill] sm:$0xff] %v3205_v27  ;;  %v219_v16 = vld [vmem:[#allocation2 + $0x510] sm:$0xff]  ;;  %v724_v49 = vld [vmem:[#allocation5 + $0x4d8] sm:$0xff]  ;;  %v3219_v27 = vsub.f32 %v206_v7, %v718_v43  ;;  %v3235_v7 = vmul.f32 %v2887_v37, %v2887_v37 }
  0x9e   :  { %v723_v3 = vld [vmem:[#allocation5 + $0x4d0] sm:$0xff]  ;;  %v725_v19 = vld [vmem:[#allocation5 + $0x4e0] sm:$0xff]  ;;  %5431 = vst [vmem:[#allocation135_spill] sm:$0xff] %v3207_v2  ;;  %5432 = vst [vmem:[#allocation136_spill] sm:$0xff] %v3209_v9  ;;  %v3227_v2 = vsub.f32 %v208_v59, %v720_v18 }
  0x9f   :  { %5433 = vst [vmem:[#allocation137_spill] sm:$0xff] %v3211_v17  ;;  %v5434_v28 = vld [vmem:[#allocation35_spill] sm:$0xff]  ;;  %v220_v61 = vld [vmem:[#allocation2 + $0x518] sm:$0xff]  ;;  %v221_v26 = vld [vmem:[#allocation2 + $0x520] sm:$0xff]  ;;  %v3241_v59 = vsub.f32 %v213_v22, %v725_v19 }
  0xa0   :  { %v3215_v57 = vmul.f32 %v5434_v28, %v5434_v28  ;;  %v222_v30 = vld [vmem:[#allocation2 + $0x528] sm:$0xff]  ;;  %v727_v60 = vld [vmem:[#allocation5 + $0x4f0] sm:$0xff]  ;;  %v728_v25 = vld [vmem:[#allocation5 + $0x4f8] sm:$0xff]  ;;  %5436 = vst [vmem:[#allocation138_spill] sm:$0xff] %v3217_v45  ;;  %v3239_v45 = vsub.f32 %v212_v56, %v724_v49 }
  0xa1   :  { %v726_v15 = vld [vmem:[#allocation5 + $0x4e8] sm:$0xff]  ;;  %5437 = vst [vmem:[#allocation139_spill] sm:$0xff] %v3219_v27  ;;  %5438 = vst [vmem:[#allocation140_spill] sm:$0xff] %v3221_v32  ;;  %v5439_v11 = vld [vmem:[#allocation36_spill] sm:$0xff]  ;;  %v3237_v27 = vsub.f32 %v211_v42, %v723_v3  ;;  %v3251_v42 = vsub.f32 %v216_v6, %v728_v25  ;;  %v3265_v25 = vmul.f32 %v2897_v47, %v2897_v47 }
  0xa2   :  { %5435 = vst [vmem:[#allocation35_spill] sm:$0xff] %v3215_v57  ;;  %v3225_v12 = vmul.f32 %v5439_v11, %v5439_v11  ;;  %v223_v21 = vld [vmem:[#allocation2 + $0x530] sm:$0xff]  ;;  %v224_v5 = vld [vmem:[#allocation2 + $0x538] sm:$0xff]  ;;  %v225_v39 = vld [vmem:[#allocation2 + $0x540] sm:$0xff]  ;;  %v3229_v57 = vsub.f32 %v209_v41, %v721_v51 }
  0xa3   :  { %v729_v28 = vld [vmem:[#allocation5 + $0x500] sm:$0xff]  ;;  %v730_v17 = vld [vmem:[#allocation5 + $0x508] sm:$0xff]  ;;  %v731_v9 = vld [vmem:[#allocation5 + $0x510] sm:$0xff]  ;;  %5440 = vst [vmem:[#allocation36_spill] sm:$0xff] %v3227_v2  ;;  %v3247_v2 = vsub.f32 %v214_v29, %v726_v15 }
  0xa4   :  { %5441 = vst [vmem:[#allocation141_spill] sm:$0xff] %v3229_v57  ;;  %5442 = vst [vmem:[#allocation142_spill] sm:$0xff] %v3231_v36  ;;  %v226_v13 = vld [vmem:[#allocation2 + $0x548] sm:$0xff]  ;;  %v227_v35 = vld [vmem:[#allocation2 + $0x550] sm:$0xff]  ;;  %v3261_v29 = vsub.f32 %v219_v16, %v731_v9 }
  0xa5   :  { %5443 = vst [vmem:[#allocation143_spill] sm:$0xff] %v3235_v7  ;;  %v228_v43 = vld [vmem:[#allocation2 + $0x558] sm:$0xff]  ;;  %v733_v11 = vld [vmem:[#allocation5 + $0x520] sm:$0xff]  ;;  %v734_v32 = vld [vmem:[#allocation5 + $0x528] sm:$0xff]  ;;  %v3249_v7 = vsub.f32 %v215_v40, %v727_v60 }
  0xa6   :  { %v732_v34 = vld [vmem:[#allocation5 + $0x518] sm:$0xff]  ;;  %5444 = vst [vmem:[#allocation144_spill] sm:$0xff] %v3237_v27  ;;  %5445 = vst [vmem:[#allocation145_spill] sm:$0xff] %v3239_v45  ;;  %v5447_v41 = vld [vmem:[#allocation38_spill] sm:$0xff]  ;;  %v3257_v27 = vsub.f32 %v217_v46, %v729_v28  ;;  %v3271_v46 = vsub.f32 %v222_v30, %v734_v32 }
  0xa7   :  { %5446 = vst [vmem:[#allocation146_spill] sm:$0xff] %v3241_v59  ;;  %v3245_v23 = vmul.f32 %v5447_v41, %v5447_v41  ;;  %v229_v1 = vld [vmem:[#allocation2 + $0x560] sm:$0xff]  ;;  %v230_v51 = vld [vmem:[#allocation2 + $0x568] sm:$0xff]  ;;  %v231_v37 = vld [vmem:[#allocation2 + $0x570] sm:$0xff] }
  0xa8   :  { %v735_v18 = vld [vmem:[#allocation5 + $0x530] sm:$0xff]  ;;  %v736_v36 = vld [vmem:[#allocation5 + $0x538] sm:$0xff]  ;;  %v737_v57 = vld [vmem:[#allocation5 + $0x540] sm:$0xff]  ;;  %5449 = vst [vmem:[#allocation147_spill] sm:$0xff] %v3247_v2  ;;  %v3269_v2 = vsub.f32 %v221_v26, %v733_v11 }
  0xa9   :  { %5448 = vst [vmem:[#allocation38_spill] sm:$0xff] %v3245_v23  ;;  %5450 = vst [vmem:[#allocation148_spill] sm:$0xff] %v3249_v7  ;;  %v5452_v56 = vld [vmem:[#allocation39_spill] sm:$0xff]  ;;  %v232_v19 = vld [vmem:[#allocation2 + $0x578] sm:$0xff]  ;;  %v3259_v23 = vsub.f32 %v218_v48, %v730_v17  ;;  %v3267_v7 = vsub.f32 %v220_v61, %v732_v34  ;;  %v3281_v61 = vsub.f32 %v225_v39, %v737_v57 }
  0xaa   :  { %5451 = vst [vmem:[#allocation149_spill] sm:$0xff] %v3251_v42  ;;  %v3255_v22 = vmul.f32 %v5452_v56, %v5452_v56  ;;  %v233_v3 = vld [vmem:[#allocation2 + $0x580] sm:$0xff]  ;;  %v234_v49 = vld [vmem:[#allocation2 + $0x588] sm:$0xff]  ;;  %v739_v59 = vld [vmem:[#allocation5 + $0x550] sm:$0xff]  ;;  %v3295_v57 = vmul.f32 %v2907_v58, %v2907_v58 }
  0xab   :  { %v738_v41 = vld [vmem:[#allocation5 + $0x548] sm:$0xff]  ;;  %v740_v45 = vld [vmem:[#allocation5 + $0x558] sm:$0xff]  ;;  %5453 = vst [vmem:[#allocation39_spill] sm:$0xff] %v3257_v27  ;;  %5454 = vst [vmem:[#allocation150_spill] sm:$0xff] %v3259_v23  ;;  %v3277_v27 = vsub.f32 %v223_v21, %v735_v18 }
  0xac   :  { %5455 = vst [vmem:[#allocation151_spill] sm:$0xff] %v3261_v29  ;;  %5456 = vst [vmem:[#allocation152_spill] sm:$0xff] %v3265_v25  ;;  %v235_v40 = vld [vmem:[#allocation2 + $0x590] sm:$0xff]  ;;  %v236_v6 = vld [vmem:[#allocation2 + $0x598] sm:$0xff]  ;;  %v3279_v25 = vsub.f32 %v224_v5, %v736_v36  ;;  %v3291_v21 = vsub.f32 %v228_v43, %v740_v45 }
  0xad   :  { %v237_v60 = vld [vmem:[#allocation2 + $0x5a0] sm:$0xff]  ;;  %v742_v56 = vld [vmem:[#allocation5 + $0x568] sm:$0xff]  ;;  %v743_v42 = vld [vmem:[#allocation5 + $0x570] sm:$0xff]  ;;  %5457 = vst [vmem:[#allocation153_spill] sm:$0xff] %v3267_v7  ;;  %v3287_v7 = vsub.f32 %v226_v13, %v738_v41 }
  0xae   :  { %v741_v15 = vld [vmem:[#allocation5 + $0x560] sm:$0xff]  ;;  %5458 = vst [vmem:[#allocation154_spill] sm:$0xff] %v3269_v2  ;;  %5459 = vst [vmem:[#allocation155_spill] sm:$0xff] %v3271_v46  ;;  %v5460_v48 = vld [vmem:[#allocation41_spill] sm:$0xff]  ;;  %v3301_v13 = vsub.f32 %v231_v37, %v743_v42 }
  0xaf   :  { %v3275_v9 = vmul.f32 %v5460_v48, %v5460_v48  ;;  %v238_v16 = vld [vmem:[#allocation2 + $0x5a8] sm:$0xff]  ;;  %v239_v17 = vld [vmem:[#allocation2 + $0x5b0] sm:$0xff]  ;;  %v240_v47 = vld [vmem:[#allocation2 + $0x5b8] sm:$0xff]  ;;  %5462 = vst [vmem:[#allocation156_spill] sm:$0xff] %v3277_v27  ;;  %v3299_v27 = vsub.f32 %v230_v51, %v742_v56 }
  0xb0   :  { %v744_v28 = vld [vmem:[#allocation5 + $0x578] sm:$0xff]  ;;  %v745_v29 = vld [vmem:[#allocation5 + $0x580] sm:$0xff]  ;;  %v746_v23 = vld [vmem:[#allocation5 + $0x588] sm:$0xff]  ;;  %5463 = vst [vmem:[#allocation157_spill] sm:$0xff] %v3279_v25  ;;  %v3297_v25 = vsub.f32 %v229_v1, %v741_v15 }
  0xb1   :  { %5461 = vst [vmem:[#allocation41_spill] sm:$0xff] %v3275_v9  ;;  %5464 = vst [vmem:[#allocation158_spill] sm:$0xff] %v3281_v61  ;;  %v5465_v26 = vld [vmem:[#allocation42_spill] sm:$0xff]  ;;  %v242_v34 = vld [vmem:[#allocation2 + $0x5c8] sm:$0xff]  ;;  %v3289_v9 = vsub.f32 %v227_v35, %v739_v59  ;;  %v3311_v1 = vsub.f32 %v234_v49, %v746_v23  ;;  %v3325_v23 = vmul.f32 %v2917_v4, %v2917_v4 }
  0xb2   :  { %v3285_v30 = vmul.f32 %v5465_v26, %v5465_v26  ;;  %v241_v32 = vld [vmem:[#allocation2 + $0x5c0] sm:$0xff]  ;;  %v243_v11 = vld [vmem:[#allocation2 + $0x5d0] sm:$0xff]  ;;  %v748_v46 = vld [vmem:[#allocation5 + $0x598] sm:$0xff]  ;;  %5466 = vst [vmem:[#allocation42_spill] sm:$0xff] %v3287_v7  ;;  %v3307_v7 = vsub.f32 %v232_v19, %v744_v28 }
  0xb3   :  { %v747_v48 = vld [vmem:[#allocation5 + $0x590] sm:$0xff]  ;;  %v749_v2 = vld [vmem:[#allocation5 + $0x5a0] sm:$0xff]  ;;  %5467 = vst [vmem:[#allocation159_spill] sm:$0xff] %v3289_v9  ;;  %5468 = vst [vmem:[#allocation160_spill] sm:$0xff] %v3291_v21 }
  0xb4   :  { %5469 = vst [vmem:[#allocation161_spill] sm:$0xff] %v3295_v57  ;;  %v244_v5 = vld [vmem:[#allocation2 + $0x5d8] sm:$0xff]  ;;  %v245_v39 = vld [vmem:[#allocation2 + $0x5e0] sm:$0xff]  ;;  %v246_v36 = vld [vmem:[#allocation2 + $0x5e8] sm:$0xff]  ;;  %v3309_v57 = vsub.f32 %v233_v3, %v745_v29  ;;  %v3321_v19 = vsub.f32 %v237_v60, %v749_v2 }
  0xb5   :  { %v750_v18 = vld [vmem:[#allocation5 + $0x5a8] sm:$0xff]  ;;  %v751_v26 = vld [vmem:[#allocation5 + $0x5b0] sm:$0xff]  ;;  %v752_v61 = vld [vmem:[#allocation5 + $0x5b8] sm:$0xff]  ;;  %5470 = vst [vmem:[#allocation162_spill] sm:$0xff] %v3297_v25  ;;  %v3317_v25 = vsub.f32 %v235_v40, %v747_v48 }
  0xb6   :  { %5471 = vst [vmem:[#allocation163_spill] sm:$0xff] %v3299_v27  ;;  %5472 = vst [vmem:[#allocation164_spill] sm:$0xff] %v3301_v13  ;;  %v5473_v35 = vld [vmem:[#allocation44_spill] sm:$0xff]  ;;  %v248_v59 = vld [vmem:[#allocation2 + $0x5f8] sm:$0xff]  ;;  %v3331_v40 = vsub.f32 %v240_v47, %v752_v61 }
  0xb7   :  { %v3305_v45 = vmul.f32 %v5473_v35, %v5473_v35  ;;  %v247_v43 = vld [vmem:[#allocation2 + $0x5f0] sm:$0xff]  ;;  %v249_v58 = vld [vmem:[#allocation2 + $0x600] sm:$0xff]  ;;  %v754_v21 = vld [vmem:[#allocation5 + $0x5c8] sm:$0xff]  ;;  %5475 = vst [vmem:[#allocation165_spill] sm:$0xff] %v3307_v7  ;;  %v3329_v7 = vsub.f32 %v239_v17, %v751_v26 }
  0xb8   :  { %v753_v41 = vld [vmem:[#allocation5 + $0x5c0] sm:$0xff]  ;;  %v755_v9 = vld [vmem:[#allocation5 + $0x5d0] sm:$0xff]  ;;  %5476 = vst [vmem:[#allocation166_spill] sm:$0xff] %v3309_v57  ;;  %5477 = vst [vmem:[#allocation167_spill] sm:$0xff] %v3311_v1  ;;  %v3327_v57 = vsub.f32 %v238_v16, %v750_v18 }
  0xb9   :  { %5474 = vst [vmem:[#allocation44_spill] sm:$0xff] %v3305_v45  ;;  %v5478_v51 = vld [vmem:[#allocation45_spill] sm:$0xff]  ;;  %v250_v42 = vld [vmem:[#allocation2 + $0x608] sm:$0xff]  ;;  %v251_v15 = vld [vmem:[#allocation2 + $0x610] sm:$0xff]  ;;  %v3319_v45 = vsub.f32 %v236_v6, %v748_v46  ;;  %v3341_v16 = vsub.f32 %v243_v11, %v755_v9  ;;  %v3355_v9 = vmul.f32 %v2927_v14, %v2927_v14 }
  0xba   :  { %v3315_v37 = vmul.f32 %v5478_v51, %v5478_v51  ;;  %v252_v56 = vld [vmem:[#allocation2 + $0x618] sm:$0xff]  ;;  %v757_v13 = vld [vmem:[#allocation5 + $0x5e0] sm:$0xff]  ;;  %v758_v27 = vld [vmem:[#allocation5 + $0x5e8] sm:$0xff]  ;;  %5479 = vst [vmem:[#allocation45_spill] sm:$0xff] %v3317_v25  ;;  %v3337_v25 = vsub.f32 %v241_v32, %v753_v41 }
  0xbb   :  { %v756_v35 = vld [vmem:[#allocation5 + $0x5d8] sm:$0xff]  ;;  %5480 = vst [vmem:[#allocation168_spill] sm:$0xff] %v3319_v45  ;;  %5481 = vst [vmem:[#allocation169_spill] sm:$0xff] %v3321_v19  ;;  %v253_v3 = vld [vmem:[#allocation2 + $0x620] sm:$0xff]  ;;  %v3351_v32 = vsub.f32 %v246_v36, %v758_v27 }
  0xbc   :  { %5482 = vst [vmem:[#allocation170_spill] sm:$0xff] %v3325_v23  ;;  %v254_v49 = vld [vmem:[#allocation2 + $0x628] sm:$0xff]  ;;  %v255_v29 = vld [vmem:[#allocation2 + $0x630] sm:$0xff]  ;;  %v760_v51 = vld [vmem:[#allocation5 + $0x5f8] sm:$0xff]  ;;  %v3339_v23 = vsub.f32 %v242_v34, %v754_v21 }
  0xbd   :  { %v759_v28 = vld [vmem:[#allocation5 + $0x5f0] sm:$0xff]  ;;  %v761_v1 = vld [vmem:[#allocation5 + $0x600] sm:$0xff]  ;;  %5483 = vst [vmem:[#allocation171_spill] sm:$0xff] %v3327_v57  ;;  %5484 = vst [vmem:[#allocation172_spill] sm:$0xff] %v3329_v7  ;;  %v3347_v57 = vsub.f32 %v244_v5, %v756_v35 }
  0xbe   :  { %5485 = vst [vmem:[#allocation173_spill] sm:$0xff] %v3331_v40  ;;  %v5486_v6 = vld [vmem:[#allocation47_spill] sm:$0xff]  ;;  %v256_v60 = vld [vmem:[#allocation2 + $0x638] sm:$0xff]  ;;  %v257_v46 = vld [vmem:[#allocation2 + $0x640] sm:$0xff]  ;;  %v3361_v5 = vsub.f32 %v249_v58, %v761_v1 }
  0xbf   :  { %v3335_v2 = vmul.f32 %v5486_v6, %v5486_v6  ;;  %v258_v4 = vld [vmem:[#allocation2 + $0x648] sm:$0xff]  ;;  %v763_v19 = vld [vmem:[#allocation5 + $0x610] sm:$0xff]  ;;  %v764_v45 = vld [vmem:[#allocation5 + $0x618] sm:$0xff]  ;;  %5488 = vst [vmem:[#allocation174_spill] sm:$0xff] %v3337_v25  ;;  %v3359_v25 = vsub.f32 %v248_v59, %v760_v51 }
  0xc0   :  { %v762_v48 = vld [vmem:[#allocation5 + $0x608] sm:$0xff]  ;;  %5489 = vst [vmem:[#allocation175_spill] sm:$0xff] %v3339_v23  ;;  %5490 = vst [vmem:[#allocation176_spill] sm:$0xff] %v3341_v16  ;;  %v5491_v17 = vld [vmem:[#allocation48_spill] sm:$0xff]  ;;  %v3357_v23 = vsub.f32 %v247_v43, %v759_v28  ;;  %v3371_v43 = vsub.f32 %v252_v56, %v764_v45  ;;  %v3385_v45 = vmul.f32 %v2937_v24, %v2937_v24 }
  0xc1   :  { %5487 = vst [vmem:[#allocation47_spill] sm:$0xff] %v3335_v2  ;;  %v3345_v47 = vmul.f32 %v5491_v17, %v5491_v17  ;;  %v259_v61 = vld [vmem:[#allocation2 + $0x650] sm:$0xff]  ;;  %v260_v18 = vld [vmem:[#allocation2 + $0x658] sm:$0xff]  ;;  %v261_v26 = vld [vmem:[#allocation2 + $0x660] sm:$0xff]  ;;  %v3349_v2 = vsub.f32 %v245_v39, %v757_v13 }
  0xc2   :  { %v765_v6 = vld [vmem:[#allocation5 + $0x620] sm:$0xff]  ;;  %v766_v40 = vld [vmem:[#allocation5 + $0x628] sm:$0xff]  ;;  %v767_v7 = vld [vmem:[#allocation5 + $0x630] sm:$0xff]  ;;  %5492 = vst [vmem:[#allocation48_spill] sm:$0xff] %v3347_v57  ;;  %v3367_v57 = vsub.f32 %v250_v42, %v762_v48 }
  0xc3   :  { %5493 = vst [vmem:[#allocation177_spill] sm:$0xff] %v3349_v2  ;;  %5494 = vst [vmem:[#allocation178_spill] sm:$0xff] %v3351_v32  ;;  %v262_v34 = vld [vmem:[#allocation2 + $0x668] sm:$0xff]  ;;  %v263_v11 = vld [vmem:[#allocation2 + $0x670] sm:$0xff]  ;;  %v3381_v42 = vsub.f32 %v255_v29, %v767_v7 }
  0xc4   :  { %5495 = vst [vmem:[#allocation179_spill] sm:$0xff] %v3355_v9  ;;  %v264_v21 = vld [vmem:[#allocation2 + $0x678] sm:$0xff]  ;;  %v769_v17 = vld [vmem:[#allocation5 + $0x640] sm:$0xff]  ;;  %v770_v16 = vld [vmem:[#allocation5 + $0x648] sm:$0xff]  ;;  %v3369_v9 = vsub.f32 %v251_v15, %v763_v19 }
  0xc5   :  { %v768_v41 = vld [vmem:[#allocation5 + $0x638] sm:$0xff]  ;;  %5496 = vst [vmem:[#allocation180_spill] sm:$0xff] %v3357_v23  ;;  %5497 = vst [vmem:[#allocation181_spill] sm:$0xff] %v3359_v25  ;;  %v5499_v39 = vld [vmem:[#allocation50_spill] sm:$0xff]  ;;  %v3377_v23 = vsub.f32 %v253_v3, %v765_v6  ;;  %v3391_v3 = vsub.f32 %v258_v4, %v770_v16 }
  0xc6   :  { %5498 = vst [vmem:[#allocation182_spill] sm:$0xff] %v3361_v5  ;;  %v3365_v27 = vmul.f32 %v5499_v39, %v5499_v39  ;;  %v265_v36 = vld [vmem:[#allocation2 + $0x680] sm:$0xff]  ;;  %v266_v13 = vld [vmem:[#allocation2 + $0x688] sm:$0xff]  ;;  %v267_v14 = vld [vmem:[#allocation2 + $0x690] sm:$0xff] }
  0xc7   :  { %v771_v35 = vld [vmem:[#allocation5 + $0x650] sm:$0xff]  ;;  %v772_v32 = vld [vmem:[#allocation5 + $0x658] sm:$0xff]  ;;  %v773_v2 = vld [vmem:[#allocation5 + $0x660] sm:$0xff]  ;;  %5501 = vst [vmem:[#allocation183_spill] sm:$0xff] %v3367_v57  ;;  %v3389_v57 = vsub.f32 %v257_v46, %v769_v17 }
  0xc8   :  { %5500 = vst [vmem:[#allocation50_spill] sm:$0xff] %v3365_v27  ;;  %5502 = vst [vmem:[#allocation184_spill] sm:$0xff] %v3369_v9  ;;  %v5504_v59 = vld [vmem:[#allocation51_spill] sm:$0xff]  ;;  %v268_v1 = vld [vmem:[#allocation2 + $0x698] sm:$0xff]  ;;  %v3379_v27 = vsub.f32 %v254_v49, %v766_v40  ;;  %v3387_v9 = vsub.f32 %v256_v60, %v768_v41  ;;  %v3401_v60 = vsub.f32 %v261_v26, %v773_v2 }
  0xc9   :  { %5503 = vst [vmem:[#allocation185_spill] sm:$0xff] %v3371_v43  ;;  %v3375_v58 = vmul.f32 %v5504_v59, %v5504_v59  ;;  %v269_v28 = vld [vmem:[#allocation2 + $0x6a0] sm:$0xff]  ;;  %v270_v51 = vld [vmem:[#allocation2 + $0x6a8] sm:$0xff]  ;;  %v775_v5 = vld [vmem:[#allocation5 + $0x670] sm:$0xff]  ;;  %v3415_v2 = vmul.f32 %v2947_v31, %v2947_v31 }
  0xca   :  { %v774_v39 = vld [vmem:[#allocation5 + $0x668] sm:$0xff]  ;;  %v776_v25 = vld [vmem:[#allocation5 + $0x678] sm:$0xff]  ;;  %5505 = vst [vmem:[#allocation51_spill] sm:$0xff] %v3377_v23  ;;  %5506 = vst [vmem:[#allocation186_spill] sm:$0xff] %v3379_v27  ;;  %v3397_v23 = vsub.f32 %v259_v61, %v771_v35 }
  0xcb   :  { %5507 = vst [vmem:[#allocation187_spill] sm:$0xff] %v3381_v42  ;;  %5508 = vst [vmem:[#allocation188_spill] sm:$0xff] %v3385_v45  ;;  %v271_v15 = vld [vmem:[#allocation2 + $0x6b0] sm:$0xff]  ;;  %v272_v56 = vld [vmem:[#allocation2 + $0x6b8] sm:$0xff]  ;;  %v3399_v45 = vsub.f32 %v260_v18, %v772_v32  ;;  %v3411_v61 = vsub.f32 %v264_v21, %v776_v25 }
  0xcc   :  { %v273_v19 = vld [vmem:[#allocation2 + $0x6c0] sm:$0xff]  ;;  %v778_v59 = vld [vmem:[#allocation5 + $0x688] sm:$0xff]  ;;  %v779_v43 = vld [vmem:[#allocation5 + $0x690] sm:$0xff]  ;;  %5509 = vst [vmem:[#allocation189_spill] sm:$0xff] %v3387_v9  ;;  %v3407_v9 = vsub.f32 %v262_v34, %v774_v39 }
  0xcd   :  { %v777_v48 = vld [vmem:[#allocation5 + $0x680] sm:$0xff]  ;;  %5510 = vst [vmem:[#allocation190_spill] sm:$0xff] %v3389_v57  ;;  %5511 = vst [vmem:[#allocation191_spill] sm:$0xff] %v3391_v3  ;;  %v5512_v49 = vld [vmem:[#allocation53_spill] sm:$0xff]  ;;  %v3421_v34 = vsub.f32 %v267_v14, %v779_v43 }
  0xce   :  { %v3395_v7 = vmul.f32 %v5512_v49, %v5512_v49  ;;  %v274_v29 = vld [vmem:[#allocation2 + $0x6c8] sm:$0xff]  ;;  %v275_v40 = vld [vmem:[#allocation2 + $0x6d0] sm:$0xff]  ;;  %v276_v24 = vld [vmem:[#allocation2 + $0x6d8] sm:$0xff]  ;;  %5514 = vst [vmem:[#allocation192_spill] sm:$0xff] %v3397_v23  ;;  %v3419_v23 = vsub.f32 %v266_v13, %v778_v59 }
  0xcf   :  { %v780_v6 = vld [vmem:[#allocation5 + $0x698] sm:$0xff]  ;;  %v781_v42 = vld [vmem:[#allocation5 + $0x6a0] sm:$0xff]  ;;  %v782_v27 = vld [vmem:[#allocation5 + $0x6a8] sm:$0xff]  ;;  %5515 = vst [vmem:[#allocation193_spill] sm:$0xff] %v3399_v45  ;;  %v3417_v45 = vsub.f32 %v265_v36, %v777_v48 }
  0xd0   :  { %5513 = vst [vmem:[#allocation53_spill] sm:$0xff] %v3395_v7  ;;  %5516 = vst [vmem:[#allocation194_spill] sm:$0xff] %v3401_v60  ;;  %v5517_v46 = vld [vmem:[#allocation54_spill] sm:$0xff]  ;;  %v278_v41 = vld [vmem:[#allocation2 + $0x6e8] sm:$0xff]  ;;  %v3409_v7 = vsub.f32 %v263_v11, %v775_v5  ;;  %v3431_v36 = vsub.f32 %v270_v51, %v782_v27  ;;  %v3445_v27 = vmul.f32 %v2957_v38, %v2957_v38 }
  0xd1   :  { %v3405_v4 = vmul.f32 %v5517_v46, %v5517_v46  ;;  %v277_v16 = vld [vmem:[#allocation2 + $0x6e0] sm:$0xff]  ;;  %v279_v17 = vld [vmem:[#allocation2 + $0x6f0] sm:$0xff]  ;;  %v784_v3 = vld [vmem:[#allocation5 + $0x6b8] sm:$0xff]  ;;  %5518 = vst [vmem:[#allocation54_spill] sm:$0xff] %v3407_v9  ;;  %v3427_v9 = vsub.f32 %v268_v1, %v780_v6 }
  0xd2   :  { %v783_v49 = vld [vmem:[#allocation5 + $0x6b0] sm:$0xff]  ;;  %v785_v57 = vld [vmem:[#allocation5 + $0x6c0] sm:$0xff]  ;;  %5519 = vst [vmem:[#allocation195_spill] sm:$0xff] %v3409_v7  ;;  %5520 = vst [vmem:[#allocation196_spill] sm:$0xff] %v3411_v61 }
  0xd3   :  { %5521 = vst [vmem:[#allocation197_spill] sm:$0xff] %v3415_v2  ;;  %v280_v18 = vld [vmem:[#allocation2 + $0x6f8] sm:$0xff]  ;;  %v281_v26 = vld [vmem:[#allocation2 + $0x700] sm:$0xff]  ;;  %v282_v32 = vld [vmem:[#allocation2 + $0x708] sm:$0xff]  ;;  %v3429_v2 = vsub.f32 %v269_v28, %v781_v42  ;;  %v3441_v1 = vsub.f32 %v273_v19, %v785_v57 }
  0xd4   :  { %v786_v35 = vld [vmem:[#allocation5 + $0x6c8] sm:$0xff]  ;;  %v787_v46 = vld [vmem:[#allocation5 + $0x6d0] sm:$0xff]  ;;  %v788_v60 = vld [vmem:[#allocation5 + $0x6d8] sm:$0xff]  ;;  %5522 = vst [vmem:[#allocation198_spill] sm:$0xff] %v3417_v45  ;;  %v3437_v45 = vsub.f32 %v271_v15, %v783_v49 }
  0xd5   :  { %5523 = vst [vmem:[#allocation199_spill] sm:$0xff] %v3419_v23  ;;  %5524 = vst [vmem:[#allocation200_spill] sm:$0xff] %v3421_v34  ;;  %v5525_v11 = vld [vmem:[#allocation56_spill] sm:$0xff]  ;;  %v284_v5 = vld [vmem:[#allocation2 + $0x718] sm:$0xff]  ;;  %v3451_v15 = vsub.f32 %v276_v24, %v788_v60 }
  0xd6   :  { %v3425_v25 = vmul.f32 %v5525_v11, %v5525_v11  ;;  %v283_v21 = vld [vmem:[#allocation2 + $0x710] sm:$0xff]  ;;  %v285_v31 = vld [vmem:[#allocation2 + $0x720] sm:$0xff]  ;;  %v790_v61 = vld [vmem:[#allocation5 + $0x6e8] sm:$0xff]  ;;  %5527 = vst [vmem:[#allocation201_spill] sm:$0xff] %v3427_v9  ;;  %v3449_v9 = vsub.f32 %v275_v40, %v787_v46 }
  0xd7   :  { %v789_v39 = vld [vmem:[#allocation5 + $0x6e0] sm:$0xff]  ;;  %v791_v7 = vld [vmem:[#allocation5 + $0x6f0] sm:$0xff]  ;;  %5528 = vst [vmem:[#allocation202_spill] sm:$0xff] %v3429_v2  ;;  %5529 = vst [vmem:[#allocation203_spill] sm:$0xff] %v3431_v36  ;;  %v3447_v2 = vsub.f32 %v274_v29, %v786_v35 }
  0xd8   :  { %5526 = vst [vmem:[#allocation56_spill] sm:$0xff] %v3425_v25  ;;  %v5530_v13 = vld [vmem:[#allocation57_spill] sm:$0xff]  ;;  %v286_v43 = vld [vmem:[#allocation2 + $0x728] sm:$0xff]  ;;  %v287_v48 = vld [vmem:[#allocation2 + $0x730] sm:$0xff]  ;;  %v3439_v25 = vsub.f32 %v272_v56, %v784_v3  ;;  %v3461_v29 = vsub.f32 %v279_v17, %v791_v7  ;;  %v3475_v7 = vmul.f32 %v2967_v44, %v2967_v44 }
  0xd9   :  { %v3435_v14 = vmul.f32 %v5530_v13, %v5530_v13  ;;  %v288_v59 = vld [vmem:[#allocation2 + $0x738] sm:$0xff]  ;;  %v793_v34 = vld [vmem:[#allocation5 + $0x700] sm:$0xff]  ;;  %v794_v23 = vld [vmem:[#allocation5 + $0x708] sm:$0xff]  ;;  %5531 = vst [vmem:[#allocation57_spill] sm:$0xff] %v3437_v45  ;;  %v3457_v45 = vsub.f32 %v277_v16, %v789_v39 }
  0xda   :  { %v792_v11 = vld [vmem:[#allocation5 + $0x6f8] sm:$0xff]  ;;  %5532 = vst [vmem:[#allocation204_spill] sm:$0xff] %v3439_v25  ;;  %5533 = vst [vmem:[#allocation205_spill] sm:$0xff] %v3441_v1  ;;  %v289_v28 = vld [vmem:[#allocation2 + $0x740] sm:$0xff]  ;;  %v3471_v16 = vsub.f32 %v282_v32, %v794_v23 }
  0xdb   :  { %5534 = vst [vmem:[#allocation206_spill] sm:$0xff] %v3445_v27  ;;  %v290_v51 = vld [vmem:[#allocation2 + $0x748] sm:$0xff]  ;;  %v291_v42 = vld [vmem:[#allocation2 + $0x750] sm:$0xff]  ;;  %v796_v13 = vld [vmem:[#allocation5 + $0x718] sm:$0xff]  ;;  %v3459_v27 = vsub.f32 %v278_v41, %v790_v61 }
  0xdc   :  { %v795_v6 = vld [vmem:[#allocation5 + $0x710] sm:$0xff]  ;;  %v797_v36 = vld [vmem:[#allocation5 + $0x720] sm:$0xff]  ;;  %5535 = vst [vmem:[#allocation207_spill] sm:$0xff] %v3447_v2  ;;  %5536 = vst [vmem:[#allocation208_spill] sm:$0xff] %v3449_v9  ;;  %v3467_v2 = vsub.f32 %v280_v18, %v792_v11 }
  0xdd   :  { %5537 = vst [vmem:[#allocation209_spill] sm:$0xff] %v3451_v15  ;;  %v5538_v56 = vld [vmem:[#allocation59_spill] sm:$0xff]  ;;  %v292_v19 = vld [vmem:[#allocation2 + $0x758] sm:$0xff]  ;;  %v293_v3 = vld [vmem:[#allocation2 + $0x760] sm:$0xff]  ;;  %v3481_v18 = vsub.f32 %v285_v31, %v797_v36 }
  0xde   :  { %v3455_v57 = vmul.f32 %v5538_v56, %v5538_v56  ;;  %v294_v38 = vld [vmem:[#allocation2 + $0x768] sm:$0xff]  ;;  %v799_v1 = vld [vmem:[#allocation5 + $0x730] sm:$0xff]  ;;  %v800_v25 = vld [vmem:[#allocation5 + $0x738] sm:$0xff]  ;;  %5540 = vst [vmem:[#allocation210_spill] sm:$0xff] %v3457_v45  ;;  %v3479_v45 = vsub.f32 %v284_v5, %v796_v13 }
  0xdf   :  { %v798_v49 = vld [vmem:[#allocation5 + $0x728] sm:$0xff]  ;;  %5541 = vst [vmem:[#allocation211_spill] sm:$0xff] %v3459_v27  ;;  %5542 = vst [vmem:[#allocation212_spill] sm:$0xff] %v3461_v29  ;;  %v5543_v40 = vld [vmem:[#allocation60_spill] sm:$0xff]  ;;  %v3477_v27 = vsub.f32 %v283_v21, %v795_v6  ;;  %v3491_v21 = vsub.f32 %v288_v59, %v800_v25  ;;  %v3505_v25 = vmul.f32 %v2977_v52, %v2977_v52 }
  0xe0   :  { %5539 = vst [vmem:[#allocation59_spill] sm:$0xff] %v3455_v57  ;;  %v3465_v24 = vmul.f32 %v5543_v40, %v5543_v40  ;;  %v295_v60 = vld [vmem:[#allocation2 + $0x770] sm:$0xff]  ;;  %v296_v35 = vld [vmem:[#allocation2 + $0x778] sm:$0xff]  ;;  %v297_v46 = vld [vmem:[#allocation2 + $0x780] sm:$0xff]  ;;  %v3469_v57 = vsub.f32 %v281_v26, %v793_v34 }
  0xe1   :  { %v801_v56 = vld [vmem:[#allocation5 + $0x740] sm:$0xff]  ;;  %v802_v15 = vld [vmem:[#allocation5 + $0x748] sm:$0xff]  ;;  %v803_v9 = vld [vmem:[#allocation5 + $0x750] sm:$0xff]  ;;  %5544 = vst [vmem:[#allocation60_spill] sm:$0xff] %v3467_v2  ;;  %v3487_v2 = vsub.f32 %v286_v43, %v798_v49 }
  0xe2   :  { %5545 = vst [vmem:[#allocation213_spill] sm:$0xff] %v3469_v57  ;;  %5546 = vst [vmem:[#allocation214_spill] sm:$0xff] %v3471_v16  ;;  %v298_v41 = vld [vmem:[#allocation2 + $0x788] sm:$0xff]  ;;  %v299_v17 = vld [vmem:[#allocation2 + $0x790] sm:$0xff]  ;;  %v3501_v43 = vsub.f32 %v291_v42, %v803_v9 }
  0xe3   :  { %5547 = vst [vmem:[#allocation215_spill] sm:$0xff] %v3475_v7  ;;  %v300_v61 = vld [vmem:[#allocation2 + $0x798] sm:$0xff]  ;;  %v805_v40 = vld [vmem:[#allocation5 + $0x760] sm:$0xff]  ;;  %v806_v29 = vld [vmem:[#allocation5 + $0x768] sm:$0xff]  ;;  %v3489_v7 = vsub.f32 %v287_v48, %v799_v1 }
  0xe4   :  { %v804_v39 = vld [vmem:[#allocation5 + $0x758] sm:$0xff]  ;;  %5548 = vst [vmem:[#allocation216_spill] sm:$0xff] %v3477_v27  ;;  %5549 = vst [vmem:[#allocation217_spill] sm:$0xff] %v3479_v45  ;;  %v5551_v26 = vld [vmem:[#allocation62_spill] sm:$0xff]  ;;  %v3497_v27 = vsub.f32 %v289_v28, %v801_v56  ;;  %v3511_v28 = vsub.f32 %v294_v38, %v806_v29 }
  0xe5   :  { %5550 = vst [vmem:[#allocation218_spill] sm:$0xff] %v3481_v18  ;;  %v3485_v23 = vmul.f32 %v5551_v26, %v5551_v26  ;;  %v301_v32 = vld [vmem:[#allocation2 + $0x7a0] sm:$0xff]  ;;  %v302_v34 = vld [vmem:[#allocation2 + $0x7a8] sm:$0xff]  ;;  %v303_v44 = vld [vmem:[#allocation2 + $0x7b0] sm:$0xff] }
  0xe6   :  { %v807_v11 = vld [vmem:[#allocation5 + $0x770] sm:$0xff]  ;;  %v808_v16 = vld [vmem:[#allocation5 + $0x778] sm:$0xff]  ;;  %v809_v57 = vld [vmem:[#allocation5 + $0x780] sm:$0xff]  ;;  %5553 = vst [vmem:[#allocation219_spill] sm:$0xff] %v3487_v2  ;;  %v3509_v2 = vsub.f32 %v293_v3, %v805_v40 }
  0xe7   :  { %5552 = vst [vmem:[#allocation62_spill] sm:$0xff] %v3485_v23  ;;  %5554 = vst [vmem:[#allocation220_spill] sm:$0xff] %v3489_v7  ;;  %v5556_v5 = vld [vmem:[#allocation63_spill] sm:$0xff]  ;;  %v304_v36 = vld [vmem:[#allocation2 + $0x7b8] sm:$0xff]  ;;  %v3499_v23 = vsub.f32 %v290_v51, %v802_v15  ;;  %v3507_v7 = vsub.f32 %v292_v19, %v804_v39  ;;  %v3521_v19 = vsub.f32 %v297_v46, %v809_v57 }
  0xe8   :  { %5555 = vst [vmem:[#allocation221_spill] sm:$0xff] %v3491_v21  ;;  %v3495_v31 = vmul.f32 %v5556_v5, %v5556_v5  ;;  %v305_v6 = vld [vmem:[#allocation2 + $0x7c0] sm:$0xff]  ;;  %v306_v13 = vld [vmem:[#allocation2 + $0x7c8] sm:$0xff]  ;;  %v811_v18 = vld [vmem:[#allocation5 + $0x790] sm:$0xff]  ;;  %v3535_v57 = vmul.f32 %v2987_v53, %v2987_v53 }
  0xe9   :  { %v810_v26 = vld [vmem:[#allocation5 + $0x788] sm:$0xff]  ;;  %v812_v45 = vld [vmem:[#allocation5 + $0x798] sm:$0xff]  ;;  %5557 = vst [vmem:[#allocation63_spill] sm:$0xff] %v3497_v27  ;;  %5558 = vst [vmem:[#allocation222_spill] sm:$0xff] %v3499_v23  ;;  %v3517_v27 = vsub.f32 %v295_v60, %v807_v11 }
  0xea   :  { %5559 = vst [vmem:[#allocation223_spill] sm:$0xff] %v3501_v43  ;;  %5560 = vst [vmem:[#allocation224_spill] sm:$0xff] %v3505_v25  ;;  %v307_v48 = vld [vmem:[#allocation2 + $0x7d0] sm:$0xff]  ;;  %v308_v59 = vld [vmem:[#allocation2 + $0x7d8] sm:$0xff]  ;;  %v3519_v25 = vsub.f32 %v296_v35, %v808_v16  ;;  %v3531_v60 = vsub.f32 %v300_v61, %v812_v45 }
  0xeb   :  { %v309_v1 = vld [vmem:[#allocation2 + $0x7e0] sm:$0xff]  ;;  %v814_v5 = vld [vmem:[#allocation5 + $0x7a8] sm:$0xff]  ;;  %v815_v21 = vld [vmem:[#allocation5 + $0x7b0] sm:$0xff]  ;;  %5561 = vst [vmem:[#allocation225_spill] sm:$0xff] %v3507_v7  ;;  %v3527_v7 = vsub.f32 %v298_v41, %v810_v26 }
  0xec   :  { %v813_v49 = vld [vmem:[#allocation5 + $0x7a0] sm:$0xff]  ;;  %5562 = vst [vmem:[#allocation226_spill] sm:$0xff] %v3509_v2  ;;  %5563 = vst [vmem:[#allocation227_spill] sm:$0xff] %v3511_v28  ;;  %v5564_v51 = vld [vmem:[#allocation65_spill] sm:$0xff]  ;;  %v3541_v41 = vsub.f32 %v303_v44, %v815_v21 }
  0xed   :  { %v3515_v9 = vmul.f32 %v5564_v51, %v5564_v51  ;;  %v310_v42 = vld [vmem:[#allocation2 + $0x7e8] sm:$0xff]  ;;  %v311_v15 = vld [vmem:[#allocation2 + $0x7f0] sm:$0xff]  ;;  %v312_v52 = vld [vmem:[#allocation2 + $0x7f8] sm:$0xff]  ;;  %5566 = vst [vmem:[#allocation228_spill] sm:$0xff] %v3517_v27  ;;  %v3539_v27 = vsub.f32 %v302_v34, %v814_v5 }
  0xee   :  { %v816_v56 = vld [vmem:[#allocation5 + $0x7b8] sm:$0xff]  ;;  %v817_v43 = vld [vmem:[#allocation5 + $0x7c0] sm:$0xff]  ;;  %v818_v23 = vld [vmem:[#allocation5 + $0x7c8] sm:$0xff]  ;;  %5567 = vst [vmem:[#allocation229_spill] sm:$0xff] %v3519_v25  ;;  %v3537_v25 = vsub.f32 %v301_v32, %v813_v49 }
  0xef   :  { %5565 = vst [vmem:[#allocation65_spill] sm:$0xff] %v3515_v9  ;;  %5568 = vst [vmem:[#allocation230_spill] sm:$0xff] %v3521_v19  ;;  %v5569_v3 = vld [vmem:[#allocation66_spill] sm:$0xff]  ;;  %v314_v39 = vld [vmem:[#allocation2 + $0x808] sm:$0xff]  ;;  %v3529_v9 = vsub.f32 %v299_v17, %v811_v18  ;;  %v3551_v32 = vsub.f32 %v306_v13, %v818_v23  ;;  %v3565_v23 = vmul.f32 %v2997_v54, %v2997_v54 }
  0xf0   :  { %v3525_v38 = vmul.f32 %v5569_v3, %v5569_v3  ;;  %v313_v29 = vld [vmem:[#allocation2 + $0x800] sm:$0xff]  ;;  %v315_v40 = vld [vmem:[#allocation2 + $0x810] sm:$0xff]  ;;  %v820_v28 = vld [vmem:[#allocation5 + $0x7d8] sm:$0xff]  ;;  %5570 = vst [vmem:[#allocation66_spill] sm:$0xff] %v3527_v7  ;;  %v3547_v7 = vsub.f32 %v304_v36, %v816_v56 }
  0xf1   :  { %v819_v51 = vld [vmem:[#allocation5 + $0x7d0] sm:$0xff]  ;;  %v821_v2 = vld [vmem:[#allocation5 + $0x7e0] sm:$0xff]  ;;  %5571 = vst [vmem:[#allocation231_spill] sm:$0xff] %v3529_v9  ;;  %5572 = vst [vmem:[#allocation232_spill] sm:$0xff] %v3531_v60 }
  0xf2   :  { %5573 = vst [vmem:[#allocation233_spill] sm:$0xff] %v3535_v57  ;;  %v316_v35 = vld [vmem:[#allocation2 + $0x818] sm:$0xff]  ;;  %v317_v46 = vld [vmem:[#allocation2 + $0x820] sm:$0xff]  ;;  %v318_v16 = vld [vmem:[#allocation2 + $0x828] sm:$0xff]  ;;  %v3549_v57 = vsub.f32 %v305_v6, %v817_v43  ;;  %v3561_v36 = vsub.f32 %v309_v1, %v821_v2 }
  0xf3   :  { %v822_v11 = vld [vmem:[#allocation5 + $0x7e8] sm:$0xff]  ;;  %v823_v3 = vld [vmem:[#allocation5 + $0x7f0] sm:$0xff]  ;;  %v824_v19 = vld [vmem:[#allocation5 + $0x7f8] sm:$0xff]  ;;  %5574 = vst [vmem:[#allocation234_spill] sm:$0xff] %v3537_v25  ;;  %v3557_v25 = vsub.f32 %v307_v48, %v819_v51 }
  0xf4   :  { %5575 = vst [vmem:[#allocation235_spill] sm:$0xff] %v3539_v27  ;;  %5576 = vst [vmem:[#allocation236_spill] sm:$0xff] %v3541_v41  ;;  %v5577_v17 = vld [vmem:[#allocation68_spill] sm:$0xff]  ;;  %v320_v18 = vld [vmem:[#allocation2 + $0x838] sm:$0xff]  ;;  %v3571_v48 = vsub.f32 %v312_v52, %v824_v19 }
  0xf5   :  { %v3545_v45 = vmul.f32 %v5577_v17, %v5577_v17  ;;  %v319_v61 = vld [vmem:[#allocation2 + $0x830] sm:$0xff]  ;;  %v321_v53 = vld [vmem:[#allocation2 + $0x840] sm:$0xff]  ;;  %v826_v60 = vld [vmem:[#allocation5 + $0x808] sm:$0xff]  ;;  %5579 = vst [vmem:[#allocation237_spill] sm:$0xff] %v3547_v7  ;;  %v3569_v7 = vsub.f32 %v311_v15, %v823_v3 }
  0xf6   :  { %v825_v26 = vld [vmem:[#allocation5 + $0x800] sm:$0xff]  ;;  %v827_v9 = vld [vmem:[#allocation5 + $0x810] sm:$0xff]  ;;  %5580 = vst [vmem:[#allocation238_spill] sm:$0xff] %v3549_v57  ;;  %5581 = vst [vmem:[#allocation239_spill] sm:$0xff] %v3551_v32  ;;  %v3567_v57 = vsub.f32 %v310_v42, %v822_v11 }
  0xf7   :  { %5578 = vst [vmem:[#allocation68_spill] sm:$0xff] %v3545_v45  ;;  %v5582_v34 = vld [vmem:[#allocation69_spill] sm:$0xff]  ;;  %v322_v21 = vld [vmem:[#allocation2 + $0x848] sm:$0xff]  ;;  %v323_v49 = vld [vmem:[#allocation2 + $0x850] sm:$0xff]  ;;  %v3559_v45 = vsub.f32 %v308_v59, %v820_v28  ;;  %v3581_v42 = vsub.f32 %v315_v40, %v827_v9  ;;  %v3595_v9 = vmul.f32 %v3007_v62, %v3007_v62 }
  0xf8   :  { %v3555_v44 = vmul.f32 %v5582_v34, %v5582_v34  ;;  %v324_v5 = vld [vmem:[#allocation2 + $0x858] sm:$0xff]  ;;  %v829_v41 = vld [vmem:[#allocation5 + $0x820] sm:$0xff]  ;;  %v830_v27 = vld [vmem:[#allocation5 + $0x828] sm:$0xff]  ;;  %5583 = vst [vmem:[#allocation69_spill] sm:$0xff] %v3557_v25  ;;  %v3577_v25 = vsub.f32 %v313_v29, %v825_v26 }
  0xf9   :  { %v828_v17 = vld [vmem:[#allocation5 + $0x818] sm:$0xff]  ;;  %5584 = vst [vmem:[#allocation240_spill] sm:$0xff] %v3559_v45  ;;  %5585 = vst [vmem:[#allocation241_spill] sm:$0xff] %v3561_v36  ;;  %v325_v6 = vld [vmem:[#allocation2 + $0x860] sm:$0xff]  ;;  %v3591_v29 = vsub.f32 %v318_v16, %v830_v27 }
  0xfa   :  { %5586 = vst [vmem:[#allocation242_spill] sm:$0xff] %v3565_v23  ;;  %v326_v13 = vld [vmem:[#allocation2 + $0x868] sm:$0xff]  ;;  %v327_v43 = vld [vmem:[#allocation2 + $0x870] sm:$0xff]  ;;  %v832_v34 = vld [vmem:[#allocation5 + $0x838] sm:$0xff]  ;;  %v3579_v23 = vsub.f32 %v314_v39, %v826_v60 }
  0xfb   :  { %v831_v56 = vld [vmem:[#allocation5 + $0x830] sm:$0xff]  ;;  %v833_v32 = vld [vmem:[#allocation5 + $0x840] sm:$0xff]  ;;  %5587 = vst [vmem:[#allocation243_spill] sm:$0xff] %v3567_v57  ;;  %5588 = vst [vmem:[#allocation244_spill] sm:$0xff] %v3569_v7  ;;  %v3587_v57 = vsub.f32 %v316_v35, %v828_v17 }
  0xfc   :  { %5589 = vst [vmem:[#allocation245_spill] sm:$0xff] %v3571_v48  ;;  %v5590_v59 = vld [vmem:[#allocation71_spill] sm:$0xff]  ;;  %v328_v1 = vld [vmem:[#allocation2 + $0x878] sm:$0xff]  ;;  %v329_v28 = vld [vmem:[#allocation2 + $0x880] sm:$0xff]  ;;  %v3601_v35 = vsub.f32 %v321_v53, %v833_v32 }
  0xfd   :  { %v3575_v2 = vmul.f32 %v5590_v59, %v5590_v59  ;;  %v330_v54 = vld [vmem:[#allocation2 + $0x888] sm:$0xff]  ;;  %v835_v36 = vld [vmem:[#allocation5 + $0x850] sm:$0xff]  ;;  %v836_v45 = vld [vmem:[#allocation5 + $0x858] sm:$0xff]  ;;  %5592 = vst [vmem:[#allocation246_spill] sm:$0xff] %v3577_v25  ;;  %v3599_v25 = vsub.f32 %v320_v18, %v832_v34 }
  0xfe   :  { %v834_v51 = vld [vmem:[#allocation5 + $0x848] sm:$0xff]  ;;  %5593 = vst [vmem:[#allocation247_spill] sm:$0xff] %v3579_v23  ;;  %5594 = vst [vmem:[#allocation248_spill] sm:$0xff] %v3581_v42  ;;  %v5595_v15 = vld [vmem:[#allocation72_spill] sm:$0xff]  ;;  %v3597_v23 = vsub.f32 %v319_v61, %v831_v56  ;;  %v3611_v61 = vsub.f32 %v324_v5, %v836_v45  ;;  %v3625_v45 = vmul.f32 %v3017_v63, %v3017_v63 }
  0xff   :  { %5591 = vst [vmem:[#allocation71_spill] sm:$0xff] %v3575_v2  ;;  %v3585_v52 = vmul.f32 %v5595_v15, %v5595_v15  ;;  %v331_v19 = vld [vmem:[#allocation2 + $0x890] sm:$0xff]  ;;  %v332_v11 = vld [vmem:[#allocation2 + $0x898] sm:$0xff]  ;;  %v333_v3 = vld [vmem:[#allocation2 + $0x8a0] sm:$0xff]  ;;  %v3589_v2 = vsub.f32 %v317_v46, %v829_v41 }
 0x100   :  { %v837_v59 = vld [vmem:[#allocation5 + $0x860] sm:$0xff]  ;;  %v838_v48 = vld [vmem:[#allocation5 + $0x868] sm:$0xff]  ;;  %v839_v7 = vld [vmem:[#allocation5 + $0x870] sm:$0xff]  ;;  %5596 = vst [vmem:[#allocation72_spill] sm:$0xff] %v3587_v57  ;;  %v3607_v57 = vsub.f32 %v322_v21, %v834_v51 }
 0x101   :  { %5597 = vst [vmem:[#allocation249_spill] sm:$0xff] %v3589_v2  ;;  %5598 = vst [vmem:[#allocation250_spill] sm:$0xff] %v3591_v29  ;;  %v334_v39 = vld [vmem:[#allocation2 + $0x8a8] sm:$0xff]  ;;  %v335_v40 = vld [vmem:[#allocation2 + $0x8b0] sm:$0xff]  ;;  %v3621_v21 = vsub.f32 %v327_v43, %v839_v7 }
 0x102   :  { %5599 = vst [vmem:[#allocation251_spill] sm:$0xff] %v3595_v9  ;;  %v336_v60 = vld [vmem:[#allocation2 + $0x8b8] sm:$0xff]  ;;  %v841_v15 = vld [vmem:[#allocation5 + $0x880] sm:$0xff]  ;;  %v842_v42 = vld [vmem:[#allocation5 + $0x888] sm:$0xff]  ;;  %v3609_v9 = vsub.f32 %v323_v49, %v835_v36 }
 0x103   :  { %v840_v26 = vld [vmem:[#allocation5 + $0x878] sm:$0xff]  ;;  %5600 = vst [vmem:[#allocation252_spill] sm:$0xff] %v3597_v23  ;;  %5601 = vst [vmem:[#allocation253_spill] sm:$0xff] %v3599_v25  ;;  %v5603_v46 = vld [vmem:[#allocation74_spill] sm:$0xff]  ;;  %v3617_v23 = vsub.f32 %v325_v6, %v837_v59  ;;  %v3631_v6 = vsub.f32 %v330_v54, %v842_v42 }
 0x104   :  { %5602 = vst [vmem:[#allocation254_spill] sm:$0xff] %v3601_v35  ;;  %v3605_v27 = vmul.f32 %v5603_v46, %v5603_v46  ;;  %v337_v16 = vld [vmem:[#allocation2 + $0x8c0] sm:$0xff]  ;;  %v338_v41 = vld [vmem:[#allocation2 + $0x8c8] sm:$0xff]  ;;  %v339_v62 = vld [vmem:[#allocation2 + $0x8d0] sm:$0xff] }
 0x105   :  { %v843_v17 = vld [vmem:[#allocation5 + $0x890] sm:$0xff]  ;;  %v844_v29 = vld [vmem:[#allocation5 + $0x898] sm:$0xff]  ;;  %v845_v2 = vld [vmem:[#allocation5 + $0x8a0] sm:$0xff]  ;;  %5605 = vst [vmem:[#allocation255_spill] sm:$0xff] %v3607_v57  ;;  %v3629_v57 = vsub.f32 %v329_v28, %v841_v15 }
 0x106   :  { %5604 = vst [vmem:[#allocation74_spill] sm:$0xff] %v3605_v27  ;;  %5606 = vst [vmem:[#allocation256_spill] sm:$0xff] %v3609_v9  ;;  %v5608_v18 = vld [vmem:[#allocation75_spill] sm:$0xff]  ;;  %v340_v32 = vld [vmem:[#allocation2 + $0x8d8] sm:$0xff]  ;;  %v3619_v27 = vsub.f32 %v326_v13, %v838_v48  ;;  %v3627_v9 = vsub.f32 %v328_v1, %v840_v26  ;;  %v3641_v1 = vsub.f32 %v333_v3, %v845_v2 }
 0x107   :  { %5607 = vst [vmem:[#allocation257_spill] sm:$0xff] %v3611_v61  ;;  %v3615_v53 = vmul.f32 %v5608_v18, %v5608_v18  ;;  %v341_v56 = vld [vmem:[#allocation2 + $0x8e0] sm:$0xff]  ;;  %v342_v34 = vld [vmem:[#allocation2 + $0x8e8] sm:$0xff]  ;;  %v847_v35 = vld [vmem:[#allocation5 + $0x8b0] sm:$0xff]  ;;  %v3655_v2 = vmul.f32 %v3027_v0, %v3027_v0 }
 0x108   :  { %v846_v46 = vld [vmem:[#allocation5 + $0x8a8] sm:$0xff]  ;;  %v848_v25 = vld [vmem:[#allocation5 + $0x8b8] sm:$0xff]  ;;  %5609 = vst [vmem:[#allocation75_spill] sm:$0xff] %v3617_v23  ;;  %5610 = vst [vmem:[#allocation258_spill] sm:$0xff] %v3619_v27  ;;  %v3637_v23 = vsub.f32 %v331_v19, %v843_v17 }
 0x109   :  { %5611 = vst [vmem:[#allocation259_spill] sm:$0xff] %v3621_v21  ;;  %5612 = vst [vmem:[#allocation260_spill] sm:$0xff] %v3625_v45  ;;  %v343_v49 = vld [vmem:[#allocation2 + $0x8f0] sm:$0xff]  ;;  %v344_v5 = vld [vmem:[#allocation2 + $0x8f8] sm:$0xff]  ;;  %v3639_v45 = vsub.f32 %v332_v11, %v844_v29  ;;  %v3651_v19 = vsub.f32 %v336_v60, %v848_v25 }
 0x10a   :  { %v345_v36 = vld [vmem:[#allocation2 + $0x900] sm:$0xff]  ;;  %v850_v18 = vld [vmem:[#allocation5 + $0x8c8] sm:$0xff]  ;;  %v851_v61 = vld [vmem:[#allocation5 + $0x8d0] sm:$0xff]  ;;  %5613 = vst [vmem:[#allocation261_spill] sm:$0xff] %v3627_v9  ;;  %v3647_v9 = vsub.f32 %v334_v39, %v846_v46 }
 0x10b   :  { %v849_v51 = vld [vmem:[#allocation5 + $0x8c0] sm:$0xff]  ;;  %5614 = vst [vmem:[#allocation262_spill] sm:$0xff] %v3629_v57  ;;  %5615 = vst [vmem:[#allocation263_spill] sm:$0xff] %v3631_v6  ;;  %v5616_v13 = vld [vmem:[#allocation77_spill] sm:$0xff]  ;;  %v3661_v39 = vsub.f32 %v339_v62, %v851_v61 }
 0x10c   :  { %v3635_v7 = vmul.f32 %v5616_v13, %v5616_v13  ;;  %v346_v43 = vld [vmem:[#allocation2 + $0x908] sm:$0xff]  ;;  %v347_v48 = vld [vmem:[#allocation2 + $0x910] sm:$0xff]  ;;  %v348_v63 = vld [vmem:[#allocation2 + $0x918] sm:$0xff]  ;;  %5618 = vst [vmem:[#allocation264_spill] sm:$0xff] %v3637_v23  ;;  %v3659_v23 = vsub.f32 %v338_v41, %v850_v18 }
 0x10d   :  { %v852_v59 = vld [vmem:[#allocation5 + $0x8d8] sm:$0xff]  ;;  %v853_v21 = vld [vmem:[#allocation5 + $0x8e0] sm:$0xff]  ;;  %v854_v27 = vld [vmem:[#allocation5 + $0x8e8] sm:$0xff]  ;;  %5619 = vst [vmem:[#allocation265_spill] sm:$0xff] %v3639_v45  ;;  %v3657_v45 = vsub.f32 %v337_v16, %v849_v51 }
 0x10e   :  { %5617 = vst [vmem:[#allocation77_spill] sm:$0xff] %v3635_v7  ;;  %5620 = vst [vmem:[#allocation266_spill] sm:$0xff] %v3641_v1  ;;  %v5621_v28 = vld [vmem:[#allocation78_spill] sm:$0xff]  ;;  %v350_v26 = vld [vmem:[#allocation2 + $0x928] sm:$0xff]  ;;  %v3649_v7 = vsub.f32 %v335_v40, %v847_v35  ;;  %v3671_v16 = vsub.f32 %v342_v34, %v854_v27  ;;  %v3685_v27 = vmul.f32 %v3037_v8, %v3037_v8 }
 0x10f   :  { %v3645_v54 = vmul.f32 %v5621_v28, %v5621_v28  ;;  %v349_v42 = vld [vmem:[#allocation2 + $0x920] sm:$0xff]  ;;  %v351_v15 = vld [vmem:[#allocation2 + $0x930] sm:$0xff]  ;;  %v856_v6 = vld [vmem:[#allocation5 + $0x8f8] sm:$0xff]  ;;  %5622 = vst [vmem:[#allocation78_spill] sm:$0xff] %v3647_v9  ;;  %v3667_v9 = vsub.f32 %v340_v32, %v852_v59 }
 0x110   :  { %v855_v13 = vld [vmem:[#allocation5 + $0x8f0] sm:$0xff]  ;;  %v857_v57 = vld [vmem:[#allocation5 + $0x900] sm:$0xff]  ;;  %5623 = vst [vmem:[#allocation267_spill] sm:$0xff] %v3649_v7  ;;  %5624 = vst [vmem:[#allocation268_spill] sm:$0xff] %v3651_v19 }
 0x111   :  { %5625 = vst [vmem:[#allocation269_spill] sm:$0xff] %v3655_v2  ;;  %v352_v11 = vld [vmem:[#allocation2 + $0x938] sm:$0xff]  ;;  %v353_v3 = vld [vmem:[#allocation2 + $0x940] sm:$0xff]  ;;  %v354_v29 = vld [vmem:[#allocation2 + $0x948] sm:$0xff]  ;;  %v3669_v2 = vsub.f32 %v341_v56, %v853_v21  ;;  %v3681_v32 = vsub.f32 %v345_v36, %v857_v57 }
 0x112   :  { %v858_v17 = vld [vmem:[#allocation5 + $0x908] sm:$0xff]  ;;  %v859_v28 = vld [vmem:[#allocation5 + $0x910] sm:$0xff]  ;;  %v860_v1 = vld [vmem:[#allocation5 + $0x918] sm:$0xff]  ;;  %5626 = vst [vmem:[#allocation270_spill] sm:$0xff] %v3657_v45  ;;  %v3677_v45 = vsub.f32 %v343_v49, %v855_v13 }
 0x113   :  { %5627 = vst [vmem:[#allocation271_spill] sm:$0xff] %v3659_v23  ;;  %5628 = vst [vmem:[#allocation272_spill] sm:$0xff] %v3661_v39  ;;  %v5629_v40 = vld [vmem:[#allocation80_spill] sm:$0xff]  ;;  %v356_v35 = vld [vmem:[#allocation2 + $0x958] sm:$0xff]  ;;  %v3691_v49 = vsub.f32 %v348_v63, %v860_v1 }
 0x114   :  { %v3665_v25 = vmul.f32 %v5629_v40, %v5629_v40  ;;  %v355_v60 = vld [vmem:[#allocation2 + $0x950] sm:$0xff]  ;;  %v357_v0 = vld [vmem:[#allocation2 + $0x960] sm:$0xff]  ;;  %v862_v19 = vld [vmem:[#allocation5 + $0x928] sm:$0xff]  ;;  %5631 = vst [vmem:[#allocation273_spill] sm:$0xff] %v3667_v9  ;;  %v3689_v9 = vsub.f32 %v347_v48, %v859_v28 }
 0x115   :  { %v861_v46 = vld [vmem:[#allocation5 + $0x920] sm:$0xff]  ;;  %v863_v7 = vld [vmem:[#allocation5 + $0x930] sm:$0xff]  ;;  %5632 = vst [vmem:[#allocation274_spill] sm:$0xff] %v3669_v2  ;;  %5633 = vst [vmem:[#allocation275_spill] sm:$0xff] %v3671_v16  ;;  %v3687_v2 = vsub.f32 %v346_v43, %v858_v17 }
 0x116   :  { %5630 = vst [vmem:[#allocation80_spill] sm:$0xff] %v3665_v25  ;;  %v5634_v41 = vld [vmem:[#allocation81_spill] sm:$0xff]  ;;  %v358_v61 = vld [vmem:[#allocation2 + $0x968] sm:$0xff]  ;;  %v359_v51 = vld [vmem:[#allocation2 + $0x970] sm:$0xff]  ;;  %v3679_v25 = vsub.f32 %v344_v5, %v856_v6  ;;  %v3701_v43 = vsub.f32 %v351_v15, %v863_v7 }
 0x117   :  { %v3675_v62 = vmul.f32 %v5634_v41, %v5634_v41  ;;  %v360_v18 = vld [vmem:[#allocation2 + $0x978] sm:$0xff]  ;;  %v865_v39 = vld [vmem:[#allocation5 + $0x940] sm:$0xff]  ;;  %v866_v23 = vld [vmem:[#allocation5 + $0x948] sm:$0xff]  ;;  %5635 = vst [vmem:[#allocation81_spill] sm:$0xff] %v3677_v45  ;;  %v3697_v45 = vsub.f32 %v349_v42, %v861_v46 }
 0x118   :  { %v864_v40 = vld [vmem:[#allocation5 + $0x938] sm:$0xff]  ;;  %5636 = vst [vmem:[#allocation276_spill] sm:$0xff] %v3679_v25  ;;  %5637 = vst [vmem:[#allocation277_spill] sm:$0xff] %v3681_v32  ;;  %v361_v56 = vld [vmem:[#allocation2 + $0x980] sm:$0xff]  ;;  %v3711_v42 = vsub.f32 %v354_v29, %v866_v23 }
 0x119   :  { %5638 = vst [vmem:[#allocation278_spill] sm:$0xff] %v3685_v27  ;;  %v362_v34 = vld [vmem:[#allocation2 + $0x988] sm:$0xff]  ;;  %v363_v21 = vld [vmem:[#allocation2 + $0x990] sm:$0xff]  ;;  %v868_v41 = vld [vmem:[#allocation5 + $0x958] sm:$0xff]  ;;  %v3699_v27 = vsub.f32 %v350_v26, %v862_v19 }
 0x11a   :  { %v867_v59 = vld [vmem:[#allocation5 + $0x950] sm:$0xff]  ;;  %v869_v16 = vld [vmem:[#allocation5 + $0x960] sm:$0xff]  ;;  %5639 = vst [vmem:[#allocation279_spill] sm:$0xff] %v3687_v2  ;;  %5640 = vst [vmem:[#allocation280_spill] sm:$0xff] %v3689_v9  ;;  %v3707_v2 = vsub.f32 %v352_v11, %v864_v40 }
 0x11b   :  { %5641 = vst [vmem:[#allocation281_spill] sm:$0xff] %v3691_v49  ;;  %v5642_v5 = vld [vmem:[#allocation83_spill] sm:$0xff]  ;;  %v364_v36 = vld [vmem:[#allocation2 + $0x998] sm:$0xff]  ;;  %v365_v6 = vld [vmem:[#allocation2 + $0x9a0] sm:$0xff]  ;;  %v3721_v11 = vsub.f32 %v357_v0, %v869_v16 }
 0x11c   :  { %v3695_v57 = vmul.f32 %v5642_v5, %v5642_v5  ;;  %v366_v8 = vld [vmem:[#allocation2 + $0x9a8] sm:$0xff]  ;;  %v871_v32 = vld [vmem:[#allocation5 + $0x970] sm:$0xff]  ;;  %v872_v25 = vld [vmem:[#allocation5 + $0x978] sm:$0xff]  ;;  %5644 = vst [vmem:[#allocation282_spill] sm:$0xff] %v3697_v45  ;;  %v3717_v45 = vsub.f32 %v355_v60, %v867_v59 }
 0x11d   :  { %v870_v13 = vld [vmem:[#allocation5 + $0x968] sm:$0xff]  ;;  %5645 = vst [vmem:[#allocation283_spill] sm:$0xff] %v3699_v27  ;;  %5646 = vst [vmem:[#allocation284_spill] sm:$0xff] %v3701_v43  ;;  %v5647_v48 = vld [vmem:[#allocation84_spill] sm:$0xff]  ;;  %v3731_v60 = vsub.f32 %v360_v18, %v872_v25 }
 0x11e   :  { %5643 = vst [vmem:[#allocation83_spill] sm:$0xff] %v3695_v57  ;;  %v3705_v63 = vmul.f32 %v5647_v48, %v5647_v48  ;;  %v367_v1 = vld [vmem:[#allocation2 + $0x9b0] sm:$0xff]  ;;  %v368_v17 = vld [vmem:[#allocation2 + $0x9b8] sm:$0xff]  ;;  %v369_v28 = vld [vmem:[#allocation2 + $0x9c0] sm:$0xff]  ;;  %v3709_v57 = vsub.f32 %v353_v3, %v865_v39 }
 0x11f   :  { %v873_v5 = vld [vmem:[#allocation5 + $0x980] sm:$0xff]  ;;  %v874_v49 = vld [vmem:[#allocation5 + $0x988] sm:$0xff]  ;;  %v875_v9 = vld [vmem:[#allocation5 + $0x990] sm:$0xff]  ;;  %5649 = vst [vmem:[#allocation285_spill] sm:$0xff] %v3707_v2  ;;  %v3727_v2 = vsub.f32 %v358_v61, %v870_v13 }
 0x120   :  { %5648 = vst [vmem:[#allocation84_spill] sm:$0xff] %v3705_v63  ;;  %5650 = vst [vmem:[#allocation286_spill] sm:$0xff] %v3709_v57  ;;  %v5652_v26 = vld [vmem:[#allocation86_spill] sm:$0xff]  ;;  %v370_v15 = vld [vmem:[#allocation2 + $0x9c8] sm:$0xff]  ;;  %v3719_v63 = vsub.f32 %v356_v35, %v868_v41  ;;  %v3741_v61 = vsub.f32 %v363_v21, %v875_v9 }
 0x121   :  { %5651 = vst [vmem:[#allocation287_spill] sm:$0xff] %v3711_v42  ;;  %v3715_v7 = vmul.f32 %v5652_v26, %v5652_v26  ;;  %v371_v19 = vld [vmem:[#allocation2 + $0x9d0] sm:$0xff]  ;;  %v372_v46 = vld [vmem:[#allocation2 + $0x9d8] sm:$0xff]  ;;  %v877_v43 = vld [vmem:[#allocation5 + $0x9a0] sm:$0xff] }
 0x122   :  { %v876_v48 = vld [vmem:[#allocation5 + $0x998] sm:$0xff]  ;;  %v878_v27 = vld [vmem:[#allocation5 + $0x9a8] sm:$0xff]  ;;  %5654 = vst [vmem:[#allocation288_spill] sm:$0xff] %v3717_v45  ;;  %5655 = vst [vmem:[#allocation289_spill] sm:$0xff] %v3719_v63  ;;  %v3737_v45 = vsub.f32 %v361_v56, %v873_v5 }
 0x123   :  { %5653 = vst [vmem:[#allocation86_spill] sm:$0xff] %v3715_v7  ;;  %5656 = vst [vmem:[#allocation290_spill] sm:$0xff] %v3721_v11  ;;  %v5657_v3 = vld [vmem:[#allocation87_spill] sm:$0xff]  ;;  %v373_v29 = vld [vmem:[#allocation2 + $0x9e0] sm:$0xff]  ;;  %v3729_v7 = vsub.f32 %v359_v51, %v871_v32  ;;  %v3751_v56 = vsub.f32 %v366_v8, %v878_v27 }
 0x124   :  { %v3725_v23 = vmul.f32 %v5657_v3, %v5657_v3  ;;  %v374_v39 = vld [vmem:[#allocation2 + $0x9e8] sm:$0xff]  ;;  %v375_v40 = vld [vmem:[#allocation2 + $0x9f0] sm:$0xff]  ;;  %v880_v42 = vld [vmem:[#allocation5 + $0x9b8] sm:$0xff]  ;;  %5659 = vst [vmem:[#allocation291_spill] sm:$0xff] %v3727_v2  ;;  %v3747_v2 = vsub.f32 %v364_v36, %v876_v48 }
 0x125   :  { %v879_v26 = vld [vmem:[#allocation5 + $0x9b0] sm:$0xff]  ;;  %v881_v57 = vld [vmem:[#allocation5 + $0x9c0] sm:$0xff]  ;;  %5660 = vst [vmem:[#allocation292_spill] sm:$0xff] %v3729_v7  ;;  %5661 = vst [vmem:[#allocation293_spill] sm:$0xff] %v3731_v60 }
 0x126   :  { %5658 = vst [vmem:[#allocation87_spill] sm:$0xff] %v3725_v23  ;;  %v5662_v35 = vld [vmem:[#allocation88_spill] sm:$0xff]  ;;  %v376_v16 = vld [vmem:[#allocation2 + $0x9f8] sm:$0xff]  ;;  %v377_v59 = vld [vmem:[#allocation2 + $0xa00] sm:$0xff]  ;;  %v3739_v23 = vsub.f32 %v362_v34, %v874_v49  ;;  %v3761_v36 = vsub.f32 %v369_v28, %v881_v57  ;;  %v3775_v57 = vmul.f32 %v3067_v55, %v3067_v55 }
 0x127   :  { %v3735_v0 = vmul.f32 %v5662_v35, %v5662_v35  ;;  %v378_v41 = vld [vmem:[#allocation2 + $0xa08] sm:$0xff]  ;;  %v883_v11 = vld [vmem:[#allocation5 + $0x9d0] sm:$0xff]  ;;  %v884_v63 = vld [vmem:[#allocation5 + $0x9d8] sm:$0xff]  ;;  %5664 = vst [vmem:[#allocation294_spill] sm:$0xff] %v3737_v45  ;;  %v3757_v45 = vsub.f32 %v367_v1, %v879_v26 }
 0x128   :  { %v882_v3 = vld [vmem:[#allocation5 + $0x9c8] sm:$0xff]  ;;  %5665 = vst [vmem:[#allocation295_spill] sm:$0xff] %v3739_v23  ;;  %5666 = vst [vmem:[#allocation296_spill] sm:$0xff] %v3741_v61  ;;  %v5667_v51 = vld [vmem:[#allocation90_spill] sm:$0xff]  ;;  %v3771_v1 = vsub.f32 %v372_v46, %v884_v63 }
 0x129   :  { %5663 = vst [vmem:[#allocation88_spill] sm:$0xff] %v3735_v0  ;;  %v3745_v25 = vmul.f32 %v5667_v51, %v5667_v51  ;;  %v379_v18 = vld [vmem:[#allocation2 + $0xa10] sm:$0xff]  ;;  %v380_v32 = vld [vmem:[#allocation2 + $0xa18] sm:$0xff]  ;;  %v381_v13 = vld [vmem:[#allocation2 + $0xa20] sm:$0xff]  ;;  %v3749_v0 = vsub.f32 %v365_v6, %v877_v43 }
 0x12a   :  { %v885_v35 = vld [vmem:[#allocation5 + $0x9e0] sm:$0xff]  ;;  %v886_v60 = vld [vmem:[#allocation5 + $0x9e8] sm:$0xff]  ;;  %v887_v7 = vld [vmem:[#allocation5 + $0x9f0] sm:$0xff]  ;;  %5669 = vst [vmem:[#allocation297_spill] sm:$0xff] %v3747_v2  ;;  %v3767_v2 = vsub.f32 %v370_v15, %v882_v3 }
 0x12b   :  { %5668 = vst [vmem:[#allocation90_spill] sm:$0xff] %v3745_v25  ;;  %5670 = vst [vmem:[#allocation298_spill] sm:$0xff] %v3749_v0  ;;  %v5672_v34 = vld [vmem:[#allocation91_spill] sm:$0xff]  ;;  %v383_v49 = vld [vmem:[#allocation2 + $0xa30] sm:$0xff]  ;;  %v3759_v25 = vsub.f32 %v368_v17, %v880_v42  ;;  %v3781_v15 = vsub.f32 %v375_v40, %v887_v7 }
 0x12c   :  { %5671 = vst [vmem:[#allocation299_spill] sm:$0xff] %v3751_v56  ;;  %v3755_v9 = vmul.f32 %v5672_v34, %v5672_v34  ;;  %v382_v21 = vld [vmem:[#allocation2 + $0xa28] sm:$0xff]  ;;  %v384_v5 = vld [vmem:[#allocation2 + $0xa38] sm:$0xff]  ;;  %v889_v61 = vld [vmem:[#allocation5 + $0xa00] sm:$0xff] }
 0x12d   :  { %v888_v51 = vld [vmem:[#allocation5 + $0x9f8] sm:$0xff]  ;;  %v890_v23 = vld [vmem:[#allocation5 + $0xa08] sm:$0xff]  ;;  %5674 = vst [vmem:[#allocation300_spill] sm:$0xff] %v3757_v45  ;;  %5675 = vst [vmem:[#allocation301_spill] sm:$0xff] %v3759_v25  ;;  %v3777_v25 = vsub.f32 %v373_v29, %v885_v35  ;;  %v3779_v45 = vsub.f32 %v374_v39, %v886_v60 }
 0x12e   :  { %5673 = vst [vmem:[#allocation91_spill] sm:$0xff] %v3755_v9  ;;  %5676 = vst [vmem:[#allocation302_spill] sm:$0xff] %v3761_v36  ;;  %v5677_v6 = vld [vmem:[#allocation92_spill] sm:$0xff]  ;;  %v385_v8 = vld [vmem:[#allocation2 + $0xa40] sm:$0xff]  ;;  %v3769_v9 = vsub.f32 %v371_v19, %v883_v11  ;;  %v3791_v29 = vsub.f32 %v378_v41, %v890_v23 }
 0x12f   :  { %v3765_v27 = vmul.f32 %v5677_v6, %v5677_v6  ;;  %v386_v43 = vld [vmem:[#allocation2 + $0xa48] sm:$0xff]  ;;  %v387_v48 = vld [vmem:[#allocation2 + $0xa50] sm:$0xff]  ;;  %v892_v56 = vld [vmem:[#allocation5 + $0xa18] sm:$0xff]  ;;  %5678 = vst [vmem:[#allocation92_spill] sm:$0xff] %v3767_v2  ;;  %v3787_v2 = vsub.f32 %v376_v16, %v888_v51 }
 0x130   :  { %v891_v34 = vld [vmem:[#allocation5 + $0xa10] sm:$0xff]  ;;  %v893_v0 = vld [vmem:[#allocation5 + $0xa20] sm:$0xff]  ;;  %5679 = vst [vmem:[#allocation303_spill] sm:$0xff] %v3769_v9  ;;  %5680 = vst [vmem:[#allocation304_spill] sm:$0xff] %v3771_v1 }
 0x131   :  { %5681 = vst [vmem:[#allocation305_spill] sm:$0xff] %v3775_v57  ;;  %v388_v17 = vld [vmem:[#allocation2 + $0xa58] sm:$0xff]  ;;  %v389_v28 = vld [vmem:[#allocation2 + $0xa60] sm:$0xff]  ;;  %v390_v42 = vld [vmem:[#allocation2 + $0xa68] sm:$0xff]  ;;  %v3789_v57 = vsub.f32 %v377_v59, %v889_v61  ;;  %v3801_v16 = vsub.f32 %v381_v13, %v893_v0 }
 0x132   :  { %v894_v26 = vld [vmem:[#allocation5 + $0xa28] sm:$0xff]  ;;  %v895_v6 = vld [vmem:[#allocation5 + $0xa30] sm:$0xff]  ;;  %v896_v36 = vld [vmem:[#allocation5 + $0xa38] sm:$0xff]  ;;  %5682 = vst [vmem:[#allocation306_spill] sm:$0xff] %v3777_v25  ;;  %v3797_v25 = vsub.f32 %v379_v18, %v891_v34 }
 0x133   :  { %5683 = vst [vmem:[#allocation307_spill] sm:$0xff] %v3779_v45  ;;  %5684 = vst [vmem:[#allocation308_spill] sm:$0xff] %v3781_v15  ;;  %v5685_v19 = vld [vmem:[#allocation93_spill] sm:$0xff]  ;;  %v391_v46 = vld [vmem:[#allocation2 + $0xa70] sm:$0xff]  ;;  %v3811_v18 = vsub.f32 %v384_v5, %v896_v36 }
 0x134   :  { %v3785_v63 = vmul.f32 %v5685_v19, %v5685_v19  ;;  %v392_v11 = vld [vmem:[#allocation2 + $0xa78] sm:$0xff]  ;;  %v393_v55 = vld [vmem:[#allocation2 + $0xa80] sm:$0xff]  ;;  %v898_v1 = vld [vmem:[#allocation5 + $0xa48] sm:$0xff]  ;;  %5687 = vst [vmem:[#allocation309_spill] sm:$0xff] %v3787_v2  ;;  %v3807_v2 = vsub.f32 %v382_v21, %v894_v26 }
 0x135   :  { %v897_v3 = vld [vmem:[#allocation5 + $0xa40] sm:$0xff]  ;;  %v899_v9 = vld [vmem:[#allocation5 + $0xa50] sm:$0xff]  ;;  %5688 = vst [vmem:[#allocation310_spill] sm:$0xff] %v3789_v57  ;;  %5689 = vst [vmem:[#allocation311_spill] sm:$0xff] %v3791_v29 }
 0x136   :  { %5686 = vst [vmem:[#allocation93_spill] sm:$0xff] %v3785_v63  ;;  %v5690_v39 = vld [vmem:[#allocation94_spill] sm:$0xff]  ;;  %v394_v40 = vld [vmem:[#allocation2 + $0xa88] sm:$0xff]  ;;  %v395_v60 = vld [vmem:[#allocation2 + $0xa90] sm:$0xff]  ;;  %v3799_v63 = vsub.f32 %v380_v32, %v892_v56  ;;  %v3821_v21 = vsub.f32 %v387_v48, %v899_v9 }
 0x137   :  { %v3795_v7 = vmul.f32 %v5690_v39, %v5690_v39  ;;  %v396_v35 = vld [vmem:[#allocation2 + $0xa98] sm:$0xff]  ;;  %v901_v15 = vld [vmem:[#allocation5 + $0xa60] sm:$0xff]  ;;  %v902_v45 = vld [vmem:[#allocation5 + $0xa68] sm:$0xff]  ;;  %5692 = vst [vmem:[#allocation312_spill] sm:$0xff] %v3797_v25  ;;  %v3817_v25 = vsub.f32 %v385_v8, %v897_v3 }
 0x138   :  { %v900_v19 = vld [vmem:[#allocation5 + $0xa58] sm:$0xff]  ;;  %5693 = vst [vmem:[#allocation313_spill] sm:$0xff] %v3799_v63  ;;  %5694 = vst [vmem:[#allocation314_spill] sm:$0xff] %v3801_v16  ;;  %v5695_v59 = vld [vmem:[#allocation95_spill] sm:$0xff]  ;;  %v3831_v8 = vsub.f32 %v390_v42, %v902_v45 }
 0x139   :  { %5691 = vst [vmem:[#allocation94_spill] sm:$0xff] %v3795_v7  ;;  %v3805_v23 = vmul.f32 %v5695_v59, %v5695_v59  ;;  %v397_v41 = vld [vmem:[#allocation2 + $0xaa0] sm:$0xff]  ;;  %v398_v61 = vld [vmem:[#allocation2 + $0xaa8] sm:$0xff]  ;;  %v399_v51 = vld [vmem:[#allocation2 + $0xab0] sm:$0xff]  ;;  %v3809_v7 = vsub.f32 %v383_v49, %v895_v6 }
 0x13a   :  { %v903_v39 = vld [vmem:[#allocation5 + $0xa70] sm:$0xff]  ;;  %v904_v29 = vld [vmem:[#allocation5 + $0xa78] sm:$0xff]  ;;  %v905_v57 = vld [vmem:[#allocation5 + $0xa80] sm:$0xff]  ;;  %5697 = vst [vmem:[#allocation315_spill] sm:$0xff] %v3807_v2  ;;  %v3827_v2 = vsub.f32 %v388_v17, %v900_v19 }
 0x13b   :  { %5696 = vst [vmem:[#allocation95_spill] sm:$0xff] %v3805_v23  ;;  %5698 = vst [vmem:[#allocation316_spill] sm:$0xff] %v3809_v7  ;;  %v5700_v32 = vld [vmem:[#allocation96_spill] sm:$0xff]  ;;  %v400_v13 = vld [vmem:[#allocation2 + $0xab8] sm:$0xff]  ;;  %v3819_v23 = vsub.f32 %v386_v43, %v898_v1  ;;  %v3841_v17 = vsub.f32 %v393_v55, %v905_v57 }
 0x13c   :  { %5699 = vst [vmem:[#allocation317_spill] sm:$0xff] %v3811_v18  ;;  %v3815_v0 = vmul.f32 %v5700_v32, %v5700_v32  ;;  %v401_v56 = vld [vmem:[#allocation2 + $0xac0] sm:$0xff]  ;;  %v402_v34 = vld [vmem:[#allocation2 + $0xac8] sm:$0xff]  ;;  %v907_v16 = vld [vmem:[#allocation5 + $0xa90] sm:$0xff] }
 0x13d   :  { %v906_v59 = vld [vmem:[#allocation5 + $0xa88] sm:$0xff]  ;;  %v908_v63 = vld [vmem:[#allocation5 + $0xa98] sm:$0xff]  ;;  %5702 = vst [vmem:[#allocation318_spill] sm:$0xff] %v3817_v25  ;;  %5703 = vst [vmem:[#allocation319_spill] sm:$0xff] %v3819_v23  ;;  %v3837_v25 = vsub.f32 %v391_v46, %v903_v39 }
 0x13e   :  { %5701 = vst [vmem:[#allocation96_spill] sm:$0xff] %v3815_v0  ;;  %5704 = vst [vmem:[#allocation320_spill] sm:$0xff] %v3821_v21  ;;  %v5705_v49 = vld [vmem:[#allocation97_spill] sm:$0xff]  ;;  %v403_v36 = vld [vmem:[#allocation2 + $0xad0] sm:$0xff]  ;;  %v3829_v0 = vsub.f32 %v389_v28, %v901_v15  ;;  %v3851_v46 = vsub.f32 %v396_v35, %v908_v63  ;;  %v3865_v63 = vmul.f32 %v3097_v10, %v3097_v10 }
 0x13f   :  { %v3825_v5 = vmul.f32 %v5705_v49, %v5705_v49  ;;  %v404_v26 = vld [vmem:[#allocation2 + $0xad8] sm:$0xff]  ;;  %v405_v6 = vld [vmem:[#allocation2 + $0xae0] sm:$0xff]  ;;  %v910_v18 = vld [vmem:[#allocation5 + $0xaa8] sm:$0xff]  ;;  %5707 = vst [vmem:[#allocation321_spill] sm:$0xff] %v3827_v2  ;;  %v3847_v2 = vsub.f32 %v394_v40, %v906_v59 }
 0x140   :  { %v909_v32 = vld [vmem:[#allocation5 + $0xaa0] sm:$0xff]  ;;  %v911_v7 = vld [vmem:[#allocation5 + $0xab0] sm:$0xff]  ;;  %5708 = vst [vmem:[#allocation322_spill] sm:$0xff] %v3829_v0  ;;  %5709 = vst [vmem:[#allocation323_spill] sm:$0xff] %v3831_v8 }
 0x141   :  { %5706 = vst [vmem:[#allocation97_spill] sm:$0xff] %v3825_v5  ;;  %v5710_v43 = vld [vmem:[#allocation99_spill] sm:$0xff]  ;;  %v407_v1 = vld [vmem:[#allocation2 + $0xaf0] sm:$0xff]  ;;  %v408_v3 = vld [vmem:[#allocation2 + $0xaf8] sm:$0xff]  ;;  %v3839_v5 = vsub.f32 %v392_v11, %v904_v29  ;;  %v3861_v40 = vsub.f32 %v399_v51, %v911_v7 }
 0x142   :  { %v3835_v9 = vmul.f32 %v5710_v43, %v5710_v43  ;;  %v406_v48 = vld [vmem:[#allocation2 + $0xae8] sm:$0xff]  ;;  %v912_v49 = vld [vmem:[#allocation5 + $0xab8] sm:$0xff]  ;;  %v913_v21 = vld [vmem:[#allocation5 + $0xac0] sm:$0xff]  ;;  %5712 = vst [vmem:[#allocation324_spill] sm:$0xff] %v3837_v25  ;;  %v3857_v25 = vsub.f32 %v397_v41, %v909_v32 }
 0x143   :  { %v914_v23 = vld [vmem:[#allocation5 + $0xac8] sm:$0xff]  ;;  %5713 = vst [vmem:[#allocation325_spill] sm:$0xff] %v3839_v5  ;;  %5714 = vst [vmem:[#allocation326_spill] sm:$0xff] %v3841_v17  ;;  %v5715_v28 = vld [vmem:[#allocation100_spill] sm:$0xff] }
 0x144   :  { %5711 = vst [vmem:[#allocation99_spill] sm:$0xff] %v3835_v9  ;;  %v3845_v45 = vmul.f32 %v5715_v28, %v5715_v28  ;;  %v409_v42 = vld [vmem:[#allocation2 + $0xb00] sm:$0xff]  ;;  %v410_v15 = vld [vmem:[#allocation2 + $0xb08] sm:$0xff]  ;;  %v411_v19 = vld [vmem:[#allocation2 + $0xb10] sm:$0xff]  ;;  %v3849_v9 = vsub.f32 %v395_v60, %v907_v16  ;;  %v3871_v41 = vsub.f32 %v402_v34, %v914_v23 }
 0x145   :  { %v915_v43 = vld [vmem:[#allocation5 + $0xad0] sm:$0xff]  ;;  %v916_v8 = vld [vmem:[#allocation5 + $0xad8] sm:$0xff]  ;;  %v917_v0 = vld [vmem:[#allocation5 + $0xae0] sm:$0xff]  ;;  %5717 = vst [vmem:[#allocation327_spill] sm:$0xff] %v3847_v2  ;;  %v3869_v2 = vsub.f32 %v401_v56, %v913_v21 }
 0x146   :  { %5716 = vst [vmem:[#allocation100_spill] sm:$0xff] %v3845_v45  ;;  %5718 = vst [vmem:[#allocation328_spill] sm:$0xff] %v3849_v9  ;;  %v5720_v11 = vld [vmem:[#allocation101_spill] sm:$0xff]  ;;  %v413_v29 = vld [vmem:[#allocation2 + $0xb20] sm:$0xff]  ;;  %v3859_v45 = vsub.f32 %v398_v61, %v910_v18  ;;  %v3867_v9 = vsub.f32 %v400_v13, %v912_v49  ;;  %v3881_v13 = vsub.f32 %v405_v6, %v917_v0 }
 0x147   :  { %5719 = vst [vmem:[#allocation329_spill] sm:$0xff] %v3851_v46  ;;  %v3855_v57 = vmul.f32 %v5720_v11, %v5720_v11  ;;  %v412_v55 = vld [vmem:[#allocation2 + $0xb18] sm:$0xff]  ;;  %v414_v39 = vld [vmem:[#allocation2 + $0xb28] sm:$0xff]  ;;  %v919_v17 = vld [vmem:[#allocation5 + $0xaf0] sm:$0xff] }
 0x148   :  { %v918_v28 = vld [vmem:[#allocation5 + $0xae8] sm:$0xff]  ;;  %v920_v5 = vld [vmem:[#allocation5 + $0xaf8] sm:$0xff]  ;;  %5721 = vst [vmem:[#allocation101_spill] sm:$0xff] %v3857_v25  ;;  %5722 = vst [vmem:[#allocation330_spill] sm:$0xff] %v3859_v45  ;;  %v3877_v25 = vsub.f32 %v403_v36, %v915_v43 }
 0x149   :  { %5723 = vst [vmem:[#allocation331_spill] sm:$0xff] %v3861_v40  ;;  %5724 = vst [vmem:[#allocation332_spill] sm:$0xff] %v3865_v63  ;;  %v415_v60 = vld [vmem:[#allocation2 + $0xb30] sm:$0xff]  ;;  %v416_v35 = vld [vmem:[#allocation2 + $0xb38] sm:$0xff]  ;;  %v3879_v63 = vsub.f32 %v404_v26, %v916_v8  ;;  %v3891_v36 = vsub.f32 %v408_v3, %v920_v5 }
 0x14a   :  { %v417_v16 = vld [vmem:[#allocation2 + $0xb40] sm:$0xff]  ;;  %v922_v11 = vld [vmem:[#allocation5 + $0xb08] sm:$0xff]  ;;  %v923_v46 = vld [vmem:[#allocation5 + $0xb10] sm:$0xff]  ;;  %5725 = vst [vmem:[#allocation333_spill] sm:$0xff] %v3867_v9  ;;  %v3887_v9 = vsub.f32 %v406_v48, %v918_v28 }
 0x14b   :  { %v921_v59 = vld [vmem:[#allocation5 + $0xb00] sm:$0xff]  ;;  %5726 = vst [vmem:[#allocation334_spill] sm:$0xff] %v3869_v2  ;;  %5727 = vst [vmem:[#allocation335_spill] sm:$0xff] %v3871_v41  ;;  %v418_v51 = vld [vmem:[#allocation2 + $0xb48] sm:$0xff]  ;;  %v3901_v48 = vsub.f32 %v411_v19, %v923_v46 }
 0x14c   :  { %v5728_v61 = vld [vmem:[#allocation102_spill] sm:$0xff]  ;;  %v419_v18 = vld [vmem:[#allocation2 + $0xb50] sm:$0xff]  ;;  %v420_v10 = vld [vmem:[#allocation2 + $0xb58] sm:$0xff]  ;;  %5730 = vst [vmem:[#allocation336_spill] sm:$0xff] %v3877_v25  ;;  %v3897_v25 = vsub.f32 %v409_v42, %v921_v59 }
 0x14d   :  { %v3875_v7 = vmul.f32 %v5728_v61, %v5728_v61  ;;  %v924_v32 = vld [vmem:[#allocation5 + $0xb18] sm:$0xff]  ;;  %v925_v40 = vld [vmem:[#allocation5 + $0xb20] sm:$0xff]  ;;  %v926_v45 = vld [vmem:[#allocation5 + $0xb28] sm:$0xff]  ;;  %5731 = vst [vmem:[#allocation337_spill] sm:$0xff] %v3879_v63 }
 0x14e   :  { %5732 = vst [vmem:[#allocation338_spill] sm:$0xff] %v3881_v13  ;;  %v5733_v56 = vld [vmem:[#allocation103_spill] sm:$0xff]  ;;  %v421_v34 = vld [vmem:[#allocation2 + $0xb60] sm:$0xff]  ;;  %v423_v49 = vld [vmem:[#allocation2 + $0xb70] sm:$0xff]  ;;  %v3911_v42 = vsub.f32 %v414_v39, %v926_v45 }
 0x14f   :  { %5729 = vst [vmem:[#allocation102_spill] sm:$0xff] %v3875_v7  ;;  %v3885_v23 = vmul.f32 %v5733_v56, %v5733_v56  ;;  %v422_v21 = vld [vmem:[#allocation2 + $0xb68] sm:$0xff]  ;;  %v927_v61 = vld [vmem:[#allocation5 + $0xb30] sm:$0xff]  ;;  %v928_v41 = vld [vmem:[#allocation5 + $0xb38] sm:$0xff]  ;;  %v3889_v7 = vsub.f32 %v407_v1, %v919_v17 }
 0x150   :  { %v929_v2 = vld [vmem:[#allocation5 + $0xb40] sm:$0xff]  ;;  %5735 = vst [vmem:[#allocation339_spill] sm:$0xff] %v3887_v9  ;;  %5737 = vst [vmem:[#allocation341_spill] sm:$0xff] %v3891_v36  ;;  %v5738_v26 = vld [vmem:[#allocation104_spill] sm:$0xff]  ;;  %v3907_v9 = vsub.f32 %v412_v55, %v924_v32 }
 0x151   :  { %5734 = vst [vmem:[#allocation103_spill] sm:$0xff] %v3885_v23  ;;  %5736 = vst [vmem:[#allocation340_spill] sm:$0xff] %v3889_v7  ;;  %v3895_v0 = vmul.f32 %v5738_v26, %v5738_v26  ;;  %v424_v6 = vld [vmem:[#allocation2 + $0xb78] sm:$0xff]  ;;  %v425_v8 = vld [vmem:[#allocation2 + $0xb80] sm:$0xff]  ;;  %v3899_v23 = vsub.f32 %v410_v15, %v922_v11  ;;  %v3921_v55 = vsub.f32 %v417_v16, %v929_v2 }
 0x152   :  { %v426_v43 = vld [vmem:[#allocation2 + $0xb88] sm:$0xff]  ;;  %v931_v13 = vld [vmem:[#allocation5 + $0xb50] sm:$0xff]  ;;  %v932_v63 = vld [vmem:[#allocation5 + $0xb58] sm:$0xff]  ;;  %5740 = vst [vmem:[#allocation342_spill] sm:$0xff] %v3897_v25  ;;  %v3917_v25 = vsub.f32 %v415_v60, %v927_v61 }
 0x153   :  { %5739 = vst [vmem:[#allocation104_spill] sm:$0xff] %v3895_v0  ;;  %v930_v56 = vld [vmem:[#allocation5 + $0xb48] sm:$0xff]  ;;  %5741 = vst [vmem:[#allocation343_spill] sm:$0xff] %v3899_v23  ;;  %v5743_v1 = vld [vmem:[#allocation105_spill] sm:$0xff]  ;;  %v3909_v0 = vsub.f32 %v413_v29, %v925_v40  ;;  %v3931_v60 = vsub.f32 %v420_v10, %v932_v63 }
 0x154   :  { %5742 = vst [vmem:[#allocation344_spill] sm:$0xff] %v3901_v48  ;;  %v3905_v5 = vmul.f32 %v5743_v1, %v5743_v1  ;;  %v427_v3 = vld [vmem:[#allocation2 + $0xb90] sm:$0xff]  ;;  %v428_v17 = vld [vmem:[#allocation2 + $0xb98] sm:$0xff]  ;;  %v429_v28 = vld [vmem:[#allocation2 + $0xba0] sm:$0xff] }
 0x155   :  { %v933_v26 = vld [vmem:[#allocation5 + $0xb60] sm:$0xff]  ;;  %v934_v36 = vld [vmem:[#allocation5 + $0xb68] sm:$0xff]  ;;  %v935_v7 = vld [vmem:[#allocation5 + $0xb70] sm:$0xff]  ;;  %5745 = vst [vmem:[#allocation345_spill] sm:$0xff] %v3907_v9  ;;  %v3927_v9 = vsub.f32 %v418_v51, %v930_v56 }
 0x156   :  { %5744 = vst [vmem:[#allocation105_spill] sm:$0xff] %v3905_v5  ;;  %5746 = vst [vmem:[#allocation346_spill] sm:$0xff] %v3909_v0  ;;  %v5748_v15 = vld [vmem:[#allocation106_spill] sm:$0xff]  ;;  %v430_v46 = vld [vmem:[#allocation2 + $0xba8] sm:$0xff]  ;;  %v3919_v5 = vsub.f32 %v416_v35, %v928_v41  ;;  %v3941_v51 = vsub.f32 %v423_v49, %v935_v7  ;;  %v3955_v7 = vmul.f32 %v3127_v20, %v3127_v20 }
 0x157   :  { %5747 = vst [vmem:[#allocation347_spill] sm:$0xff] %v3911_v42  ;;  %v3915_v19 = vmul.f32 %v5748_v15, %v5748_v15  ;;  %v431_v59 = vld [vmem:[#allocation2 + $0xbb0] sm:$0xff]  ;;  %v432_v11 = vld [vmem:[#allocation2 + $0xbb8] sm:$0xff]  ;;  %v937_v48 = vld [vmem:[#allocation5 + $0xb80] sm:$0xff] }
 0x158   :  { %v936_v1 = vld [vmem:[#allocation5 + $0xb78] sm:$0xff]  ;;  %v938_v23 = vld [vmem:[#allocation5 + $0xb88] sm:$0xff]  ;;  %5750 = vst [vmem:[#allocation348_spill] sm:$0xff] %v3917_v25  ;;  %5751 = vst [vmem:[#allocation349_spill] sm:$0xff] %v3919_v5  ;;  %v3937_v25 = vsub.f32 %v421_v34, %v933_v26 }
 0x159   :  { %5749 = vst [vmem:[#allocation106_spill] sm:$0xff] %v3915_v19  ;;  %5752 = vst [vmem:[#allocation350_spill] sm:$0xff] %v3921_v55  ;;  %v5753_v29 = vld [vmem:[#allocation108_spill] sm:$0xff]  ;;  %v433_v39 = vld [vmem:[#allocation2 + $0xbc0] sm:$0xff]  ;;  %v3929_v19 = vsub.f32 %v419_v18, %v931_v13  ;;  %v3951_v34 = vsub.f32 %v426_v43, %v938_v23 }
 0x15a   :  { %v3925_v45 = vmul.f32 %v5753_v29, %v5753_v29  ;;  %v434_v40 = vld [vmem:[#allocation2 + $0xbc8] sm:$0xff]  ;;  %v435_v32 = vld [vmem:[#allocation2 + $0xbd0] sm:$0xff]  ;;  %v940_v42 = vld [vmem:[#allocation5 + $0xb98] sm:$0xff]  ;;  %5755 = vst [vmem:[#allocation351_spill] sm:$0xff] %v3927_v9  ;;  %v3947_v9 = vsub.f32 %v424_v6, %v936_v1 }
 0x15b   :  { %v939_v15 = vld [vmem:[#allocation5 + $0xb90] sm:$0xff]  ;;  %v941_v0 = vld [vmem:[#allocation5 + $0xba0] sm:$0xff]  ;;  %5756 = vst [vmem:[#allocation352_spill] sm:$0xff] %v3929_v19  ;;  %5757 = vst [vmem:[#allocation353_spill] sm:$0xff] %v3931_v60 }
 0x15c   :  { %5754 = vst [vmem:[#allocation108_spill] sm:$0xff] %v3925_v45  ;;  %v5758_v35 = vld [vmem:[#allocation109_spill] sm:$0xff]  ;;  %v437_v41 = vld [vmem:[#allocation2 + $0xbe0] sm:$0xff]  ;;  %v438_v61 = vld [vmem:[#allocation2 + $0xbe8] sm:$0xff]  ;;  %v3939_v45 = vsub.f32 %v422_v21, %v934_v36  ;;  %v3961_v6 = vsub.f32 %v429_v28, %v941_v0 }
 0x15d   :  { %v3935_v2 = vmul.f32 %v5758_v35, %v5758_v35  ;;  %v436_v16 = vld [vmem:[#allocation2 + $0xbd8] sm:$0xff]  ;;  %v942_v29 = vld [vmem:[#allocation5 + $0xba8] sm:$0xff]  ;;  %v943_v55 = vld [vmem:[#allocation5 + $0xbb0] sm:$0xff]  ;;  %5760 = vst [vmem:[#allocation354_spill] sm:$0xff] %v3937_v25  ;;  %v3959_v25 = vsub.f32 %v428_v17, %v940_v42 }
 0x15e   :  { %v944_v5 = vld [vmem:[#allocation5 + $0xbb8] sm:$0xff]  ;;  %5761 = vst [vmem:[#allocation355_spill] sm:$0xff] %v3939_v45  ;;  %5762 = vst [vmem:[#allocation356_spill] sm:$0xff] %v3941_v51  ;;  %v5763_v18 = vld [vmem:[#allocation110_spill] sm:$0xff]  ;;  %v3957_v45 = vsub.f32 %v427_v3, %v939_v15 }
 0x15f   :  { %5759 = vst [vmem:[#allocation109_spill] sm:$0xff] %v3935_v2  ;;  %v3945_v63 = vmul.f32 %v5763_v18, %v5763_v18  ;;  %v439_v10 = vld [vmem:[#allocation2 + $0xbf0] sm:$0xff]  ;;  %v440_v13 = vld [vmem:[#allocation2 + $0xbf8] sm:$0xff]  ;;  %v441_v56 = vld [vmem:[#allocation2 + $0xc00] sm:$0xff]  ;;  %v3949_v2 = vsub.f32 %v425_v8, %v937_v48  ;;  %v3971_v3 = vsub.f32 %v432_v11, %v944_v5 }
 0x160   :  { %v945_v35 = vld [vmem:[#allocation5 + $0xbc0] sm:$0xff]  ;;  %v946_v60 = vld [vmem:[#allocation5 + $0xbc8] sm:$0xff]  ;;  %v947_v19 = vld [vmem:[#allocation5 + $0xbd0] sm:$0xff]  ;;  %5764 = vst [vmem:[#allocation110_spill] sm:$0xff] %v3947_v9  ;;  %v3967_v9 = vsub.f32 %v430_v46, %v942_v29 }
 0x161   :  { %5765 = vst [vmem:[#allocation357_spill] sm:$0xff] %v3949_v2  ;;  %5766 = vst [vmem:[#allocation358_spill] sm:$0xff] %v3951_v34  ;;  %v442_v21 = vld [vmem:[#allocation2 + $0xc08] sm:$0xff]  ;;  %v443_v49 = vld [vmem:[#allocation2 + $0xc10] sm:$0xff]  ;;  %v3981_v46 = vsub.f32 %v435_v32, %v947_v19 }
 0x162   :  { %5767 = vst [vmem:[#allocation359_spill] sm:$0xff] %v3955_v7  ;;  %v444_v36 = vld [vmem:[#allocation2 + $0xc18] sm:$0xff]  ;;  %v949_v18 = vld [vmem:[#allocation5 + $0xbe0] sm:$0xff]  ;;  %v950_v51 = vld [vmem:[#allocation5 + $0xbe8] sm:$0xff]  ;;  %v3969_v7 = vsub.f32 %v431_v59, %v943_v55 }
 0x163   :  { %v948_v26 = vld [vmem:[#allocation5 + $0xbd8] sm:$0xff]  ;;  %5768 = vst [vmem:[#allocation360_spill] sm:$0xff] %v3957_v45  ;;  %5769 = vst [vmem:[#allocation361_spill] sm:$0xff] %v3959_v25  ;;  %v5771_v8 = vld [vmem:[#allocation111_spill] sm:$0xff]  ;;  %v3977_v45 = vsub.f32 %v433_v39, %v945_v35  ;;  %v3991_v39 = vsub.f32 %v438_v61, %v950_v51 }
 0x164   :  { %5770 = vst [vmem:[#allocation362_spill] sm:$0xff] %v3961_v6  ;;  %v3965_v23 = vmul.f32 %v5771_v8, %v5771_v8  ;;  %v445_v43 = vld [vmem:[#allocation2 + $0xc20] sm:$0xff]  ;;  %v446_v48 = vld [vmem:[#allocation2 + $0xc28] sm:$0xff]  ;;  %v447_v20 = vld [vmem:[#allocation2 + $0xc30] sm:$0xff] }
 0x165   :  { %v951_v1 = vld [vmem:[#allocation5 + $0xbf0] sm:$0xff]  ;;  %v952_v34 = vld [vmem:[#allocation5 + $0xbf8] sm:$0xff]  ;;  %v953_v2 = vld [vmem:[#allocation5 + $0xc00] sm:$0xff]  ;;  %5773 = vst [vmem:[#allocation363_spill] sm:$0xff] %v3967_v9  ;;  %v3987_v9 = vsub.f32 %v436_v16, %v948_v26 }
 0x166   :  { %5772 = vst [vmem:[#allocation111_spill] sm:$0xff] %v3965_v23  ;;  %5774 = vst [vmem:[#allocation364_spill] sm:$0xff] %v3969_v7  ;;  %v5776_v17 = vld [vmem:[#allocation112_spill] sm:$0xff]  ;;  %v448_v28 = vld [vmem:[#allocation2 + $0xc38] sm:$0xff]  ;;  %v3979_v23 = vsub.f32 %v434_v40, %v946_v60 }
 0x167   :  { %5775 = vst [vmem:[#allocation365_spill] sm:$0xff] %v3971_v3  ;;  %v3975_v0 = vmul.f32 %v5776_v17, %v5776_v17  ;;  %v449_v42 = vld [vmem:[#allocation2 + $0xc40] sm:$0xff]  ;;  %v450_v15 = vld [vmem:[#allocation2 + $0xc48] sm:$0xff]  ;;  %v955_v6 = vld [vmem:[#allocation5 + $0xc10] sm:$0xff] }
 0x168   :  { %v954_v8 = vld [vmem:[#allocation5 + $0xc08] sm:$0xff]  ;;  %v956_v25 = vld [vmem:[#allocation5 + $0xc18] sm:$0xff]  ;;  %5778 = vst [vmem:[#allocation366_spill] sm:$0xff] %v3977_v45  ;;  %5779 = vst [vmem:[#allocation367_spill] sm:$0xff] %v3979_v23  ;;  %v4001_v23 = vsub.f32 %v441_v56, %v953_v2 }
 0x169   :  { %5777 = vst [vmem:[#allocation112_spill] sm:$0xff] %v3975_v0  ;;  %5780 = vst [vmem:[#allocation368_spill] sm:$0xff] %v3981_v46  ;;  %v5781_v59 = vld [vmem:[#allocation113_spill] sm:$0xff]  ;;  %v451_v11 = vld [vmem:[#allocation2 + $0xc50] sm:$0xff]  ;;  %v3989_v0 = vsub.f32 %v437_v41, %v949_v18  ;;  %v3999_v46 = vsub.f32 %v440_v13, %v952_v34  ;;  %v4007_v26 = vsub.f32 %v442_v21, %v954_v8 }
 0x16a   :  { %v3985_v5 = vmul.f32 %v5781_v59, %v5781_v59  ;;  %v452_v55 = vld [vmem:[#allocation2 + $0xc58] sm:$0xff]  ;;  %v453_v29 = vld [vmem:[#allocation2 + $0xc60] sm:$0xff]  ;;  %v958_v3 = vld [vmem:[#allocation5 + $0xc28] sm:$0xff]  ;;  %5782 = vst [vmem:[#allocation113_spill] sm:$0xff] %v3987_v9  ;;  %v3997_v59 = vsub.f32 %v439_v10, %v951_v1  ;;  %v4009_v18 = vsub.f32 %v443_v49, %v955_v6 }
 0x16b   :  { %v957_v17 = vld [vmem:[#allocation5 + $0xc20] sm:$0xff]  ;;  %v959_v7 = vld [vmem:[#allocation5 + $0xc30] sm:$0xff]  ;;  %5783 = vst [vmem:[#allocation369_spill] sm:$0xff] %v3989_v0  ;;  %5784 = vst [vmem:[#allocation370_spill] sm:$0xff] %v3991_v39 }
 0x16c   :  { %v5785_v40 = vld [vmem:[#allocation114_spill] sm:$0xff]  ;;  %v960_v32 = vld [vmem:[#allocation5 + $0xc38] sm:$0xff]  ;;  %v962_v35 = vld [vmem:[#allocation5 + $0xc48] sm:$0xff]  ;;  %5787 = vst [vmem:[#allocation371_spill] sm:$0xff] %v3999_v46  ;;  %v4017_v34 = vsub.f32 %v445_v43, %v957_v17  ;;  %v4021_v1 = vsub.f32 %v447_v20, %v959_v7 }
 0x16d   :  { %v3995_v19 = vmul.f32 %v5785_v40, %v5785_v40  ;;  %v961_v60 = vld [vmem:[#allocation5 + $0xc40] sm:$0xff]  ;;  %5786 = vst [vmem:[#allocation114_spill] sm:$0xff] %v3997_v59  ;;  %5788 = vst [vmem:[#allocation372_spill] sm:$0xff] %v4001_v23  ;;  %v5789_v45 = vld [vmem:[#allocation115_spill] sm:$0xff]  ;;  %v4011_v40 = vsub.f32 %v444_v36, %v956_v25  ;;  %v4027_v6 = vsub.f32 %v448_v28, %v960_v32 }
 0x16e   :  { %v4005_v16 = vmul.f32 %v5789_v45, %v5789_v45  ;;  %v963_v41 = vld [vmem:[#allocation5 + $0xc50] sm:$0xff]  ;;  %v964_v61 = vld [vmem:[#allocation5 + $0xc58] sm:$0xff]  ;;  %v965_v51 = vld [vmem:[#allocation5 + $0xc60] sm:$0xff]  ;;  %5790 = vst [vmem:[#allocation115_spill] sm:$0xff] %v4007_v26  ;;  %v4019_v45 = vsub.f32 %v446_v48, %v958_v3  ;;  %v4029_v8 = vsub.f32 %v449_v42, %v961_v60  ;;  %v4045_v28 = vmul.f32 %v3157_v33, %v3157_v33 }
 0x16f   :  { %5791 = vst [vmem:[#allocation373_spill] sm:$0xff] %v4009_v18  ;;  %5792 = vst [vmem:[#allocation374_spill] sm:$0xff] %v4011_v40  ;;  %v5793_v39 = vld [vmem:[#allocation117_spill] sm:$0xff]  ;;  %v454_v13 = vld [vmem:[#allocation2 + $0xc68] sm:$0xff]  ;;  %v4037_v3 = vsub.f32 %v451_v11, %v963_v41  ;;  %v4041_v17 = vsub.f32 %v453_v29, %v965_v51 }
 0x170   :  { %v4015_v10 = vmul.f32 %v5793_v39, %v5793_v39  ;;  %v455_v2 = vld [vmem:[#allocation2 + $0xc70] sm:$0xff]  ;;  %v456_v56 = vld [vmem:[#allocation2 + $0xc78] sm:$0xff]  ;;  %5794 = vst [vmem:[#allocation117_spill] sm:$0xff] %v4017_v34  ;;  %5795 = vst [vmem:[#allocation375_spill] sm:$0xff] %v4019_v45  ;;  %v4031_v39 = vsub.f32 %v450_v15, %v962_v35 }
 0x171   :  { %5796 = vst [vmem:[#allocation376_spill] sm:$0xff] %v4021_v1  ;;  %v5797_v23 = vld [vmem:[#allocation118_spill] sm:$0xff]  ;;  %v966_v49 = vld [vmem:[#allocation5 + $0xc68] sm:$0xff]  ;;  %v967_v25 = vld [vmem:[#allocation5 + $0xc70] sm:$0xff] }
 0x172   :  { %v4025_v21 = vmul.f32 %v5797_v23, %v5797_v23  ;;  %v968_v36 = vld [vmem:[#allocation5 + $0xc78] sm:$0xff]  ;;  %5798 = vst [vmem:[#allocation118_spill] sm:$0xff] %v4027_v6  ;;  %5799 = vst [vmem:[#allocation377_spill] sm:$0xff] %v4029_v8  ;;  %v5801_v40 = vld [vmem:[#allocation119_spill] sm:$0xff]  ;;  %v4039_v23 = vsub.f32 %v452_v55, %v964_v61  ;;  %v4055_v33 = vsub.f32 %v454_v13, %v966_v49 }
 0x173   :  { %5800 = vst [vmem:[#allocation378_spill] sm:$0xff] %v4031_v39  ;;  %v4035_v43 = vmul.f32 %v5801_v40, %v5801_v40  ;;  %v457_v48 = vld [vmem:[#allocation2 + $0xc80] sm:$0xff]  ;;  %v458_v7 = vld [vmem:[#allocation2 + $0xc88] sm:$0xff]  ;;  %v459_v20 = vld [vmem:[#allocation2 + $0xc90] sm:$0xff]  ;;  %v4059_v45 = vsub.f32 %v456_v56, %v968_v36 }
 0x174   :  { %5802 = vst [vmem:[#allocation119_spill] sm:$0xff] %v4037_v3  ;;  %5803 = vst [vmem:[#allocation379_spill] sm:$0xff] %v4039_v23  ;;  %v969_v42 = vld [vmem:[#allocation5 + $0xc80] sm:$0xff]  ;;  %v970_v15 = vld [vmem:[#allocation5 + $0xc88] sm:$0xff]  ;;  %v4057_v3 = vsub.f32 %v455_v2, %v967_v25 }
 0x175   :  { %5804 = vst [vmem:[#allocation380_spill] sm:$0xff] %v4041_v17  ;;  %v971_v32 = vld [vmem:[#allocation5 + $0xc90] sm:$0xff]  ;;  %v5805_v60 = vld [vmem:[#allocation11_spill] sm:$0xff]  ;;  %v5809_v1 = vld [vmem:[#allocation13_spill] sm:$0xff]  ;;  %v4069_v56 = vsub.f32 %v457_v48, %v969_v42  ;;  %v4071_v36 = vsub.f32 %v458_v7, %v970_v15 }
 0x176   :  { %v5806_v35 = vld [vmem:[#allocation15_spill] sm:$0xff]  ;;  %v5807_v39 = vld [vmem:[#allocation12_spill] sm:$0xff]  ;;  %v5810_v11 = vld [vmem:[#allocation17_spill] sm:$0xff]  ;;  %5813 = vst [vmem:[#allocation11_spill] sm:$0xff] %v4055_v33 }
 0x177   :  { %v2105_v40 = vadd.f32 %v5806_v35, %v5805_v60  ;;  %v5808_v8 = vld [vmem:[#allocation16_spill] sm:$0xff]  ;;  %v2359_v41 = vadd.f32 %v5810_v11, %v5809_v1  ;;  %v5811_v55 = vld [vmem:[#allocation14_spill] sm:$0xff]  ;;  %v460_v51 = vld [vmem:[#allocation2 + $0xc98] sm:$0xff]  ;;  %5814 = vst [vmem:[#allocation15_spill] sm:$0xff] %v4057_v3 }
 0x178   :  { %v2232_v6 = vadd.f32 %v5808_v8, %v5807_v39  ;;  %v5812_v61 = vld [vmem:[#allocation18_spill] sm:$0xff]  ;;  %v462_v23 = vld [vmem:[#allocation2 + $0xca8] sm:$0xff]  ;;  %5815 = vst [vmem:[#allocation12_spill] sm:$0xff] %v4059_v45  ;;  %v5816_v34 = vld [vmem:[#allocation120_spill] sm:$0xff] }
 0x179   :  { %v2486_v29 = vadd.f32 %v5812_v61, %v5811_v55  ;;  %v461_v17 = vld [vmem:[#allocation2 + $0xca0] sm:$0xff]  ;;  %v4063_v60 = vmul.f32 %v5816_v34, %v5816_v34  ;;  %v972_v8 = vld [vmem:[#allocation5 + $0xc98] sm:$0xff]  ;;  %v974_v35 = vld [vmem:[#allocation5 + $0xca8] sm:$0xff]  ;;  %5821 = vst [vmem:[#allocation16_spill] sm:$0xff] %v4069_v56  ;;  %v4073_v34 = vsub.f32 %v459_v20, %v971_v32 }
 0x17a   :  { %v973_v39 = vld [vmem:[#allocation5 + $0xca0] sm:$0xff]  ;;  %v5817_v1 = vld [vmem:[#allocation19_spill] sm:$0xff]  ;;  %v5819_v61 = vld [vmem:[#allocation25_spill] sm:$0xff]  ;;  %5822 = vst [vmem:[#allocation13_spill] sm:$0xff] %v4071_v36  ;;  %v4083_v20 = vsub.f32 %v460_v51, %v972_v8 }
 0x17b   :  { %v2106_v11 = vadd.f32 %v2105_v40, %v5817_v1  ;;  %v5818_v18 = vld [vmem:[#allocation22_spill] sm:$0xff]  ;;  %v2360_v26 = vadd.f32 %v2359_v41, %v5819_v61  ;;  %v5820_v46 = vld [vmem:[#allocation28_spill] sm:$0xff]  ;;  %v464_v2 = vld [vmem:[#allocation2 + $0xcb8] sm:$0xff]  ;;  %5823 = vst [vmem:[#allocation17_spill] sm:$0xff] %v4073_v34  ;;  %v4085_v32 = vsub.f32 %v461_v17, %v973_v39 }
 0x17c   :  { %v2233_v55 = vadd.f32 %v2232_v6, %v5818_v18  ;;  %v2487_v13 = vadd.f32 %v2486_v29, %v5820_v46  ;;  %v463_v49 = vld [vmem:[#allocation2 + $0xcb0] sm:$0xff]  ;;  %v465_v25 = vld [vmem:[#allocation2 + $0xcc0] sm:$0xff]  ;;  %v5824_v45 = vld [vmem:[#allocation121_spill] sm:$0xff]  ;;  %5829 = vst [vmem:[#allocation14_spill] sm:$0xff] %v4083_v20 }
 0x17d   :  { %v4077_v3 = vmul.f32 %v5824_v45, %v5824_v45  ;;  %v975_v40 = vld [vmem:[#allocation5 + $0xcb0] sm:$0xff]  ;;  %v976_v1 = vld [vmem:[#allocation5 + $0xcb8] sm:$0xff]  ;;  %v977_v18 = vld [vmem:[#allocation5 + $0xcc0] sm:$0xff]  ;;  %5830 = vst [vmem:[#allocation18_spill] sm:$0xff] %v4085_v32  ;;  %v4087_v45 = vsub.f32 %v462_v23, %v974_v35 }
 0x17e   :  { %v5825_v6 = vld [vmem:[#allocation31_spill] sm:$0xff]  ;;  %v5826_v61 = vld [vmem:[#allocation34_spill] sm:$0xff]  ;;  %v5827_v29 = vld [vmem:[#allocation37_spill] sm:$0xff]  ;;  %v4097_v23 = vsub.f32 %v463_v49, %v975_v40  ;;  %v4099_v35 = vsub.f32 %v464_v2, %v976_v1 }
 0x17f   :  { %v2107_v41 = vadd.f32 %v2106_v11, %v5825_v6  ;;  %v2234_v46 = vadd.f32 %v2233_v55, %v5826_v61  ;;  %v2361_v33 = vadd.f32 %v2360_v26, %v5827_v29  ;;  %v5828_v59 = vld [vmem:[#allocation40_spill] sm:$0xff]  ;;  %v466_v42 = vld [vmem:[#allocation2 + $0xcc8] sm:$0xff]  ;;  %v468_v15 = vld [vmem:[#allocation2 + $0xcd8] sm:$0xff]  ;;  %5831 = vst [vmem:[#allocation120_spill] sm:$0xff] %v4087_v45 }
 0x180   :  { %v2488_v48 = vadd.f32 %v2487_v13, %v5828_v59  ;;  %v467_v7 = vld [vmem:[#allocation2 + $0xcd0] sm:$0xff]  ;;  %v5832_v34 = vld [vmem:[#allocation122_spill] sm:$0xff]  ;;  %v978_v11 = vld [vmem:[#allocation5 + $0xcc8] sm:$0xff]  ;;  %5837 = vst [vmem:[#allocation19_spill] sm:$0xff] %v4097_v23 }
 0x181   :  { %v4091_v36 = vmul.f32 %v5832_v34, %v5832_v34  ;;  %v979_v6 = vld [vmem:[#allocation5 + $0xcd0] sm:$0xff]  ;;  %v980_v55 = vld [vmem:[#allocation5 + $0xcd8] sm:$0xff]  ;;  %v5833_v61 = vld [vmem:[#allocation43_spill] sm:$0xff]  ;;  %5838 = vst [vmem:[#allocation22_spill] sm:$0xff] %v4099_v35  ;;  %v4101_v34 = vsub.f32 %v465_v25, %v977_v18  ;;  %v4111_v25 = vsub.f32 %v466_v42, %v978_v11 }
 0x182   :  { %v2108_v26 = vadd.f32 %v2107_v41, %v5833_v61  ;;  %v5834_v29 = vld [vmem:[#allocation46_spill] sm:$0xff]  ;;  %v5835_v13 = vld [vmem:[#allocation49_spill] sm:$0xff]  ;;  %v5836_v0 = vld [vmem:[#allocation52_spill] sm:$0xff]  ;;  %v4113_v18 = vsub.f32 %v467_v7, %v979_v6 }
 0x183   :  { %v2235_v59 = vadd.f32 %v2234_v46, %v5834_v29  ;;  %v2362_v56 = vadd.f32 %v2361_v33, %v5835_v13  ;;  %v2489_v51 = vadd.f32 %v2488_v48, %v5836_v0  ;;  %v469_v8 = vld [vmem:[#allocation2 + $0xce0] sm:$0xff]  ;;  %v470_v17 = vld [vmem:[#allocation2 + $0xce8] sm:$0xff]  ;;  %v471_v39 = vld [vmem:[#allocation2 + $0xcf0] sm:$0xff]  ;;  %5839 = vst [vmem:[#allocation25_spill] sm:$0xff] %v4101_v34 }
 0x184   :  { %v5840_v45 = vld [vmem:[#allocation123_spill] sm:$0xff]  ;;  %v981_v41 = vld [vmem:[#allocation5 + $0xce0] sm:$0xff]  ;;  %v983_v46 = vld [vmem:[#allocation5 + $0xcf0] sm:$0xff]  ;;  %5846 = vst [vmem:[#allocation121_spill] sm:$0xff] %v4111_v25 }
 0x185   :  { %v4105_v32 = vmul.f32 %v5840_v45, %v5840_v45  ;;  %v982_v61 = vld [vmem:[#allocation5 + $0xce8] sm:$0xff]  ;;  %v5843_v13 = vld [vmem:[#allocation58_spill] sm:$0xff]  ;;  %v5844_v48 = vld [vmem:[#allocation61_spill] sm:$0xff]  ;;  %5847 = vst [vmem:[#allocation31_spill] sm:$0xff] %v4113_v18  ;;  %v4115_v45 = vsub.f32 %v468_v15, %v980_v55  ;;  %v4125_v15 = vsub.f32 %v469_v8, %v981_v41 }
 0x186   :  { %v5842_v29 = vld [vmem:[#allocation55_spill] sm:$0xff]  ;;  %v2236_v0 = vadd.f32 %v2235_v59, %v5843_v13  ;;  %v2363_v20 = vadd.f32 %v2362_v56, %v5844_v48  ;;  %v5845_v9 = vld [vmem:[#allocation64_spill] sm:$0xff]  ;;  %v472_v40 = vld [vmem:[#allocation2 + $0xcf8] sm:$0xff]  ;;  %v4127_v55 = vsub.f32 %v470_v17, %v982_v61 }
 0x187   :  { %5841 = vst [vmem:[#allocation28_spill] sm:$0xff] %v4105_v32  ;;  %v2109_v33 = vadd.f32 %v2108_v26, %v5842_v29  ;;  %v2490_v49 = vadd.f32 %v2489_v51, %v5845_v9  ;;  %v473_v2 = vld [vmem:[#allocation2 + $0xd00] sm:$0xff]  ;;  %v474_v1 = vld [vmem:[#allocation2 + $0xd08] sm:$0xff]  ;;  %5848 = vst [vmem:[#allocation34_spill] sm:$0xff] %v4115_v45 }
 0x188   :  { %v5849_v34 = vld [vmem:[#allocation124_spill] sm:$0xff]  ;;  %v984_v26 = vld [vmem:[#allocation5 + $0xcf8] sm:$0xff]  ;;  %v985_v29 = vld [vmem:[#allocation5 + $0xd00] sm:$0xff]  ;;  %5855 = vst [vmem:[#allocation40_spill] sm:$0xff] %v4125_v15 }
 0x189   :  { %v4119_v35 = vmul.f32 %v5849_v34, %v5849_v34  ;;  %v986_v59 = vld [vmem:[#allocation5 + $0xd08] sm:$0xff]  ;;  %v5852_v48 = vld [vmem:[#allocation70_spill] sm:$0xff]  ;;  %v5853_v51 = vld [vmem:[#allocation73_spill] sm:$0xff]  ;;  %5856 = vst [vmem:[#allocation122_spill] sm:$0xff] %v4127_v55  ;;  %v4129_v34 = vsub.f32 %v471_v39, %v983_v46  ;;  %v4139_v39 = vsub.f32 %v472_v40, %v984_v26  ;;  %v4141_v46 = vsub.f32 %v473_v2, %v985_v29 }
 0x18a   :  { %v5851_v13 = vld [vmem:[#allocation67_spill] sm:$0xff]  ;;  %v2237_v9 = vadd.f32 %v2236_v0, %v5852_v48  ;;  %v2364_v23 = vadd.f32 %v2363_v20, %v5853_v51  ;;  %v5854_v32 = vld [vmem:[#allocation76_spill] sm:$0xff]  ;;  %v476_v7 = vld [vmem:[#allocation2 + $0xd18] sm:$0xff] }
 0x18b   :  { %5850 = vst [vmem:[#allocation37_spill] sm:$0xff] %v4119_v35  ;;  %v2110_v56 = vadd.f32 %v2109_v33, %v5851_v13  ;;  %v2491_v42 = vadd.f32 %v2490_v49, %v5854_v32  ;;  %v475_v11 = vld [vmem:[#allocation2 + $0xd10] sm:$0xff]  ;;  %v477_v6 = vld [vmem:[#allocation2 + $0xd20] sm:$0xff]  ;;  %5857 = vst [vmem:[#allocation43_spill] sm:$0xff] %v4129_v34 }
 0x18c   :  { %v5858_v45 = vld [vmem:[#allocation126_spill] sm:$0xff]  ;;  %v987_v33 = vld [vmem:[#allocation5 + $0xd10] sm:$0xff]  ;;  %v988_v13 = vld [vmem:[#allocation5 + $0xd18] sm:$0xff]  ;;  %5864 = vst [vmem:[#allocation49_spill] sm:$0xff] %v4139_v39 }
 0x18d   :  { %v4133_v18 = vmul.f32 %v5858_v45, %v5858_v45  ;;  %v989_v0 = vld [vmem:[#allocation5 + $0xd20] sm:$0xff]  ;;  %v5860_v48 = vld [vmem:[#allocation79_spill] sm:$0xff]  ;;  %v5862_v49 = vld [vmem:[#allocation85_spill] sm:$0xff]  ;;  %5865 = vst [vmem:[#allocation52_spill] sm:$0xff] %v4141_v46  ;;  %v4143_v45 = vsub.f32 %v474_v1, %v986_v59  ;;  %v4153_v1 = vsub.f32 %v475_v11, %v987_v33  ;;  %v4155_v59 = vsub.f32 %v476_v7, %v988_v13 }
 0x18e   :  { %v2111_v20 = vadd.f32 %v2110_v56, %v5860_v48  ;;  %v5861_v51 = vld [vmem:[#allocation82_spill] sm:$0xff]  ;;  %v2365_v25 = vadd.f32 %v2364_v23, %v5862_v49  ;;  %v5863_v35 = vld [vmem:[#allocation89_spill] sm:$0xff]  ;;  %v478_v41 = vld [vmem:[#allocation2 + $0xd28] sm:$0xff] }
 0x18f   :  { %5859 = vst [vmem:[#allocation46_spill] sm:$0xff] %v4133_v18  ;;  %v2238_v32 = vadd.f32 %v2237_v9, %v5861_v51  ;;  %v2492_v8 = vadd.f32 %v2491_v42, %v5863_v35  ;;  %v479_v17 = vld [vmem:[#allocation2 + $0xd30] sm:$0xff]  ;;  %v480_v61 = vld [vmem:[#allocation2 + $0xd38] sm:$0xff]  ;;  %5866 = vst [vmem:[#allocation123_spill] sm:$0xff] %v4143_v45 }
 0x190   :  { %v5867_v34 = vld [vmem:[#allocation127_spill] sm:$0xff]  ;;  %v991_v48 = vld [vmem:[#allocation5 + $0xd30] sm:$0xff]  ;;  %v992_v9 = vld [vmem:[#allocation5 + $0xd38] sm:$0xff]  ;;  %5873 = vst [vmem:[#allocation58_spill] sm:$0xff] %v4153_v1 }
 0x191   :  { %v4147_v55 = vmul.f32 %v5867_v34, %v5867_v34  ;;  %v990_v56 = vld [vmem:[#allocation5 + $0xd28] sm:$0xff]  ;;  %v5869_v51 = vld [vmem:[#allocation20_spill] sm:$0xff]  ;;  %v5870_v49 = vld [vmem:[#allocation21_spill] sm:$0xff]  ;;  %5874 = vst [vmem:[#allocation61_spill] sm:$0xff] %v4155_v59  ;;  %v4157_v34 = vsub.f32 %v477_v6, %v989_v0  ;;  %v4169_v0 = vsub.f32 %v479_v17, %v991_v48 }
 0x192   :  { %v2112_v23 = vadd.f32 %v2111_v20, %v5869_v51  ;;  %v2239_v35 = vadd.f32 %v2238_v32, %v5870_v49  ;;  %v5871_v42 = vld [vmem:[#allocation98_spill] sm:$0xff]  ;;  %v5872_v18 = vld [vmem:[#allocation23_spill] sm:$0xff]  ;;  %v483_v29 = vld [vmem:[#allocation2 + $0xd50] sm:$0xff]  ;;  %v4167_v6 = vsub.f32 %v478_v41, %v990_v56 }
 0x193   :  { %5868 = vst [vmem:[#allocation55_spill] sm:$0xff] %v4147_v55  ;;  %v2366_v15 = vadd.f32 %v2365_v25, %v5871_v42  ;;  %v2493_v40 = vadd.f32 %v2492_v8, %v5872_v18  ;;  %v481_v26 = vld [vmem:[#allocation2 + $0xd40] sm:$0xff]  ;;  %v482_v2 = vld [vmem:[#allocation2 + $0xd48] sm:$0xff]  ;;  %5875 = vst [vmem:[#allocation64_spill] sm:$0xff] %v4157_v34  ;;  %v4175_v34 = vmul.f32 %v3187_v50, %v3187_v50 }
 0x194   :  { %v5876_v45 = vld [vmem:[#allocation128_spill] sm:$0xff]  ;;  %v993_v20 = vld [vmem:[#allocation5 + $0xd40] sm:$0xff]  ;;  %v994_v51 = vld [vmem:[#allocation5 + $0xd48] sm:$0xff]  ;;  %5881 = vst [vmem:[#allocation124_spill] sm:$0xff] %v4167_v6 }
 0x195   :  { %v4161_v46 = vmul.f32 %v5876_v45, %v5876_v45  ;;  %v995_v32 = vld [vmem:[#allocation5 + $0xd50] sm:$0xff]  ;;  %v5878_v42 = vld [vmem:[#allocation107_spill] sm:$0xff]  ;;  %v5879_v8 = vld [vmem:[#allocation26_spill] sm:$0xff]  ;;  %5882 = vst [vmem:[#allocation67_spill] sm:$0xff] %v4169_v0  ;;  %v4171_v45 = vsub.f32 %v480_v61, %v992_v9  ;;  %v4181_v61 = vsub.f32 %v481_v26, %v993_v20  ;;  %v4183_v9 = vsub.f32 %v482_v2, %v994_v51 }
 0x196   :  { %v5877_v49 = vld [vmem:[#allocation24_spill] sm:$0xff]  ;;  %v2240_v18 = vadd.f32 %v2239_v35, %v5878_v42  ;;  %v2367_v39 = vadd.f32 %v2366_v15, %v5879_v8  ;;  %v5880_v55 = vld [vmem:[#allocation27_spill] sm:$0xff]  ;;  %v484_v33 = vld [vmem:[#allocation2 + $0xd58] sm:$0xff]  ;;  %5884 = vst [vmem:[#allocation73_spill] sm:$0xff] %v4175_v34  ;;  %v4185_v50 = vsub.f32 %v483_v29, %v995_v32 }
 0x197   :  { %v2113_v25 = vadd.f32 %v2112_v23, %v5877_v49  ;;  %v2494_v11 = vadd.f32 %v2493_v40, %v5880_v55  ;;  %v485_v7 = vld [vmem:[#allocation2 + $0xd60] sm:$0xff]  ;;  %v486_v13 = vld [vmem:[#allocation2 + $0xd68] sm:$0xff]  ;;  %5883 = vst [vmem:[#allocation70_spill] sm:$0xff] %v4171_v45  ;;  %v996_v23 = vld [vmem:[#allocation5 + $0xd58] sm:$0xff] }
 0x198   :  { %v997_v49 = vld [vmem:[#allocation5 + $0xd60] sm:$0xff]  ;;  %v998_v35 = vld [vmem:[#allocation5 + $0xd68] sm:$0xff]  ;;  %v5885_v42 = vld [vmem:[#allocation116_spill] sm:$0xff]  ;;  %5889 = vst [vmem:[#allocation76_spill] sm:$0xff] %v4181_v61  ;;  %v4195_v29 = vsub.f32 %v484_v33, %v996_v23 }
 0x199   :  { %v2114_v15 = vadd.f32 %v2113_v25, %v5885_v42  ;;  %v5886_v8 = vld [vmem:[#allocation29_spill] sm:$0xff]  ;;  %v5887_v40 = vld [vmem:[#allocation30_spill] sm:$0xff]  ;;  %v487_v56 = vld [vmem:[#allocation2 + $0xd70] sm:$0xff]  ;;  %5890 = vst [vmem:[#allocation126_spill] sm:$0xff] %v4183_v9  ;;  %v4197_v32 = vsub.f32 %v485_v7, %v997_v49 }
 0x19a   :  { %v2241_v55 = vadd.f32 %v2240_v18, %v5886_v8  ;;  %v2368_v59 = vadd.f32 %v2367_v39, %v5887_v40  ;;  %v5888_v1 = vld [vmem:[#allocation125_spill] sm:$0xff]  ;;  %v489_v48 = vld [vmem:[#allocation2 + $0xd80] sm:$0xff]  ;;  %5891 = vst [vmem:[#allocation79_spill] sm:$0xff] %v4185_v50  ;;  %v999_v25 = vld [vmem:[#allocation5 + $0xd70] sm:$0xff] }
 0x19b   :  { %v2495_v41 = vadd.f32 %v2494_v11, %v5888_v1  ;;  %v488_v17 = vld [vmem:[#allocation2 + $0xd78] sm:$0xff]  ;;  %v1001_v18 = vld [vmem:[#allocation5 + $0xd80] sm:$0xff]  ;;  %v5893_v8 = vld [vmem:[#allocation32_spill] sm:$0xff]  ;;  %5897 = vst [vmem:[#allocation82_spill] sm:$0xff] %v4195_v29 }
 0x19c   :  { %v5892_v45 = vld [vmem:[#allocation129_spill] sm:$0xff]  ;;  %v2115_v39 = vadd.f32 %v2114_v15, %v5893_v8  ;;  %v5895_v11 = vld [vmem:[#allocation134_spill] sm:$0xff]  ;;  %v5896_v34 = vld [vmem:[#allocation35_spill] sm:$0xff]  ;;  %5898 = vst [vmem:[#allocation85_spill] sm:$0xff] %v4197_v32 }
 0x19d   :  { %v4189_v0 = vmul.f32 %v5892_v45, %v5892_v45  ;;  %v1000_v42 = vld [vmem:[#allocation5 + $0xd78] sm:$0xff]  ;;  %v2369_v6 = vadd.f32 %v2368_v59, %v5895_v11  ;;  %v2496_v26 = vadd.f32 %v2495_v41, %v5896_v34  ;;  %v490_v20 = vld [vmem:[#allocation2 + $0xd88] sm:$0xff]  ;;  %v491_v2 = vld [vmem:[#allocation2 + $0xd90] sm:$0xff]  ;;  %v4199_v45 = vsub.f32 %v486_v13, %v998_v35 }
 0x19e   :  { %v5894_v40 = vld [vmem:[#allocation33_spill] sm:$0xff]  ;;  %v5900_v50 = vld [vmem:[#allocation130_spill] sm:$0xff]  ;;  %v1002_v15 = vld [vmem:[#allocation5 + $0xd88] sm:$0xff]  ;;  %v2116_v59 = vadd.f32 %v2115_v39, %v3225_v12  ;;  %v4209_v13 = vsub.f32 %v487_v56, %v999_v25  ;;  %v4211_v35 = vsub.f32 %v488_v17, %v1000_v42 }
 0x19f   :  { %v2242_v1 = vadd.f32 %v2241_v55, %v5894_v40  ;;  %v492_v51 = vld [vmem:[#allocation2 + $0xd98] sm:$0xff]  ;;  %5899 = vst [vmem:[#allocation89_spill] sm:$0xff] %v4199_v45  ;;  %v4203_v9 = vmul.f32 %v5900_v50, %v5900_v50  ;;  %v1003_v8 = vld [vmem:[#allocation5 + $0xd90] sm:$0xff]  ;;  %v5901_v40 = vld [vmem:[#allocation143_spill] sm:$0xff]  ;;  %v2497_v33 = vadd.f32 %v2496_v26, %v3255_v22  ;;  %v4213_v50 = vsub.f32 %v489_v48, %v1001_v18 }
 0x1a0   :  { %v1004_v55 = vld [vmem:[#allocation5 + $0xd98] sm:$0xff]  ;;  %v5902_v41 = vld [vmem:[#allocation38_spill] sm:$0xff]  ;;  %v494_v7 = vld [vmem:[#allocation2 + $0xda8] sm:$0xff]  ;;  %5903 = vst [vmem:[#allocation127_spill] sm:$0xff] %v4209_v13  ;;  %v4223_v48 = vsub.f32 %v490_v20, %v1002_v15  ;;  %v4225_v18 = vsub.f32 %v491_v2, %v1003_v8 }
 0x1a1   :  { %v2243_v34 = vadd.f32 %v2242_v1, %v5901_v40  ;;  %v2370_v11 = vadd.f32 %v2369_v6, %v5902_v41  ;;  %v493_v23 = vld [vmem:[#allocation2 + $0xda0] sm:$0xff]  ;;  %v495_v49 = vld [vmem:[#allocation2 + $0xdb0] sm:$0xff]  ;;  %5904 = vst [vmem:[#allocation20_spill] sm:$0xff] %v4211_v35  ;;  %5905 = vst [vmem:[#allocation21_spill] sm:$0xff] %v4213_v50 }
 0x1a2   :  { %v5906_v45 = vld [vmem:[#allocation131_spill] sm:$0xff]  ;;  %v1005_v12 = vld [vmem:[#allocation5 + $0xda0] sm:$0xff]  ;;  %v1007_v1 = vld [vmem:[#allocation5 + $0xdb0] sm:$0xff]  ;;  %5910 = vst [vmem:[#allocation98_spill] sm:$0xff] %v4223_v48 }
 0x1a3   :  { %v4217_v32 = vmul.f32 %v5906_v45, %v5906_v45  ;;  %v1006_v39 = vld [vmem:[#allocation5 + $0xda8] sm:$0xff]  ;;  %v5907_v40 = vld [vmem:[#allocation152_spill] sm:$0xff]  ;;  %v5908_v41 = vld [vmem:[#allocation41_spill] sm:$0xff]  ;;  %v2371_v26 = vadd.f32 %v2370_v11, %v3285_v30  ;;  %5911 = vst [vmem:[#allocation23_spill] sm:$0xff] %v4225_v18  ;;  %v4227_v45 = vsub.f32 %v492_v51, %v1004_v55  ;;  %v4237_v51 = vsub.f32 %v493_v23, %v1005_v12 }
 0x1a4   :  { %v2117_v6 = vadd.f32 %v2116_v59, %v5907_v40  ;;  %v2244_v22 = vadd.f32 %v2243_v34, %v5908_v41  ;;  %v5909_v29 = vld [vmem:[#allocation161_spill] sm:$0xff]  ;;  %v497_v17 = vld [vmem:[#allocation2 + $0xdc0] sm:$0xff]  ;;  %v498_v42 = vld [vmem:[#allocation2 + $0xdc8] sm:$0xff]  ;;  %v4239_v55 = vsub.f32 %v494_v7, %v1006_v39 }
 0x1a5   :  { %v2498_v56 = vadd.f32 %v2497_v33, %v5909_v29  ;;  %v496_v25 = vld [vmem:[#allocation2 + $0xdb8] sm:$0xff]  ;;  %5912 = vst [vmem:[#allocation128_spill] sm:$0xff] %v4227_v45  ;;  %v5913_v50 = vld [vmem:[#allocation132_spill] sm:$0xff]  ;;  %v1009_v40 = vld [vmem:[#allocation5 + $0xdc0] sm:$0xff] }
 0x1a6   :  { %v4231_v35 = vmul.f32 %v5913_v50, %v5913_v50  ;;  %v1008_v59 = vld [vmem:[#allocation5 + $0xdb8] sm:$0xff]  ;;  %v1010_v34 = vld [vmem:[#allocation5 + $0xdc8] sm:$0xff]  ;;  %v5914_v41 = vld [vmem:[#allocation44_spill] sm:$0xff]  ;;  %v2245_v29 = vadd.f32 %v2244_v22, %v3315_v37  ;;  %5917 = vst [vmem:[#allocation24_spill] sm:$0xff] %v4237_v51  ;;  %v4241_v50 = vsub.f32 %v495_v49, %v1007_v1  ;;  %v4253_v1 = vsub.f32 %v497_v17, %v1009_v40 }
 0x1a7   :  { %v2118_v30 = vadd.f32 %v2117_v6, %v5914_v41  ;;  %v5915_v11 = vld [vmem:[#allocation170_spill] sm:$0xff]  ;;  %v5916_v13 = vld [vmem:[#allocation47_spill] sm:$0xff]  ;;  %v499_v15 = vld [vmem:[#allocation2 + $0xdd0] sm:$0xff]  ;;  %5918 = vst [vmem:[#allocation107_spill] sm:$0xff] %v4239_v55  ;;  %v4251_v49 = vsub.f32 %v496_v25, %v1008_v59 }
 0x1a8   :  { %v2372_v33 = vadd.f32 %v2371_v26, %v5915_v11  ;;  %v2499_v20 = vadd.f32 %v2498_v56, %v5916_v13  ;;  %v500_v2 = vld [vmem:[#allocation2 + $0xdd8] sm:$0xff]  ;;  %v501_v8 = vld [vmem:[#allocation2 + $0xde0] sm:$0xff]  ;;  %5919 = vst [vmem:[#allocation26_spill] sm:$0xff] %v4241_v50  ;;  %v1011_v6 = vld [vmem:[#allocation5 + $0xdd0] sm:$0xff] }
 0x1a9   :  { %v5920_v45 = vld [vmem:[#allocation133_spill] sm:$0xff]  ;;  %v1013_v37 = vld [vmem:[#allocation5 + $0xde0] sm:$0xff]  ;;  %v2119_v22 = vadd.f32 %v2118_v30, %v3345_v47  ;;  %v5921_v26 = vld [vmem:[#allocation179_spill] sm:$0xff]  ;;  %5923 = vst [vmem:[#allocation27_spill] sm:$0xff] %v4251_v49 }
 0x1aa   :  { %v4245_v18 = vmul.f32 %v5920_v45, %v5920_v45  ;;  %v1012_v41 = vld [vmem:[#allocation5 + $0xdd8] sm:$0xff]  ;;  %v2246_v13 = vadd.f32 %v2245_v29, %v5921_v26  ;;  %v5922_v56 = vld [vmem:[#allocation50_spill] sm:$0xff]  ;;  %v2500_v23 = vadd.f32 %v2499_v20, %v3375_v58  ;;  %v502_v12 = vld [vmem:[#allocation2 + $0xde8] sm:$0xff]  ;;  %5924 = vst [vmem:[#allocation116_spill] sm:$0xff] %v4253_v1  ;;  %v4255_v45 = vsub.f32 %v498_v42, %v1010_v34 }
 0x1ab   :  { %v2373_v11 = vadd.f32 %v2372_v33, %v5922_v56  ;;  %v503_v7 = vld [vmem:[#allocation2 + $0xdf0] sm:$0xff]  ;;  %v504_v39 = vld [vmem:[#allocation2 + $0xdf8] sm:$0xff]  ;;  %v5926_v50 = vld [vmem:[#allocation135_spill] sm:$0xff]  ;;  %v4265_v42 = vsub.f32 %v499_v15, %v1011_v6  ;;  %v4267_v34 = vsub.f32 %v500_v2, %v1012_v41 }
 0x1ac   :  { %5925 = vst [vmem:[#allocation29_spill] sm:$0xff] %v4255_v45  ;;  %v4259_v55 = vmul.f32 %v5926_v50, %v5926_v50  ;;  %v1014_v47 = vld [vmem:[#allocation5 + $0xde8] sm:$0xff]  ;;  %v1015_v30 = vld [vmem:[#allocation5 + $0xdf0] sm:$0xff]  ;;  %v1016_v29 = vld [vmem:[#allocation5 + $0xdf8] sm:$0xff]  ;;  %v4269_v50 = vsub.f32 %v501_v8, %v1013_v37 }
 0x1ad   :  { %v5927_v26 = vld [vmem:[#allocation188_spill] sm:$0xff]  ;;  %v5928_v56 = vld [vmem:[#allocation53_spill] sm:$0xff]  ;;  %v2374_v20 = vadd.f32 %v2373_v11, %v3405_v4  ;;  %v505_v59 = vld [vmem:[#allocation2 + $0xe00] sm:$0xff]  ;;  %5930 = vst [vmem:[#allocation30_spill] sm:$0xff] %v4265_v42  ;;  %v4279_v8 = vsub.f32 %v502_v12, %v1014_v47  ;;  %v4281_v37 = vsub.f32 %v503_v7, %v1015_v30 }
 0x1ae   :  { %v2120_v33 = vadd.f32 %v2119_v22, %v5927_v26  ;;  %v2247_v58 = vadd.f32 %v2246_v13, %v5928_v56  ;;  %v5929_v51 = vld [vmem:[#allocation197_spill] sm:$0xff]  ;;  %v506_v17 = vld [vmem:[#allocation2 + $0xe08] sm:$0xff]  ;;  %v507_v40 = vld [vmem:[#allocation2 + $0xe10] sm:$0xff]  ;;  %5931 = vst [vmem:[#allocation125_spill] sm:$0xff] %v4267_v34 }
 0x1af   :  { %v2501_v25 = vadd.f32 %v2500_v23, %v5929_v51  ;;  %5932 = vst [vmem:[#allocation129_spill] sm:$0xff] %v4269_v50  ;;  %v5933_v45 = vld [vmem:[#allocation136_spill] sm:$0xff]  ;;  %v1017_v22 = vld [vmem:[#allocation5 + $0xe00] sm:$0xff]  ;;  %v1018_v26 = vld [vmem:[#allocation5 + $0xe08] sm:$0xff] }
 0x1b0   :  { %v4273_v1 = vmul.f32 %v5933_v45, %v5933_v45  ;;  %v1019_v13 = vld [vmem:[#allocation5 + $0xe10] sm:$0xff]  ;;  %v2248_v51 = vadd.f32 %v2247_v58, %v3435_v14  ;;  %v5935_v11 = vld [vmem:[#allocation206_spill] sm:$0xff]  ;;  %v5936_v49 = vld [vmem:[#allocation59_spill] sm:$0xff]  ;;  %5937 = vst [vmem:[#allocation32_spill] sm:$0xff] %v4279_v8  ;;  %v4283_v45 = vsub.f32 %v504_v39, %v1016_v29  ;;  %v4293_v39 = vsub.f32 %v505_v59, %v1017_v22 }
 0x1b1   :  { %v5934_v56 = vld [vmem:[#allocation56_spill] sm:$0xff]  ;;  %v2375_v23 = vadd.f32 %v2374_v20, %v5935_v11  ;;  %v2502_v15 = vadd.f32 %v2501_v25, %v5936_v49  ;;  %v508_v6 = vld [vmem:[#allocation2 + $0xe18] sm:$0xff]  ;;  %v509_v2 = vld [vmem:[#allocation2 + $0xe20] sm:$0xff]  ;;  %5938 = vst [vmem:[#allocation33_spill] sm:$0xff] %v4281_v37  ;;  %v4295_v29 = vsub.f32 %v506_v17, %v1018_v26 }
 0x1b2   :  { %v2121_v4 = vadd.f32 %v2120_v33, %v5934_v56  ;;  %v510_v41 = vld [vmem:[#allocation2 + $0xe28] sm:$0xff]  ;;  %5939 = vst [vmem:[#allocation134_spill] sm:$0xff] %v4283_v45  ;;  %v5940_v50 = vld [vmem:[#allocation137_spill] sm:$0xff]  ;;  %v1021_v56 = vld [vmem:[#allocation5 + $0xe20] sm:$0xff] }
 0x1b3   :  { %v4287_v34 = vmul.f32 %v5940_v50, %v5940_v50  ;;  %v1020_v33 = vld [vmem:[#allocation5 + $0xe18] sm:$0xff]  ;;  %v1022_v14 = vld [vmem:[#allocation5 + $0xe28] sm:$0xff]  ;;  %v5942_v25 = vld [vmem:[#allocation62_spill] sm:$0xff]  ;;  %v2503_v12 = vadd.f32 %v2502_v15, %v3495_v31  ;;  %5943 = vst [vmem:[#allocation35_spill] sm:$0xff] %v4293_v39  ;;  %v4297_v50 = vsub.f32 %v507_v40, %v1019_v13  ;;  %v4309_v13 = vsub.f32 %v509_v2, %v1021_v56 }
 0x1b4   :  { %v2122_v58 = vadd.f32 %v2121_v4, %v3465_v24  ;;  %v5941_v20 = vld [vmem:[#allocation215_spill] sm:$0xff]  ;;  %v2376_v11 = vadd.f32 %v2375_v23, %v5942_v25  ;;  %v511_v47 = vld [vmem:[#allocation2 + $0xe30] sm:$0xff]  ;;  %v512_v7 = vld [vmem:[#allocation2 + $0xe38] sm:$0xff]  ;;  %5944 = vst [vmem:[#allocation130_spill] sm:$0xff] %v4295_v29  ;;  %v4307_v40 = vsub.f32 %v508_v6, %v1020_v33 }
 0x1b5   :  { %v2249_v49 = vadd.f32 %v2248_v51, %v5941_v20  ;;  %v513_v30 = vld [vmem:[#allocation2 + $0xe40] sm:$0xff]  ;;  %5945 = vst [vmem:[#allocation143_spill] sm:$0xff] %v4297_v50  ;;  %v1023_v24 = vld [vmem:[#allocation5 + $0xe30] sm:$0xff]  ;;  %v1024_v4 = vld [vmem:[#allocation5 + $0xe38] sm:$0xff] }
 0x1b6   :  { %v5946_v45 = vld [vmem:[#allocation138_spill] sm:$0xff]  ;;  %v5947_v20 = vld [vmem:[#allocation224_spill] sm:$0xff]  ;;  %v5948_v25 = vld [vmem:[#allocation65_spill] sm:$0xff]  ;;  %v2377_v15 = vadd.f32 %v2376_v11, %v3525_v38  ;;  %5950 = vst [vmem:[#allocation38_spill] sm:$0xff] %v4307_v40 }
 0x1b7   :  { %v4301_v37 = vmul.f32 %v5946_v45, %v5946_v45  ;;  %v1025_v51 = vld [vmem:[#allocation5 + $0xe40] sm:$0xff]  ;;  %v2123_v23 = vadd.f32 %v2122_v58, %v5947_v20  ;;  %v2250_v31 = vadd.f32 %v2249_v49, %v5948_v25  ;;  %v5949_v8 = vld [vmem:[#allocation233_spill] sm:$0xff]  ;;  %v514_v22 = vld [vmem:[#allocation2 + $0xe48] sm:$0xff]  ;;  %5951 = vst [vmem:[#allocation131_spill] sm:$0xff] %v4309_v13  ;;  %v4311_v45 = vsub.f32 %v510_v41, %v1022_v14 }
 0x1b8   :  { %v2504_v59 = vadd.f32 %v2503_v12, %v5949_v8  ;;  %v515_v17 = vld [vmem:[#allocation2 + $0xe50] sm:$0xff]  ;;  %v516_v26 = vld [vmem:[#allocation2 + $0xe58] sm:$0xff]  ;;  %v5953_v50 = vld [vmem:[#allocation139_spill] sm:$0xff]  ;;  %v4321_v41 = vsub.f32 %v511_v47, %v1023_v24  ;;  %v4323_v14 = vsub.f32 %v512_v7, %v1024_v4 }
 0x1b9   :  { %5952 = vst [vmem:[#allocation152_spill] sm:$0xff] %v4311_v45  ;;  %v4315_v29 = vmul.f32 %v5953_v50, %v5953_v50  ;;  %v1026_v58 = vld [vmem:[#allocation5 + $0xe48] sm:$0xff]  ;;  %v1027_v20 = vld [vmem:[#allocation5 + $0xe50] sm:$0xff]  ;;  %v1028_v49 = vld [vmem:[#allocation5 + $0xe58] sm:$0xff]  ;;  %v2251_v8 = vadd.f32 %v2250_v31, %v3555_v44  ;;  %v4325_v50 = vsub.f32 %v513_v30, %v1025_v51 }
 0x1ba   :  { %v5954_v25 = vld [vmem:[#allocation68_spill] sm:$0xff]  ;;  %v5955_v11 = vld [vmem:[#allocation242_spill] sm:$0xff]  ;;  %v5956_v39 = vld [vmem:[#allocation71_spill] sm:$0xff]  ;;  %5957 = vst [vmem:[#allocation41_spill] sm:$0xff] %v4321_v41  ;;  %v4335_v30 = vsub.f32 %v514_v22, %v1026_v58  ;;  %v4337_v51 = vsub.f32 %v515_v17, %v1027_v20 }
 0x1bb   :  { %v2124_v38 = vadd.f32 %v2123_v23, %v5954_v25  ;;  %v2378_v12 = vadd.f32 %v2377_v15, %v5955_v11  ;;  %v2505_v6 = vadd.f32 %v2504_v59, %v5956_v39  ;;  %v517_v33 = vld [vmem:[#allocation2 + $0xe60] sm:$0xff]  ;;  %v518_v2 = vld [vmem:[#allocation2 + $0xe68] sm:$0xff]  ;;  %v519_v56 = vld [vmem:[#allocation2 + $0xe70] sm:$0xff]  ;;  %5958 = vst [vmem:[#allocation161_spill] sm:$0xff] %v4323_v14 }
 0x1bc   :  { %5959 = vst [vmem:[#allocation132_spill] sm:$0xff] %v4325_v50  ;;  %v5960_v45 = vld [vmem:[#allocation140_spill] sm:$0xff]  ;;  %v1029_v23 = vld [vmem:[#allocation5 + $0xe60] sm:$0xff]  ;;  %v1030_v25 = vld [vmem:[#allocation5 + $0xe68] sm:$0xff] }
 0x1bd   :  { %v4329_v13 = vmul.f32 %v5960_v45, %v5960_v45  ;;  %v1031_v44 = vld [vmem:[#allocation5 + $0xe70] sm:$0xff]  ;;  %v2125_v31 = vadd.f32 %v2124_v38, %v3585_v52  ;;  %v5961_v15 = vld [vmem:[#allocation251_spill] sm:$0xff]  ;;  %v5962_v59 = vld [vmem:[#allocation74_spill] sm:$0xff]  ;;  %v2506_v47 = vadd.f32 %v2505_v6, %v3615_v53  ;;  %5963 = vst [vmem:[#allocation44_spill] sm:$0xff] %v4335_v30  ;;  %v4339_v45 = vsub.f32 %v516_v26, %v1028_v49 }
 0x1be   :  { %v2252_v39 = vadd.f32 %v2251_v8, %v5961_v15  ;;  %v2379_v11 = vadd.f32 %v2378_v12, %v5962_v59  ;;  %v520_v24 = vld [vmem:[#allocation2 + $0xe78] sm:$0xff]  ;;  %v521_v7 = vld [vmem:[#allocation2 + $0xe80] sm:$0xff]  ;;  %v522_v4 = vld [vmem:[#allocation2 + $0xe88] sm:$0xff]  ;;  %5964 = vst [vmem:[#allocation170_spill] sm:$0xff] %v4337_v51  ;;  %v4349_v26 = vsub.f32 %v517_v33, %v1029_v23  ;;  %v4351_v49 = vsub.f32 %v518_v2, %v1030_v25 }
 0x1bf   :  { %5965 = vst [vmem:[#allocation47_spill] sm:$0xff] %v4339_v45  ;;  %v5966_v50 = vld [vmem:[#allocation36_spill] sm:$0xff]  ;;  %v1032_v52 = vld [vmem:[#allocation5 + $0xe78] sm:$0xff]  ;;  %v1033_v38 = vld [vmem:[#allocation5 + $0xe80] sm:$0xff] }
 0x1c0   :  { %v4343_v14 = vmul.f32 %v5966_v50, %v5966_v50  ;;  %v1034_v8 = vld [vmem:[#allocation5 + $0xe88] sm:$0xff]  ;;  %v5967_v15 = vld [vmem:[#allocation260_spill] sm:$0xff]  ;;  %v5968_v59 = vld [vmem:[#allocation77_spill] sm:$0xff]  ;;  %v2380_v6 = vadd.f32 %v2379_v11, %v3645_v54  ;;  %5970 = vst [vmem:[#allocation133_spill] sm:$0xff] %v4349_v26  ;;  %v4353_v50 = vsub.f32 %v519_v56, %v1031_v44  ;;  %v4363_v56 = vsub.f32 %v520_v24, %v1032_v52 }
 0x1c1   :  { %v2126_v12 = vadd.f32 %v2125_v31, %v5967_v15  ;;  %v2253_v53 = vadd.f32 %v2252_v39, %v5968_v59  ;;  %v5969_v41 = vld [vmem:[#allocation269_spill] sm:$0xff]  ;;  %v523_v58 = vld [vmem:[#allocation2 + $0xe90] sm:$0xff]  ;;  %v525_v20 = vld [vmem:[#allocation2 + $0xea0] sm:$0xff]  ;;  %5971 = vst [vmem:[#allocation179_spill] sm:$0xff] %v4351_v49  ;;  %v4365_v44 = vsub.f32 %v521_v7, %v1033_v38 }
 0x1c2   :  { %v2507_v22 = vadd.f32 %v2506_v47, %v5969_v41  ;;  %v524_v17 = vld [vmem:[#allocation2 + $0xe98] sm:$0xff]  ;;  %5972 = vst [vmem:[#allocation50_spill] sm:$0xff] %v4353_v50  ;;  %v1035_v31 = vld [vmem:[#allocation5 + $0xe90] sm:$0xff]  ;;  %v1037_v39 = vld [vmem:[#allocation5 + $0xea0] sm:$0xff] }
 0x1c3   :  { %v5973_v45 = vld [vmem:[#allocation141_spill] sm:$0xff]  ;;  %v5974_v59 = vld [vmem:[#allocation80_spill] sm:$0xff]  ;;  %v2254_v41 = vadd.f32 %v2253_v53, %v3675_v62  ;;  %v5975_v11 = vld [vmem:[#allocation278_spill] sm:$0xff]  ;;  %5977 = vst [vmem:[#allocation135_spill] sm:$0xff] %v4363_v56 }
 0x1c4   :  { %v4357_v51 = vmul.f32 %v5973_v45, %v5973_v45  ;;  %v1036_v15 = vld [vmem:[#allocation5 + $0xe98] sm:$0xff]  ;;  %v2127_v54 = vadd.f32 %v2126_v12, %v5974_v59  ;;  %v2381_v47 = vadd.f32 %v2380_v6, %v5975_v11  ;;  %v5976_v30 = vld [vmem:[#allocation83_spill] sm:$0xff]  ;;  %v527_v2 = vld [vmem:[#allocation2 + $0xeb0] sm:$0xff]  ;;  %5978 = vst [vmem:[#allocation188_spill] sm:$0xff] %v4365_v44  ;;  %v4367_v45 = vsub.f32 %v522_v4, %v1034_v8 }
 0x1c5   :  { %v2508_v33 = vadd.f32 %v2507_v22, %v5976_v30  ;;  %v526_v23 = vld [vmem:[#allocation2 + $0xea8] sm:$0xff]  ;;  %v528_v25 = vld [vmem:[#allocation2 + $0xeb8] sm:$0xff]  ;;  %v5980_v50 = vld [vmem:[#allocation142_spill] sm:$0xff]  ;;  %v4377_v4 = vsub.f32 %v523_v58, %v1035_v31  ;;  %v4379_v8 = vsub.f32 %v524_v17, %v1036_v15 }
 0x1c6   :  { %5979 = vst [vmem:[#allocation53_spill] sm:$0xff] %v4367_v45  ;;  %v4371_v49 = vmul.f32 %v5980_v50, %v5980_v50  ;;  %v1038_v12 = vld [vmem:[#allocation5 + $0xea8] sm:$0xff]  ;;  %v1039_v59 = vld [vmem:[#allocation5 + $0xeb0] sm:$0xff]  ;;  %v1040_v62 = vld [vmem:[#allocation5 + $0xeb8] sm:$0xff]  ;;  %v4381_v50 = vsub.f32 %v525_v20, %v1037_v39 }
 0x1c7   :  { %v5981_v53 = vld [vmem:[#allocation84_spill] sm:$0xff]  ;;  %v5982_v11 = vld [vmem:[#allocation86_spill] sm:$0xff]  ;;  %v5983_v22 = vld [vmem:[#allocation87_spill] sm:$0xff]  ;;  %5985 = vst [vmem:[#allocation197_spill] sm:$0xff] %v4377_v4  ;;  %v4391_v20 = vsub.f32 %v526_v23, %v1038_v12  ;;  %v4393_v39 = vsub.f32 %v527_v2, %v1039_v59 }
 0x1c8   :  { %v2128_v6 = vadd.f32 %v2127_v54, %v5981_v53  ;;  %v2255_v30 = vadd.f32 %v2254_v41, %v5982_v11  ;;  %v2382_v26 = vadd.f32 %v2381_v47, %v5983_v22  ;;  %v5984_v40 = vld [vmem:[#allocation88_spill] sm:$0xff]  ;;  %v529_v52 = vld [vmem:[#allocation2 + $0xec0] sm:$0xff]  ;;  %v530_v7 = vld [vmem:[#allocation2 + $0xec8] sm:$0xff]  ;;  %5986 = vst [vmem:[#allocation136_spill] sm:$0xff] %v4379_v8 }
 0x1c9   :  { %v2509_v24 = vadd.f32 %v2508_v33, %v5984_v40  ;;  %v531_v38 = vld [vmem:[#allocation2 + $0xed0] sm:$0xff]  ;;  %5987 = vst [vmem:[#allocation56_spill] sm:$0xff] %v4381_v50  ;;  %v1041_v54 = vld [vmem:[#allocation5 + $0xec0] sm:$0xff]  ;;  %v1042_v53 = vld [vmem:[#allocation5 + $0xec8] sm:$0xff] }
 0x1ca   :  { %v5988_v45 = vld [vmem:[#allocation144_spill] sm:$0xff]  ;;  %v5989_v11 = vld [vmem:[#allocation90_spill] sm:$0xff]  ;;  %v5990_v22 = vld [vmem:[#allocation91_spill] sm:$0xff]  ;;  %v2383_v33 = vadd.f32 %v2382_v26, %v3765_v27  ;;  %5992 = vst [vmem:[#allocation206_spill] sm:$0xff] %v4391_v20 }
 0x1cb   :  { %v4385_v44 = vmul.f32 %v5988_v45, %v5988_v45  ;;  %v1043_v41 = vld [vmem:[#allocation5 + $0xed0] sm:$0xff]  ;;  %v2129_v47 = vadd.f32 %v2128_v6, %v5989_v11  ;;  %v2256_v40 = vadd.f32 %v2255_v30, %v5990_v22  ;;  %v5991_v56 = vld [vmem:[#allocation305_spill] sm:$0xff]  ;;  %v533_v17 = vld [vmem:[#allocation2 + $0xee0] sm:$0xff]  ;;  %5993 = vst [vmem:[#allocation59_spill] sm:$0xff] %v4393_v39  ;;  %v4395_v45 = vsub.f32 %v528_v25, %v1040_v62 }
 0x1cc   :  { %v2510_v58 = vadd.f32 %v2509_v24, %v5991_v56  ;;  %v532_v31 = vld [vmem:[#allocation2 + $0xed8] sm:$0xff]  ;;  %v534_v15 = vld [vmem:[#allocation2 + $0xee8] sm:$0xff]  ;;  %v1045_v11 = vld [vmem:[#allocation5 + $0xee0] sm:$0xff]  ;;  %v4405_v25 = vsub.f32 %v529_v52, %v1041_v54  ;;  %v4407_v62 = vsub.f32 %v530_v7, %v1042_v53 }
 0x1cd   :  { %5994 = vst [vmem:[#allocation137_spill] sm:$0xff] %v4395_v45  ;;  %v5995_v50 = vld [vmem:[#allocation145_spill] sm:$0xff]  ;;  %v1046_v30 = vld [vmem:[#allocation5 + $0xee8] sm:$0xff]  ;;  %v5997_v26 = vld [vmem:[#allocation94_spill] sm:$0xff] }
 0x1ce   :  { %v4399_v8 = vmul.f32 %v5995_v50, %v5995_v50  ;;  %v1044_v6 = vld [vmem:[#allocation5 + $0xed8] sm:$0xff]  ;;  %v2257_v56 = vadd.f32 %v2256_v40, %v5997_v26  ;;  %v5998_v24 = vld [vmem:[#allocation95_spill] sm:$0xff]  ;;  %v5999_v42 = vld [vmem:[#allocation96_spill] sm:$0xff]  ;;  %6000 = vst [vmem:[#allocation215_spill] sm:$0xff] %v4405_v25  ;;  %v4409_v50 = vsub.f32 %v531_v38, %v1043_v41  ;;  %v4421_v41 = vsub.f32 %v533_v17, %v1045_v11 }
 0x1cf   :  { %v5996_v22 = vld [vmem:[#allocation93_spill] sm:$0xff]  ;;  %v2384_v4 = vadd.f32 %v2383_v33, %v5998_v24  ;;  %v2511_v23 = vadd.f32 %v2510_v58, %v5999_v42  ;;  %v535_v12 = vld [vmem:[#allocation2 + $0xef0] sm:$0xff]  ;;  %v537_v59 = vld [vmem:[#allocation2 + $0xf00] sm:$0xff]  ;;  %6001 = vst [vmem:[#allocation62_spill] sm:$0xff] %v4407_v62  ;;  %v4419_v38 = vsub.f32 %v532_v31, %v1044_v6 }
 0x1d0   :  { %v2130_v27 = vadd.f32 %v2129_v47, %v5996_v22  ;;  %v536_v2 = vld [vmem:[#allocation2 + $0xef8] sm:$0xff]  ;;  %6002 = vst [vmem:[#allocation138_spill] sm:$0xff] %v4409_v50  ;;  %v6003_v45 = vld [vmem:[#allocation146_spill] sm:$0xff]  ;;  %v1047_v47 = vld [vmem:[#allocation5 + $0xef0] sm:$0xff] }
 0x1d1   :  { %v4413_v39 = vmul.f32 %v6003_v45, %v6003_v45  ;;  %v1048_v22 = vld [vmem:[#allocation5 + $0xef8] sm:$0xff]  ;;  %v1049_v40 = vld [vmem:[#allocation5 + $0xf00] sm:$0xff]  ;;  %v6005_v24 = vld [vmem:[#allocation99_spill] sm:$0xff]  ;;  %v2512_v52 = vadd.f32 %v2511_v23, %v3855_v57  ;;  %6007 = vst [vmem:[#allocation224_spill] sm:$0xff] %v4419_v38  ;;  %v4423_v45 = vsub.f32 %v534_v15, %v1046_v30  ;;  %v4433_v15 = vsub.f32 %v535_v12, %v1047_v47 }
 0x1d2   :  { %v6004_v26 = vld [vmem:[#allocation97_spill] sm:$0xff]  ;;  %v2258_v42 = vadd.f32 %v2257_v56, %v6005_v24  ;;  %v6006_v58 = vld [vmem:[#allocation100_spill] sm:$0xff]  ;;  %v538_v54 = vld [vmem:[#allocation2 + $0xf08] sm:$0xff]  ;;  %6008 = vst [vmem:[#allocation65_spill] sm:$0xff] %v4421_v41  ;;  %v4435_v30 = vsub.f32 %v536_v2, %v1048_v22 }
 0x1d3   :  { %v2131_v33 = vadd.f32 %v2130_v27, %v6004_v26  ;;  %v2385_v20 = vadd.f32 %v2384_v4, %v6006_v58  ;;  %v539_v7 = vld [vmem:[#allocation2 + $0xf10] sm:$0xff]  ;;  %v540_v53 = vld [vmem:[#allocation2 + $0xf18] sm:$0xff]  ;;  %6009 = vst [vmem:[#allocation233_spill] sm:$0xff] %v4423_v45  ;;  %v6010_v50 = vld [vmem:[#allocation147_spill] sm:$0xff] }
 0x1d4   :  { %v4427_v62 = vmul.f32 %v6010_v50, %v6010_v50  ;;  %v1050_v27 = vld [vmem:[#allocation5 + $0xf08] sm:$0xff]  ;;  %v1051_v26 = vld [vmem:[#allocation5 + $0xf10] sm:$0xff]  ;;  %v1052_v56 = vld [vmem:[#allocation5 + $0xf18] sm:$0xff]  ;;  %6015 = vst [vmem:[#allocation139_spill] sm:$0xff] %v4433_v15  ;;  %v4437_v50 = vsub.f32 %v537_v59, %v1049_v40 }
 0x1d5   :  { %v6011_v24 = vld [vmem:[#allocation332_spill] sm:$0xff]  ;;  %v6012_v58 = vld [vmem:[#allocation102_spill] sm:$0xff]  ;;  %v6013_v23 = vld [vmem:[#allocation103_spill] sm:$0xff]  ;;  %6016 = vst [vmem:[#allocation68_spill] sm:$0xff] %v4435_v30  ;;  %v4447_v59 = vsub.f32 %v538_v54, %v1050_v27  ;;  %v4449_v40 = vsub.f32 %v539_v7, %v1051_v26 }
 0x1d6   :  { %v2132_v4 = vadd.f32 %v2131_v33, %v6011_v24  ;;  %v2259_v57 = vadd.f32 %v2258_v42, %v6012_v58  ;;  %v2386_v25 = vadd.f32 %v2385_v20, %v6013_v23  ;;  %v6014_v48 = vld [vmem:[#allocation104_spill] sm:$0xff]  ;;  %v541_v6 = vld [vmem:[#allocation2 + $0xf20] sm:$0xff]  ;;  %v542_v17 = vld [vmem:[#allocation2 + $0xf28] sm:$0xff]  ;;  %6017 = vst [vmem:[#allocation242_spill] sm:$0xff] %v4437_v50 }
 0x1d7   :  { %v2513_v31 = vadd.f32 %v2512_v52, %v6014_v48  ;;  %v543_v11 = vld [vmem:[#allocation2 + $0xf30] sm:$0xff]  ;;  %v1053_v33 = vld [vmem:[#allocation5 + $0xf20] sm:$0xff]  ;;  %v1054_v24 = vld [vmem:[#allocation5 + $0xf28] sm:$0xff]  ;;  %6023 = vst [vmem:[#allocation71_spill] sm:$0xff] %v4449_v40 }
 0x1d8   :  { %v6018_v45 = vld [vmem:[#allocation148_spill] sm:$0xff]  ;;  %v6019_v58 = vld [vmem:[#allocation105_spill] sm:$0xff]  ;;  %v6020_v23 = vld [vmem:[#allocation106_spill] sm:$0xff] }
 0x1d9   :  { %v4441_v41 = vmul.f32 %v6018_v45, %v6018_v45  ;;  %v1055_v42 = vld [vmem:[#allocation5 + $0xf30] sm:$0xff]  ;;  %v2133_v20 = vadd.f32 %v2132_v4, %v6019_v58  ;;  %v2260_v48 = vadd.f32 %v2259_v57, %v6020_v23  ;;  %v6022_v61 = vld [vmem:[#allocation109_spill] sm:$0xff]  ;;  %v545_v2 = vld [vmem:[#allocation2 + $0xf40] sm:$0xff]  ;;  %v4451_v45 = vsub.f32 %v540_v53, %v1052_v56 }
 0x1da   :  { %v6021_v52 = vld [vmem:[#allocation108_spill] sm:$0xff]  ;;  %v2514_v12 = vadd.f32 %v2513_v31, %v6022_v61  ;;  %v544_v47 = vld [vmem:[#allocation2 + $0xf38] sm:$0xff]  ;;  %v546_v22 = vld [vmem:[#allocation2 + $0xf48] sm:$0xff]  ;;  %v4461_v53 = vsub.f32 %v541_v6, %v1053_v33  ;;  %v4463_v56 = vsub.f32 %v542_v17, %v1054_v24 }
 0x1db   :  { %v2387_v38 = vadd.f32 %v2386_v25, %v6021_v52  ;;  %6024 = vst [vmem:[#allocation140_spill] sm:$0xff] %v4451_v45  ;;  %v6025_v50 = vld [vmem:[#allocation149_spill] sm:$0xff]  ;;  %v1057_v58 = vld [vmem:[#allocation5 + $0xf40] sm:$0xff]  ;;  %v1058_v57 = vld [vmem:[#allocation5 + $0xf48] sm:$0xff]  ;;  %v2134_v25 = vadd.f32 %v2133_v20, %v3945_v63 }
 0x1dc   :  { %v4455_v30 = vmul.f32 %v6025_v50, %v6025_v50  ;;  %v1056_v4 = vld [vmem:[#allocation5 + $0xf38] sm:$0xff]  ;;  %v6026_v23 = vld [vmem:[#allocation359_spill] sm:$0xff]  ;;  %v6028_v15 = vld [vmem:[#allocation112_spill] sm:$0xff]  ;;  %v4465_v50 = vsub.f32 %v543_v11, %v1055_v42  ;;  %v4477_v42 = vsub.f32 %v545_v2, %v1057_v58 }
 0x1dd   :  { %v2261_v61 = vadd.f32 %v2260_v48, %v6026_v23  ;;  %v6027_v31 = vld [vmem:[#allocation111_spill] sm:$0xff]  ;;  %v2515_v54 = vadd.f32 %v2514_v12, %v6028_v15  ;;  %v547_v27 = vld [vmem:[#allocation2 + $0xf50] sm:$0xff]  ;;  %v548_v7 = vld [vmem:[#allocation2 + $0xf58] sm:$0xff]  ;;  %v4475_v11 = vsub.f32 %v544_v47, %v1056_v4 }
 0x1de   :  { %v2388_v52 = vadd.f32 %v2387_v38, %v6027_v31  ;;  %v549_v26 = vld [vmem:[#allocation2 + $0xf60] sm:$0xff]  ;;  %v6029_v45 = vld [vmem:[#allocation39_spill] sm:$0xff]  ;;  %v1059_v63 = vld [vmem:[#allocation5 + $0xf50] sm:$0xff]  ;;  %v2135_v38 = vadd.f32 %v2134_v25, %v3985_v5 }
 0x1df   :  { %v4469_v40 = vmul.f32 %v6029_v45, %v6029_v45  ;;  %v1060_v20 = vld [vmem:[#allocation5 + $0xf58] sm:$0xff]  ;;  %v1061_v48 = vld [vmem:[#allocation5 + $0xf60] sm:$0xff]  ;;  %v2262_v15 = vadd.f32 %v2261_v61, %v3995_v19  ;;  %v2516_v6 = vadd.f32 %v2515_v54, %v4015_v10  ;;  %v550_v33 = vld [vmem:[#allocation2 + $0xf68] sm:$0xff]  ;;  %v4479_v45 = vsub.f32 %v546_v22, %v1058_v57 }
 0x1e0   :  { %v2389_v12 = vadd.f32 %v2388_v52, %v4005_v16  ;;  %v551_v17 = vld [vmem:[#allocation2 + $0xf70] sm:$0xff]  ;;  %v552_v24 = vld [vmem:[#allocation2 + $0xf78] sm:$0xff]  ;;  %v6030_v23 = vld [vmem:[#allocation150_spill] sm:$0xff]  ;;  %v2136_v16 = vadd.f32 %v2135_v38, %v4025_v21  ;;  %v4489_v22 = vsub.f32 %v547_v27, %v1059_v63  ;;  %v4491_v57 = vsub.f32 %v548_v7, %v1060_v20 }
 0x1e1   :  { %v4483_v31 = vmul.f32 %v6030_v23, %v6030_v23  ;;  %v1062_v5 = vld [vmem:[#allocation5 + $0xf68] sm:$0xff]  ;;  %v1063_v25 = vld [vmem:[#allocation5 + $0xf70] sm:$0xff]  ;;  %v1064_v19 = vld [vmem:[#allocation5 + $0xf78] sm:$0xff]  ;;  %v2263_v10 = vadd.f32 %v2262_v15, %v4035_v43  ;;  %v2517_v47 = vadd.f32 %v2516_v6, %v4063_v60  ;;  %v4493_v52 = vsub.f32 %v549_v26, %v1061_v48 }
 0x1e2   :  { %v2390_v61 = vadd.f32 %v2389_v12, %v4045_v28  ;;  %v553_v4 = vld [vmem:[#allocation2 + $0xf80] sm:$0xff]  ;;  %v554_v2 = vld [vmem:[#allocation2 + $0xf88] sm:$0xff]  ;;  %v555_v58 = vld [vmem:[#allocation2 + $0xf90] sm:$0xff]  ;;  %6031 = vst [vmem:[#allocation251_spill] sm:$0xff] %v4489_v22  ;;  %v2137_v28 = vadd.f32 %v2136_v16, %v4077_v3  ;;  %v4503_v26 = vsub.f32 %v550_v33, %v1062_v5  ;;  %v4505_v48 = vsub.f32 %v551_v17, %v1063_v25 }
 0x1e3   :  { %6032 = vst [vmem:[#allocation74_spill] sm:$0xff] %v4491_v57  ;;  %6033 = vst [vmem:[#allocation36_spill] sm:$0xff] %v4493_v52  ;;  %v6034_v54 = vld [vmem:[#allocation151_spill] sm:$0xff]  ;;  %v1065_v21 = vld [vmem:[#allocation5 + $0xf80] sm:$0xff]  ;;  %v2264_v60 = vadd.f32 %v2263_v10, %v4091_v36 }
 0x1e4   :  { %v4497_v23 = vmul.f32 %v6034_v54, %v6034_v54  ;;  %v1066_v38 = vld [vmem:[#allocation5 + $0xf88] sm:$0xff]  ;;  %v1067_v43 = vld [vmem:[#allocation5 + $0xf90] sm:$0xff]  ;;  %v6036_v6 = vld [vmem:[#allocation37_spill] sm:$0xff]  ;;  %6037 = vst [vmem:[#allocation260_spill] sm:$0xff] %v4505_v48  ;;  %v4507_v54 = vsub.f32 %v552_v24, %v1064_v19  ;;  %v4517_v24 = vsub.f32 %v553_v4, %v1065_v21 }
 0x1e5   :  { %v6035_v15 = vld [vmem:[#allocation28_spill] sm:$0xff]  ;;  %v2518_v27 = vadd.f32 %v2517_v47, %v6036_v6  ;;  %v556_v63 = vld [vmem:[#allocation2 + $0xf98] sm:$0xff]  ;;  %v557_v7 = vld [vmem:[#allocation2 + $0xfa0] sm:$0xff]  ;;  %v4519_v19 = vsub.f32 %v554_v2, %v1066_v38 }
 0x1e6   :  { %v2391_v12 = vadd.f32 %v2390_v61, %v6035_v15  ;;  %v558_v20 = vld [vmem:[#allocation2 + $0xfa8] sm:$0xff]  ;;  %6038 = vst [vmem:[#allocation77_spill] sm:$0xff] %v4507_v54  ;;  %v6039_v52 = vld [vmem:[#allocation153_spill] sm:$0xff]  ;;  %v1069_v16 = vld [vmem:[#allocation5 + $0xfa0] sm:$0xff] }
 0x1e7   :  { %v4511_v57 = vmul.f32 %v6039_v52, %v6039_v52  ;;  %v1068_v3 = vld [vmem:[#allocation5 + $0xf98] sm:$0xff]  ;;  %v1070_v36 = vld [vmem:[#allocation5 + $0xfa8] sm:$0xff]  ;;  %v6040_v10 = vld [vmem:[#allocation46_spill] sm:$0xff]  ;;  %v4521_v52 = vsub.f32 %v555_v58, %v1067_v43  ;;  %v4533_v43 = vsub.f32 %v557_v7, %v1069_v16 }
 0x1e8   :  { %v2138_v61 = vadd.f32 %v2137_v28, %v6040_v10  ;;  %v6041_v15 = vld [vmem:[#allocation55_spill] sm:$0xff]  ;;  %v2392_v6 = vadd.f32 %v2391_v12, %v4161_v46  ;;  %v6042_v22 = vld [vmem:[#allocation73_spill] sm:$0xff]  ;;  %v559_v5 = vld [vmem:[#allocation2 + $0xfb0] sm:$0xff]  ;;  %v4531_v58 = vsub.f32 %v556_v63, %v1068_v3 }
 0x1e9   :  { %v2265_v47 = vadd.f32 %v2264_v60, %v6041_v15  ;;  %v2519_v33 = vadd.f32 %v2518_v27, %v6042_v22  ;;  %v560_v17 = vld [vmem:[#allocation2 + $0xfb8] sm:$0xff]  ;;  %v561_v25 = vld [vmem:[#allocation2 + $0xfc0] sm:$0xff]  ;;  %6043 = vst [vmem:[#allocation269_spill] sm:$0xff] %v4521_v52  ;;  %v1071_v28 = vld [vmem:[#allocation5 + $0xfb0] sm:$0xff]  ;;  %v4535_v27 = vsub.f32 %v558_v20, %v1070_v36 }
 0x1ea   :  { %v6044_v54 = vld [vmem:[#allocation154_spill] sm:$0xff]  ;;  %v1072_v10 = vld [vmem:[#allocation5 + $0xfb8] sm:$0xff]  ;;  %v2139_v46 = vadd.f32 %v2138_v61, %v4189_v0  ;;  %v2393_v12 = vadd.f32 %v2392_v6, %v4217_v32  ;;  %v562_v21 = vld [vmem:[#allocation2 + $0xfc8] sm:$0xff]  ;;  %v4543_v16 = vsub.f32 %v559_v5, %v1071_v28 }
 0x1eb   :  { %v4525_v48 = vmul.f32 %v6044_v54, %v6044_v54  ;;  %v1073_v60 = vld [vmem:[#allocation5 + $0xfc0] sm:$0xff]  ;;  %v2266_v22 = vadd.f32 %v2265_v47, %v4203_v9  ;;  %v2520_v4 = vadd.f32 %v2519_v33, %v4231_v35  ;;  %v563_v2 = vld [vmem:[#allocation2 + $0xfd0] sm:$0xff]  ;;  %v564_v38 = vld [vmem:[#allocation2 + $0xfd8] sm:$0xff]  ;;  %v4545_v20 = vsub.f32 %v560_v17, %v1072_v10 }
 0x1ec   :  { %v6045_v54 = vld [vmem:[#allocation155_spill] sm:$0xff]  ;;  %v1075_v0 = vld [vmem:[#allocation5 + $0xfd0] sm:$0xff]  ;;  %v1076_v61 = vld [vmem:[#allocation5 + $0xfd8] sm:$0xff]  ;;  %v2140_v9 = vadd.f32 %v2139_v46, %v4245_v18  ;;  %v2394_v35 = vadd.f32 %v2393_v12, %v4273_v1  ;;  %v4547_v36 = vsub.f32 %v561_v25, %v1073_v60 }
 0x1ed   :  { %v1758_v15 = vmul.f32 %v6045_v54, %v6045_v54  ;;  %v1074_v52 = vld [vmem:[#allocation5 + $0xfc8] sm:$0xff]  ;;  %v2267_v32 = vadd.f32 %v2266_v22, %v4259_v55  ;;  %v2521_v47 = vadd.f32 %v2520_v4, %v4287_v34  ;;  %v565_v63 = vld [vmem:[#allocation2 + $0xfe0] sm:$0xff]  ;;  %v567_v7 = vld [vmem:[#allocation2 + $0xff0] sm:$0xff]  ;;  %v4557_v17 = vsub.f32 %v563_v2, %v1075_v0 }
 0x1ee   :  { %v566_v3 = vld [vmem:[#allocation2 + $0xfe8] sm:$0xff]  ;;  %v6046_v6 = vld [vmem:[#allocation156_spill] sm:$0xff]  ;;  %v1077_v54 = vld [vmem:[#allocation5 + $0xfe0] sm:$0xff]  ;;  %v2141_v55 = vadd.f32 %v2140_v9, %v4301_v37  ;;  %v2395_v34 = vadd.f32 %v2394_v35, %v4329_v13  ;;  %v4555_v5 = vsub.f32 %v562_v21, %v1074_v52  ;;  %v4559_v25 = vsub.f32 %v564_v38, %v1076_v61 }
 0x1ef   :  { %v1759_v33 = vmul.f32 %v6046_v6, %v6046_v6  ;;  %v1078_v18 = vld [vmem:[#allocation5 + $0xfe8] sm:$0xff]  ;;  %v1079_v46 = vld [vmem:[#allocation5 + $0xff0] sm:$0xff]  ;;  %v2268_v1 = vadd.f32 %v2267_v32, %v4315_v29  ;;  %v2522_v22 = vadd.f32 %v2521_v47, %v4343_v14  ;;  %v6047_v28 = vld [vmem:[#allocation157_spill] sm:$0xff]  ;;  %v4567_v14 = vsub.f32 %v565_v63, %v1077_v54 }
 0x1f0   :  { %v1760_v10 = vmul.f32 %v6047_v28, %v6047_v28  ;;  %v568_v60 = vld [vmem:[#allocation2 + $0xff8] sm:$0xff]  ;;  %v2142_v4 = vadd.f32 %v2141_v55, %v4357_v51  ;;  %v2396_v29 = vadd.f32 %v2395_v34, %v4385_v44  ;;  %v4569_v52 = vsub.f32 %v566_v3, %v1078_v18  ;;  %v6048_v2 = vld [vmem:[#allocation158_spill] sm:$0xff]  ;;  %v6050_v32 = vld [vmem:[#allocation159_spill] sm:$0xff] }
 0x1f1   :  { %v1080_v12 = vld [vmem:[#allocation5 + $0xff8] sm:$0xff]  ;;  %v2269_v37 = vadd.f32 %v2268_v1, %v4371_v49  ;;  %v2523_v13 = vadd.f32 %v2522_v22, %v4399_v8  ;;  %v4571_v21 = vsub.f32 %v567_v7, %v1079_v46  ;;  %v1761_v38 = vmul.f32 %v6048_v2, %v6048_v2  ;;  %v6049_v8 = vld [vmem:[#allocation42_spill] sm:$0xff]  ;;  %v6051_v47 = vld [vmem:[#allocation160_spill] sm:$0xff] }
 0x1f2   :  { %v2143_v0 = vadd.f32 %v2142_v4, %v4413_v39  ;;  %v2397_v51 = vadd.f32 %v2396_v29, %v4441_v41  ;;  %v4579_v44 = vsub.f32 %v568_v60, %v1080_v12  ;;  %v1762_v9 = vmul.f32 %v6049_v8, %v6049_v8  ;;  %v6053_v6 = vld [vmem:[#allocation163_spill] sm:$0xff]  ;;  %v6054_v18 = vld [vmem:[#allocation164_spill] sm:$0xff]  ;;  %v6055_v55 = vld [vmem:[#allocation165_spill] sm:$0xff] }
 0x1f3   :  { %v2270_v61 = vadd.f32 %v2269_v37, %v4427_v62  ;;  %v2524_v49 = vadd.f32 %v2523_v13, %v4455_v30  ;;  %v1763_v35 = vmul.f32 %v6050_v32, %v6050_v32  ;;  %v1764_v63 = vmul.f32 %v6051_v47, %v6051_v47  ;;  %v6052_v30 = vld [vmem:[#allocation162_spill] sm:$0xff]  ;;  %v6057_v28 = vld [vmem:[#allocation167_spill] sm:$0xff]  ;;  %v6058_v12 = vld [vmem:[#allocation45_spill] sm:$0xff] }
 0x1f4   :  { %v2144_v3 = vadd.f32 %v2143_v0, %v4469_v40  ;;  %v2398_v62 = vadd.f32 %v2397_v51, %v4497_v23  ;;  %v1765_v7 = vmul.f32 %v6052_v30, %v6052_v30  ;;  %v1766_v54 = vmul.f32 %v6053_v6, %v6053_v6  ;;  %v6056_v23 = vld [vmem:[#allocation166_spill] sm:$0xff]  ;;  %v6059_v37 = vld [vmem:[#allocation168_spill] sm:$0xff]  ;;  %v6063_v8 = vld [vmem:[#allocation173_spill] sm:$0xff] }
 0x1f5   :  { %v2271_v39 = vadd.f32 %v2270_v61, %v4483_v31  ;;  %v2525_v41 = vadd.f32 %v2524_v49, %v4511_v57  ;;  %v1767_v46 = vmul.f32 %v6054_v18, %v6054_v18  ;;  %v1768_v1 = vmul.f32 %v6055_v55, %v6055_v55  ;;  %v6062_v51 = vld [vmem:[#allocation172_spill] sm:$0xff] }
 0x1f6   :  { %v2145_v40 = vadd.f32 %v2144_v3, %v4525_v48  ;;  %v2399_v31 = vadd.f32 %v2398_v62, %v1759_v33  ;;  %v1769_v57 = vmul.f32 %v6056_v23, %v6056_v23  ;;  %v1770_v60 = vmul.f32 %v6057_v28, %v6057_v28  ;;  %v6060_v48 = vld [vmem:[#allocation169_spill] sm:$0xff]  ;;  %v6061_v33 = vld [vmem:[#allocation171_spill] sm:$0xff]  ;;  %v6067_v6 = vld [vmem:[#allocation48_spill] sm:$0xff] }
 0x1f7   :  { %v2272_v34 = vadd.f32 %v2271_v39, %v1758_v15  ;;  %v2526_v22 = vadd.f32 %v2525_v41, %v1760_v10  ;;  %v1771_v4 = vmul.f32 %v6058_v12, %v6058_v12  ;;  %v1772_v29 = vmul.f32 %v6059_v37, %v6059_v37  ;;  %v6066_v41 = vld [vmem:[#allocation176_spill] sm:$0xff]  ;;  %v6071_v28 = vld [vmem:[#allocation181_spill] sm:$0xff] }
 0x1f8   :  { %v2146_v13 = vadd.f32 %v2145_v40, %v1761_v38  ;;  %v2400_v0 = vadd.f32 %v2399_v31, %v1763_v35  ;;  %v1773_v15 = vmul.f32 %v6060_v48, %v6060_v48  ;;  %v1774_v10 = vmul.f32 %v6061_v33, %v6061_v33  ;;  %v6064_v38 = vld [vmem:[#allocation174_spill] sm:$0xff]  ;;  %v6065_v35 = vld [vmem:[#allocation175_spill] sm:$0xff]  ;;  %v6075_v33 = vld [vmem:[#allocation185_spill] sm:$0xff] }
 0x1f9   :  { %v2273_v2 = vadd.f32 %v2272_v34, %v1762_v9  ;;  %v2527_v61 = vadd.f32 %v2526_v22, %v1764_v63  ;;  %v1775_v49 = vmul.f32 %v6062_v51, %v6062_v51  ;;  %v1776_v32 = vmul.f32 %v6063_v8, %v6063_v8  ;;  %v6070_v22 = vld [vmem:[#allocation180_spill] sm:$0xff] }
 0x1fa   :  { %v2147_v47 = vadd.f32 %v2146_v13, %v1765_v7  ;;  %v2401_v39 = vadd.f32 %v2400_v0, %v1767_v46  ;;  %v1777_v9 = vmul.f32 %v6064_v38, %v6064_v38  ;;  %v1778_v63 = vmul.f32 %v6065_v35, %v6065_v35  ;;  %v6068_v7 = vld [vmem:[#allocation177_spill] sm:$0xff]  ;;  %v6069_v46 = vld [vmem:[#allocation178_spill] sm:$0xff] }
 0x1fb   :  { %v2274_v3 = vadd.f32 %v2273_v2, %v1766_v54  ;;  %v2528_v62 = vadd.f32 %v2527_v61, %v1768_v1  ;;  %v1779_v30 = vmul.f32 %v6066_v41, %v6066_v41  ;;  %v1780_v18 = vmul.f32 %v6067_v6, %v6067_v6  ;;  %v6074_v61 = vld [vmem:[#allocation184_spill] sm:$0xff]  ;;  %v6079_v35 = vld [vmem:[#allocation189_spill] sm:$0xff] }
 0x1fc   :  { %v2148_v55 = vadd.f32 %v2147_v47, %v1769_v57  ;;  %v2402_v34 = vadd.f32 %v2401_v39, %v1771_v4  ;;  %v1781_v54 = vmul.f32 %v6068_v7, %v6068_v7  ;;  %v1782_v1 = vmul.f32 %v6069_v46, %v6069_v46  ;;  %v6072_v57 = vld [vmem:[#allocation182_spill] sm:$0xff]  ;;  %v6073_v4 = vld [vmem:[#allocation183_spill] sm:$0xff]  ;;  %v6083_v46 = vld [vmem:[#allocation193_spill] sm:$0xff] }
 0x1fd   :  { %v2275_v40 = vadd.f32 %v2274_v3, %v1770_v60  ;;  %v2529_v31 = vadd.f32 %v2528_v62, %v1772_v29  ;;  %v1783_v23 = vmul.f32 %v6070_v22, %v6070_v22  ;;  %v1784_v12 = vmul.f32 %v6071_v28, %v6071_v28  ;;  %v6078_v62 = vld [vmem:[#allocation187_spill] sm:$0xff] }
 0x1fe   :  { %v2149_v37 = vadd.f32 %v2148_v55, %v1773_v15  ;;  %v2403_v2 = vadd.f32 %v2402_v34, %v1775_v49  ;;  %v1785_v60 = vmul.f32 %v6072_v57, %v6072_v57  ;;  %v1786_v29 = vmul.f32 %v6073_v4, %v6073_v4  ;;  %v6076_v15 = vld [vmem:[#allocation51_spill] sm:$0xff]  ;;  %v6077_v49 = vld [vmem:[#allocation186_spill] sm:$0xff]  ;;  %v6087_v4 = vld [vmem:[#allocation196_spill] sm:$0xff] }
 0x1ff   :  { %v2276_v13 = vadd.f32 %v2275_v40, %v1774_v10  ;;  %v2530_v0 = vadd.f32 %v2529_v31, %v1776_v32  ;;  %v1787_v48 = vmul.f32 %v6074_v61, %v6074_v61  ;;  %v1788_v51 = vmul.f32 %v6075_v33, %v6075_v33  ;;  %v6082_v31 = vld [vmem:[#allocation192_spill] sm:$0xff] }
 0x200   :  { %v2150_v8 = vadd.f32 %v2149_v37, %v1777_v9  ;;  %v2404_v3 = vadd.f32 %v2403_v2, %v1779_v30  ;;  %v1789_v10 = vmul.f32 %v6076_v15, %v6076_v15  ;;  %v1790_v32 = vmul.f32 %v6077_v49, %v6077_v49  ;;  %v6080_v9 = vld [vmem:[#allocation190_spill] sm:$0xff]  ;;  %v6081_v30 = vld [vmem:[#allocation191_spill] sm:$0xff]  ;;  %v6091_v49 = vld [vmem:[#allocation201_spill] sm:$0xff] }
 0x201   :  { %v2277_v47 = vadd.f32 %v2276_v13, %v1778_v63  ;;  %v2531_v39 = vadd.f32 %v2530_v0, %v1780_v18  ;;  %v1791_v38 = vmul.f32 %v6078_v62, %v6078_v62  ;;  %v1792_v41 = vmul.f32 %v6079_v35, %v6079_v35  ;;  %v6086_v0 = vld [vmem:[#allocation195_spill] sm:$0xff] }
 0x202   :  { %v2151_v6 = vadd.f32 %v2150_v8, %v1781_v54  ;;  %v2405_v40 = vadd.f32 %v2404_v3, %v1783_v23  ;;  %v1793_v63 = vmul.f32 %v6080_v9, %v6080_v9  ;;  %v1794_v18 = vmul.f32 %v6081_v30, %v6081_v30  ;;  %v6084_v54 = vld [vmem:[#allocation194_spill] sm:$0xff]  ;;  %v6095_v30 = vld [vmem:[#allocation204_spill] sm:$0xff] }
 0x203   :  { %v2278_v55 = vadd.f32 %v2277_v47, %v1782_v1  ;;  %v2532_v34 = vadd.f32 %v2531_v39, %v1784_v12  ;;  %v1795_v7 = vmul.f32 %v6082_v31, %v6082_v31  ;;  %v1796_v22 = vmul.f32 %v6083_v46, %v6083_v46  ;;  %v6085_v23 = vld [vmem:[#allocation54_spill] sm:$0xff]  ;;  %v6090_v39 = vld [vmem:[#allocation200_spill] sm:$0xff] }
 0x204   :  { %v2152_v28 = vadd.f32 %v2151_v6, %v1785_v60  ;;  %v2406_v13 = vadd.f32 %v2405_v40, %v1787_v48  ;;  %v1797_v1 = vmul.f32 %v6084_v54, %v6084_v54  ;;  %v1798_v12 = vmul.f32 %v6085_v23, %v6085_v23  ;;  %v6088_v60 = vld [vmem:[#allocation198_spill] sm:$0xff]  ;;  %v6089_v48 = vld [vmem:[#allocation199_spill] sm:$0xff]  ;;  %v6099_v23 = vld [vmem:[#allocation209_spill] sm:$0xff] }
 0x205   :  { %v2279_v37 = vadd.f32 %v2278_v55, %v1786_v29  ;;  %v2533_v2 = vadd.f32 %v2532_v34, %v1788_v51  ;;  %v1799_v57 = vmul.f32 %v6086_v0, %v6086_v0  ;;  %v1800_v61 = vmul.f32 %v6087_v4, %v6087_v4  ;;  %v6094_v34 = vld [vmem:[#allocation57_spill] sm:$0xff] }
 0x206   :  { %v2153_v33 = vadd.f32 %v2152_v28, %v1789_v10  ;;  %v2407_v47 = vadd.f32 %v2406_v13, %v1791_v38  ;;  %v1801_v29 = vmul.f32 %v6088_v60, %v6088_v60  ;;  %v1802_v51 = vmul.f32 %v6089_v48, %v6089_v48  ;;  %v6092_v10 = vld [vmem:[#allocation202_spill] sm:$0xff]  ;;  %v6093_v38 = vld [vmem:[#allocation203_spill] sm:$0xff]  ;;  %v6103_v48 = vld [vmem:[#allocation60_spill] sm:$0xff] }
 0x207   :  { %v2280_v8 = vadd.f32 %v2279_v37, %v1790_v32  ;;  %v2534_v3 = vadd.f32 %v2533_v2, %v1792_v41  ;;  %v1803_v15 = vmul.f32 %v6090_v39, %v6090_v39  ;;  %v1804_v62 = vmul.f32 %v6091_v49, %v6091_v49  ;;  %v6098_v2 = vld [vmem:[#allocation208_spill] sm:$0xff] }
 0x208   :  { %v2154_v35 = vadd.f32 %v2153_v33, %v1793_v63  ;;  %v2408_v55 = vadd.f32 %v2407_v47, %v1795_v7  ;;  %v1805_v32 = vmul.f32 %v6092_v10, %v6092_v10  ;;  %v1806_v41 = vmul.f32 %v6093_v38, %v6093_v38  ;;  %v6096_v63 = vld [vmem:[#allocation205_spill] sm:$0xff]  ;;  %v6097_v7 = vld [vmem:[#allocation207_spill] sm:$0xff] }
 0x209   :  { %v2281_v6 = vadd.f32 %v2280_v8, %v1794_v18  ;;  %v2535_v40 = vadd.f32 %v2534_v3, %v1796_v22  ;;  %v1807_v9 = vmul.f32 %v6094_v34, %v6094_v34  ;;  %v1808_v31 = vmul.f32 %v6095_v30, %v6095_v30  ;;  %v6102_v3 = vld [vmem:[#allocation212_spill] sm:$0xff]  ;;  %v6107_v38 = vld [vmem:[#allocation217_spill] sm:$0xff] }
 0x20a   :  { %v2155_v46 = vadd.f32 %v2154_v35, %v1797_v1  ;;  %v2409_v37 = vadd.f32 %v2408_v55, %v1799_v57  ;;  %v1809_v18 = vmul.f32 %v6096_v63, %v6096_v63  ;;  %v1810_v22 = vmul.f32 %v6097_v7, %v6097_v7  ;;  %v6100_v1 = vld [vmem:[#allocation210_spill] sm:$0xff]  ;;  %v6101_v57 = vld [vmem:[#allocation211_spill] sm:$0xff]  ;;  %v6111_v7 = vld [vmem:[#allocation221_spill] sm:$0xff] }
 0x20b   :  { %v2282_v28 = vadd.f32 %v2281_v6, %v1798_v12  ;;  %v2536_v13 = vadd.f32 %v2535_v40, %v1800_v61  ;;  %v1811_v54 = vmul.f32 %v6098_v2, %v6098_v2  ;;  %v1812_v0 = vmul.f32 %v6099_v23, %v6099_v23  ;;  %v6106_v40 = vld [vmem:[#allocation216_spill] sm:$0xff] }
 0x20c   :  { %v2156_v4 = vadd.f32 %v2155_v46, %v1801_v29  ;;  %v2410_v8 = vadd.f32 %v2409_v37, %v1803_v15  ;;  %v1813_v12 = vmul.f32 %v6100_v1, %v6100_v1  ;;  %v1814_v61 = vmul.f32 %v6101_v57, %v6101_v57  ;;  %v6104_v29 = vld [vmem:[#allocation213_spill] sm:$0xff]  ;;  %v6105_v15 = vld [vmem:[#allocation214_spill] sm:$0xff] }
 0x20d   :  { %v2283_v33 = vadd.f32 %v2282_v28, %v1802_v51  ;;  %v2537_v47 = vadd.f32 %v2536_v13, %v1804_v62  ;;  %v1815_v60 = vmul.f32 %v6102_v3, %v6102_v3  ;;  %v1816_v39 = vmul.f32 %v6103_v48, %v6103_v48  ;;  %v6110_v13 = vld [vmem:[#allocation220_spill] sm:$0xff]  ;;  %v6115_v57 = vld [vmem:[#allocation225_spill] sm:$0xff] }
 0x20e   :  { %v2157_v49 = vadd.f32 %v2156_v4, %v1805_v32  ;;  %v2411_v6 = vadd.f32 %v2410_v8, %v1807_v9  ;;  %v1817_v51 = vmul.f32 %v6104_v29, %v6104_v29  ;;  %v1818_v62 = vmul.f32 %v6105_v15, %v6105_v15  ;;  %v6108_v32 = vld [vmem:[#allocation218_spill] sm:$0xff]  ;;  %v6109_v9 = vld [vmem:[#allocation219_spill] sm:$0xff]  ;;  %v6119_v15 = vld [vmem:[#allocation229_spill] sm:$0xff] }
 0x20f   :  { %v2284_v35 = vadd.f32 %v2283_v33, %v1806_v41  ;;  %v2538_v55 = vadd.f32 %v2537_v47, %v1808_v31  ;;  %v1819_v10 = vmul.f32 %v6106_v40, %v6106_v40  ;;  %v1820_v34 = vmul.f32 %v6107_v38, %v6107_v38  ;;  %v6114_v47 = vld [vmem:[#allocation223_spill] sm:$0xff] }
 0x210   :  { %v2158_v30 = vadd.f32 %v2157_v49, %v1809_v18  ;;  %v2412_v28 = vadd.f32 %v2411_v6, %v1811_v54  ;;  %v1821_v41 = vmul.f32 %v6108_v32, %v6108_v32  ;;  %v1822_v31 = vmul.f32 %v6109_v9, %v6109_v9  ;;  %v6112_v18 = vld [vmem:[#allocation63_spill] sm:$0xff]  ;;  %v6113_v54 = vld [vmem:[#allocation222_spill] sm:$0xff]  ;;  %v6123_v9 = vld [vmem:[#allocation232_spill] sm:$0xff] }
 0x211   :  { %v2285_v46 = vadd.f32 %v2284_v35, %v1810_v22  ;;  %v2539_v37 = vadd.f32 %v2538_v55, %v1812_v0  ;;  %v1823_v63 = vmul.f32 %v6110_v13, %v6110_v13  ;;  %v1824_v2 = vmul.f32 %v6111_v7, %v6111_v7  ;;  %v6118_v55 = vld [vmem:[#allocation228_spill] sm:$0xff] }
 0x212   :  { %v2159_v23 = vadd.f32 %v2158_v30, %v1813_v12  ;;  %v2413_v33 = vadd.f32 %v2412_v28, %v1815_v60  ;;  %v1825_v22 = vmul.f32 %v6112_v18, %v6112_v18  ;;  %v1826_v0 = vmul.f32 %v6113_v54, %v6113_v54  ;;  %v6116_v12 = vld [vmem:[#allocation226_spill] sm:$0xff]  ;;  %v6117_v60 = vld [vmem:[#allocation227_spill] sm:$0xff]  ;;  %v6127_v54 = vld [vmem:[#allocation237_spill] sm:$0xff] }
 0x213   :  { %v2286_v4 = vadd.f32 %v2285_v46, %v1814_v61  ;;  %v2540_v8 = vadd.f32 %v2539_v37, %v1816_v39  ;;  %v1827_v1 = vmul.f32 %v6114_v47, %v6114_v47  ;;  %v1828_v3 = vmul.f32 %v6115_v57, %v6115_v57  ;;  %v6122_v37 = vld [vmem:[#allocation231_spill] sm:$0xff] }
 0x214   :  { %v2160_v48 = vadd.f32 %v2159_v23, %v1817_v51  ;;  %v2414_v35 = vadd.f32 %v2413_v33, %v1819_v10  ;;  %v1829_v61 = vmul.f32 %v6116_v12, %v6116_v12  ;;  %v1830_v39 = vmul.f32 %v6117_v60, %v6117_v60  ;;  %v6120_v51 = vld [vmem:[#allocation230_spill] sm:$0xff]  ;;  %v6131_v60 = vld [vmem:[#allocation240_spill] sm:$0xff] }
 0x215   :  { %v2287_v49 = vadd.f32 %v2286_v4, %v1818_v62  ;;  %v2541_v6 = vadd.f32 %v2540_v8, %v1820_v34  ;;  %v1831_v29 = vmul.f32 %v6118_v55, %v6118_v55  ;;  %v1832_v40 = vmul.f32 %v6119_v15, %v6119_v15  ;;  %v6121_v10 = vld [vmem:[#allocation66_spill] sm:$0xff]  ;;  %v6126_v8 = vld [vmem:[#allocation236_spill] sm:$0xff] }
 0x216   :  { %v2161_v38 = vadd.f32 %v2160_v48, %v1821_v41  ;;  %v2415_v46 = vadd.f32 %v2414_v35, %v1823_v63  ;;  %v1833_v62 = vmul.f32 %v6120_v51, %v6120_v51  ;;  %v1834_v34 = vmul.f32 %v6121_v10, %v6121_v10  ;;  %v6124_v41 = vld [vmem:[#allocation234_spill] sm:$0xff]  ;;  %v6125_v63 = vld [vmem:[#allocation235_spill] sm:$0xff]  ;;  %v6135_v10 = vld [vmem:[#allocation245_spill] sm:$0xff] }
 0x217   :  { %v2288_v30 = vadd.f32 %v2287_v49, %v1822_v31  ;;  %v2542_v28 = vadd.f32 %v2541_v6, %v1824_v2  ;;  %v1835_v32 = vmul.f32 %v6122_v37, %v6122_v37  ;;  %v1836_v13 = vmul.f32 %v6123_v9, %v6123_v9  ;;  %v6130_v6 = vld [vmem:[#allocation69_spill] sm:$0xff] }
 0x218   :  { %v2162_v7 = vadd.f32 %v2161_v38, %v1825_v22  ;;  %v2416_v4 = vadd.f32 %v2415_v46, %v1827_v1  ;;  %v1837_v31 = vmul.f32 %v6124_v41, %v6124_v41  ;;  %v1838_v2 = vmul.f32 %v6125_v63, %v6125_v63  ;;  %v6128_v22 = vld [vmem:[#allocation238_spill] sm:$0xff]  ;;  %v6129_v1 = vld [vmem:[#allocation239_spill] sm:$0xff]  ;;  %v6139_v63 = vld [vmem:[#allocation72_spill] sm:$0xff] }
 0x219   :  { %v2289_v23 = vadd.f32 %v2288_v30, %v1826_v0  ;;  %v2543_v33 = vadd.f32 %v2542_v28, %v1828_v3  ;;  %v1839_v18 = vmul.f32 %v6126_v8, %v6126_v8  ;;  %v1840_v47 = vmul.f32 %v6127_v54, %v6127_v54  ;;  %v6134_v28 = vld [vmem:[#allocation244_spill] sm:$0xff] }
 0x21a   :  { %v2163_v57 = vadd.f32 %v2162_v7, %v1829_v61  ;;  %v2417_v49 = vadd.f32 %v2416_v4, %v1831_v29  ;;  %v1841_v0 = vmul.f32 %v6128_v22, %v6128_v22  ;;  %v1842_v3 = vmul.f32 %v6129_v1, %v6129_v1  ;;  %v6132_v61 = vld [vmem:[#allocation241_spill] sm:$0xff]  ;;  %v6133_v29 = vld [vmem:[#allocation243_spill] sm:$0xff] }
 0x21b   :  { %v2290_v48 = vadd.f32 %v2289_v23, %v1830_v39  ;;  %v2544_v35 = vadd.f32 %v2543_v33, %v1832_v40  ;;  %v1843_v12 = vmul.f32 %v6130_v6, %v6130_v6  ;;  %v1844_v55 = vmul.f32 %v6131_v60, %v6131_v60  ;;  %v6138_v33 = vld [vmem:[#allocation248_spill] sm:$0xff]  ;;  %v6143_v1 = vld [vmem:[#allocation253_spill] sm:$0xff] }
 0x21c   :  { %v2164_v15 = vadd.f32 %v2163_v57, %v1833_v62  ;;  %v2418_v30 = vadd.f32 %v2417_v49, %v1835_v32  ;;  %v1845_v39 = vmul.f32 %v6132_v61, %v6132_v61  ;;  %v1846_v40 = vmul.f32 %v6133_v29, %v6133_v29  ;;  %v6136_v62 = vld [vmem:[#allocation246_spill] sm:$0xff]  ;;  %v6137_v32 = vld [vmem:[#allocation247_spill] sm:$0xff]  ;;  %v6147_v29 = vld [vmem:[#allocation257_spill] sm:$0xff] }
 0x21d   :  { %v2291_v38 = vadd.f32 %v2290_v48, %v1834_v34  ;;  %v2545_v46 = vadd.f32 %v2544_v35, %v1836_v13  ;;  %v1847_v51 = vmul.f32 %v6134_v28, %v6134_v28  ;;  %v1848_v37 = vmul.f32 %v6135_v10, %v6135_v10  ;;  %v6142_v35 = vld [vmem:[#allocation252_spill] sm:$0xff] }
 0x21e   :  { %v2165_v9 = vadd.f32 %v2164_v15, %v1837_v31  ;;  %v2419_v23 = vadd.f32 %v2418_v30, %v1839_v18  ;;  %v1849_v34 = vmul.f32 %v6136_v62, %v6136_v62  ;;  %v1850_v13 = vmul.f32 %v6137_v32, %v6137_v32  ;;  %v6140_v31 = vld [vmem:[#allocation249_spill] sm:$0xff]  ;;  %v6141_v18 = vld [vmem:[#allocation250_spill] sm:$0xff] }
 0x21f   :  { %v2292_v7 = vadd.f32 %v2291_v38, %v1838_v2  ;;  %v2546_v4 = vadd.f32 %v2545_v46, %v1840_v47  ;;  %v1851_v41 = vmul.f32 %v6138_v33, %v6138_v33  ;;  %v1852_v8 = vmul.f32 %v6139_v63, %v6139_v63  ;;  %v6146_v46 = vld [vmem:[#allocation256_spill] sm:$0xff]  ;;  %v6151_v32 = vld [vmem:[#allocation261_spill] sm:$0xff] }
 0x220   :  { %v2166_v54 = vadd.f32 %v2165_v9, %v1841_v0  ;;  %v2420_v48 = vadd.f32 %v2419_v23, %v1843_v12  ;;  %v1853_v2 = vmul.f32 %v6140_v31, %v6140_v31  ;;  %v1854_v47 = vmul.f32 %v6141_v18, %v6141_v18  ;;  %v6144_v0 = vld [vmem:[#allocation254_spill] sm:$0xff]  ;;  %v6145_v12 = vld [vmem:[#allocation255_spill] sm:$0xff]  ;;  %v6155_v18 = vld [vmem:[#allocation265_spill] sm:$0xff] }
 0x221   :  { %v2293_v57 = vadd.f32 %v2292_v7, %v1842_v3  ;;  %v2547_v49 = vadd.f32 %v2546_v4, %v1844_v55  ;;  %v1855_v22 = vmul.f32 %v6142_v35, %v6142_v35  ;;  %v1856_v6 = vmul.f32 %v6143_v1, %v6143_v1  ;;  %v6150_v4 = vld [vmem:[#allocation259_spill] sm:$0xff] }
 0x222   :  { %v2167_v60 = vadd.f32 %v2166_v54, %v1845_v39  ;;  %v2421_v38 = vadd.f32 %v2420_v48, %v1847_v51  ;;  %v1857_v3 = vmul.f32 %v6144_v0, %v6144_v0  ;;  %v1858_v55 = vmul.f32 %v6145_v12, %v6145_v12  ;;  %v6148_v39 = vld [vmem:[#allocation75_spill] sm:$0xff]  ;;  %v6149_v51 = vld [vmem:[#allocation258_spill] sm:$0xff]  ;;  %v6159_v12 = vld [vmem:[#allocation268_spill] sm:$0xff] }
 0x223   :  { %v2294_v15 = vadd.f32 %v2293_v57, %v1846_v40  ;;  %v2548_v30 = vadd.f32 %v2547_v49, %v1848_v37  ;;  %v1859_v61 = vmul.f32 %v6146_v46, %v6146_v46  ;;  %v1860_v28 = vmul.f32 %v6147_v29, %v6147_v29  ;;  %v6154_v49 = vld [vmem:[#allocation264_spill] sm:$0xff] }
 0x224   :  { %v2168_v10 = vadd.f32 %v2167_v60, %v1849_v34  ;;  %v2422_v7 = vadd.f32 %v2421_v38, %v1851_v41  ;;  %v1861_v40 = vmul.f32 %v6148_v39, %v6148_v39  ;;  %v1862_v37 = vmul.f32 %v6149_v51, %v6149_v51  ;;  %v6152_v34 = vld [vmem:[#allocation262_spill] sm:$0xff]  ;;  %v6153_v41 = vld [vmem:[#allocation263_spill] sm:$0xff]  ;;  %v6163_v51 = vld [vmem:[#allocation273_spill] sm:$0xff] }
 0x225   :  { %v2295_v9 = vadd.f32 %v2294_v15, %v1850_v13  ;;  %v2549_v23 = vadd.f32 %v2548_v30, %v1852_v8  ;;  %v1863_v62 = vmul.f32 %v6150_v4, %v6150_v4  ;;  %v1864_v33 = vmul.f32 %v6151_v32, %v6151_v32  ;;  %v6158_v30 = vld [vmem:[#allocation267_spill] sm:$0xff] }
 0x226   :  { %v2169_v63 = vadd.f32 %v2168_v10, %v1853_v2  ;;  %v2423_v57 = vadd.f32 %v2422_v7, %v1855_v22  ;;  %v1865_v13 = vmul.f32 %v6152_v34, %v6152_v34  ;;  %v1866_v8 = vmul.f32 %v6153_v41, %v6153_v41  ;;  %v6156_v2 = vld [vmem:[#allocation266_spill] sm:$0xff]  ;;  %v6167_v41 = vld [vmem:[#allocation276_spill] sm:$0xff] }
 0x227   :  { %v2296_v54 = vadd.f32 %v2295_v9, %v1854_v47  ;;  %v2550_v48 = vadd.f32 %v2549_v23, %v1856_v6  ;;  %v1867_v31 = vmul.f32 %v6154_v49, %v6154_v49  ;;  %v1868_v35 = vmul.f32 %v6155_v18, %v6155_v18  ;;  %v6157_v22 = vld [vmem:[#allocation78_spill] sm:$0xff]  ;;  %v6162_v23 = vld [vmem:[#allocation272_spill] sm:$0xff] }
 0x228   :  { %v2170_v1 = vadd.f32 %v2169_v63, %v1857_v3  ;;  %v2424_v15 = vadd.f32 %v2423_v57, %v1859_v61  ;;  %v1869_v47 = vmul.f32 %v6156_v2, %v6156_v2  ;;  %v1870_v6 = vmul.f32 %v6157_v22, %v6157_v22  ;;  %v6160_v3 = vld [vmem:[#allocation270_spill] sm:$0xff]  ;;  %v6161_v61 = vld [vmem:[#allocation271_spill] sm:$0xff]  ;;  %v6171_v22 = vld [vmem:[#allocation281_spill] sm:$0xff] }
 0x229   :  { %v2297_v60 = vadd.f32 %v2296_v54, %v1858_v55  ;;  %v2551_v38 = vadd.f32 %v2550_v48, %v1860_v28  ;;  %v1871_v0 = vmul.f32 %v6158_v30, %v6158_v30  ;;  %v1872_v46 = vmul.f32 %v6159_v12, %v6159_v12  ;;  %v6166_v48 = vld [vmem:[#allocation81_spill] sm:$0xff] }
 0x22a   :  { %v2171_v29 = vadd.f32 %v2170_v1, %v1861_v40  ;;  %v2425_v9 = vadd.f32 %v2424_v15, %v1863_v62  ;;  %v1873_v55 = vmul.f32 %v6160_v3, %v6160_v3  ;;  %v1874_v28 = vmul.f32 %v6161_v61, %v6161_v61  ;;  %v6164_v40 = vld [vmem:[#allocation274_spill] sm:$0xff]  ;;  %v6165_v62 = vld [vmem:[#allocation275_spill] sm:$0xff]  ;;  %v6175_v61 = vld [vmem:[#allocation285_spill] sm:$0xff] }
 0x22b   :  { %v2298_v10 = vadd.f32 %v2297_v60, %v1862_v37  ;;  %v2552_v7 = vadd.f32 %v2551_v38, %v1864_v33  ;;  %v1875_v39 = vmul.f32 %v6162_v23, %v6162_v23  ;;  %v1876_v4 = vmul.f32 %v6163_v51, %v6163_v51  ;;  %v6170_v38 = vld [vmem:[#allocation280_spill] sm:$0xff] }
 0x22c   :  { %v2172_v32 = vadd.f32 %v2171_v29, %v1865_v13  ;;  %v2426_v54 = vadd.f32 %v2425_v9, %v1867_v31  ;;  %v1877_v37 = vmul.f32 %v6164_v40, %v6164_v40  ;;  %v1878_v33 = vmul.f32 %v6165_v62, %v6165_v62  ;;  %v6168_v13 = vld [vmem:[#allocation277_spill] sm:$0xff]  ;;  %v6169_v31 = vld [vmem:[#allocation279_spill] sm:$0xff] }
 0x22d   :  { %v2299_v63 = vadd.f32 %v2298_v10, %v1866_v8  ;;  %v2553_v57 = vadd.f32 %v2552_v7, %v1868_v35  ;;  %v1879_v34 = vmul.f32 %v6166_v48, %v6166_v48  ;;  %v1880_v49 = vmul.f32 %v6167_v41, %v6167_v41  ;;  %v6174_v7 = vld [vmem:[#allocation284_spill] sm:$0xff]  ;;  %v6179_v62 = vld [vmem:[#allocation289_spill] sm:$0xff] }
 0x22e   :  { %v2173_v18 = vadd.f32 %v2172_v32, %v1869_v47  ;;  %v2427_v60 = vadd.f32 %v2426_v54, %v1871_v0  ;;  %v1881_v8 = vmul.f32 %v6168_v13, %v6168_v13  ;;  %v1882_v35 = vmul.f32 %v6169_v31, %v6169_v31  ;;  %v6172_v47 = vld [vmem:[#allocation282_spill] sm:$0xff]  ;;  %v6173_v0 = vld [vmem:[#allocation283_spill] sm:$0xff]  ;;  %v6183_v31 = vld [vmem:[#allocation293_spill] sm:$0xff] }
 0x22f   :  { %v2300_v1 = vadd.f32 %v2299_v63, %v1870_v6  ;;  %v2554_v15 = vadd.f32 %v2553_v57, %v1872_v46  ;;  %v1883_v2 = vmul.f32 %v6170_v38, %v6170_v38  ;;  %v1884_v30 = vmul.f32 %v6171_v22, %v6171_v22  ;;  %v6178_v57 = vld [vmem:[#allocation288_spill] sm:$0xff] }
 0x230   :  { %v2174_v12 = vadd.f32 %v2173_v18, %v1873_v55  ;;  %v2428_v10 = vadd.f32 %v2427_v60, %v1875_v39  ;;  %v1885_v6 = vmul.f32 %v6172_v47, %v6172_v47  ;;  %v1886_v46 = vmul.f32 %v6173_v0, %v6173_v0  ;;  %v6176_v55 = vld [vmem:[#allocation286_spill] sm:$0xff]  ;;  %v6177_v39 = vld [vmem:[#allocation287_spill] sm:$0xff]  ;;  %v6187_v0 = vld [vmem:[#allocation297_spill] sm:$0xff] }
 0x231   :  { %v2301_v29 = vadd.f32 %v2300_v1, %v1874_v28  ;;  %v2555_v9 = vadd.f32 %v2554_v15, %v1876_v4  ;;  %v1887_v3 = vmul.f32 %v6174_v7, %v6174_v7  ;;  %v1888_v23 = vmul.f32 %v6175_v61, %v6175_v61  ;;  %v6182_v15 = vld [vmem:[#allocation292_spill] sm:$0xff] }
 0x232   :  { %v2175_v51 = vadd.f32 %v2174_v12, %v1877_v37  ;;  %v2429_v63 = vadd.f32 %v2428_v10, %v1879_v34  ;;  %v1889_v28 = vmul.f32 %v6176_v55, %v6176_v55  ;;  %v1890_v4 = vmul.f32 %v6177_v39, %v6177_v39  ;;  %v6180_v37 = vld [vmem:[#allocation290_spill] sm:$0xff]  ;;  %v6181_v34 = vld [vmem:[#allocation291_spill] sm:$0xff]  ;;  %v6191_v39 = vld [vmem:[#allocation301_spill] sm:$0xff] }
 0x233   :  { %v2302_v32 = vadd.f32 %v2301_v29, %v1878_v33  ;;  %v2556_v54 = vadd.f32 %v2555_v9, %v1880_v49  ;;  %v1891_v40 = vmul.f32 %v6178_v57, %v6178_v57  ;;  %v1892_v48 = vmul.f32 %v6179_v62, %v6179_v62  ;;  %v6186_v9 = vld [vmem:[#allocation296_spill] sm:$0xff] }
 0x234   :  { %v2176_v41 = vadd.f32 %v2175_v51, %v1881_v8  ;;  %v2430_v1 = vadd.f32 %v2429_v63, %v1883_v2  ;;  %v1893_v33 = vmul.f32 %v6180_v37, %v6180_v37  ;;  %v1894_v49 = vmul.f32 %v6181_v34, %v6181_v34  ;;  %v6184_v8 = vld [vmem:[#allocation294_spill] sm:$0xff]  ;;  %v6185_v2 = vld [vmem:[#allocation295_spill] sm:$0xff]  ;;  %v6195_v34 = vld [vmem:[#allocation304_spill] sm:$0xff] }
 0x235   :  { %v2303_v18 = vadd.f32 %v2302_v32, %v1882_v35  ;;  %v2557_v60 = vadd.f32 %v2556_v54, %v1884_v30  ;;  %v1895_v13 = vmul.f32 %v6182_v15, %v6182_v15  ;;  %v1896_v38 = vmul.f32 %v6183_v31, %v6183_v31  ;;  %v6190_v54 = vld [vmem:[#allocation300_spill] sm:$0xff] }
 0x236   :  { %v2177_v22 = vadd.f32 %v2176_v41, %v1885_v6  ;;  %v2431_v29 = vadd.f32 %v2430_v1, %v1887_v3  ;;  %v1897_v35 = vmul.f32 %v6184_v8, %v6184_v8  ;;  %v1898_v30 = vmul.f32 %v6185_v2, %v6185_v2  ;;  %v6188_v6 = vld [vmem:[#allocation298_spill] sm:$0xff]  ;;  %v6189_v3 = vld [vmem:[#allocation299_spill] sm:$0xff]  ;;  %v6199_v2 = vld [vmem:[#allocation309_spill] sm:$0xff] }
 0x237   :  { %v2304_v12 = vadd.f32 %v2303_v18, %v1886_v46  ;;  %v2558_v10 = vadd.f32 %v2557_v60, %v1888_v23  ;;  %v1899_v47 = vmul.f32 %v6186_v9, %v6186_v9  ;;  %v1900_v7 = vmul.f32 %v6187_v0, %v6187_v0  ;;  %v6194_v60 = vld [vmem:[#allocation303_spill] sm:$0xff] }
 0x238   :  { %v2178_v61 = vadd.f32 %v2177_v22, %v1889_v28  ;;  %v2432_v32 = vadd.f32 %v2431_v29, %v1891_v40  ;;  %v1901_v46 = vmul.f32 %v6188_v6, %v6188_v6  ;;  %v1902_v23 = vmul.f32 %v6189_v3, %v6189_v3  ;;  %v6192_v28 = vld [vmem:[#allocation302_spill] sm:$0xff]  ;;  %v6193_v40 = vld [vmem:[#allocation92_spill] sm:$0xff]  ;;  %v6203_v3 = vld [vmem:[#allocation313_spill] sm:$0xff] }
 0x239   :  { %v2305_v51 = vadd.f32 %v2304_v12, %v1890_v4  ;;  %v2559_v63 = vadd.f32 %v2558_v10, %v1892_v48  ;;  %v1903_v55 = vmul.f32 %v6190_v54, %v6190_v54  ;;  %v1904_v57 = vmul.f32 %v6191_v39, %v6191_v39  ;;  %v6198_v10 = vld [vmem:[#allocation308_spill] sm:$0xff] }
 0x23a   :  { %v2179_v62 = vadd.f32 %v2178_v61, %v1893_v33  ;;  %v2433_v18 = vadd.f32 %v2432_v32, %v1895_v13  ;;  %v1905_v4 = vmul.f32 %v6192_v28, %v6192_v28  ;;  %v1906_v48 = vmul.f32 %v6193_v40, %v6193_v40  ;;  %v6196_v33 = vld [vmem:[#allocation306_spill] sm:$0xff]  ;;  %v6197_v13 = vld [vmem:[#allocation307_spill] sm:$0xff]  ;;  %v6207_v40 = vld [vmem:[#allocation317_spill] sm:$0xff] }
 0x23b   :  { %v2306_v41 = vadd.f32 %v2305_v51, %v1894_v49  ;;  %v2560_v1 = vadd.f32 %v2559_v63, %v1896_v38  ;;  %v1907_v37 = vmul.f32 %v6194_v60, %v6194_v60  ;;  %v1908_v15 = vmul.f32 %v6195_v34, %v6195_v34  ;;  %v6202_v63 = vld [vmem:[#allocation312_spill] sm:$0xff] }
 0x23c   :  { %v2180_v31 = vadd.f32 %v2179_v62, %v1897_v35  ;;  %v2434_v12 = vadd.f32 %v2433_v18, %v1899_v47  ;;  %v1909_v49 = vmul.f32 %v6196_v33, %v6196_v33  ;;  %v1910_v38 = vmul.f32 %v6197_v13, %v6197_v13  ;;  %v6200_v35 = vld [vmem:[#allocation310_spill] sm:$0xff]  ;;  %v6201_v47 = vld [vmem:[#allocation311_spill] sm:$0xff]  ;;  %v6211_v13 = vld [vmem:[#allocation321_spill] sm:$0xff] }
 0x23d   :  { %v2307_v22 = vadd.f32 %v2306_v41, %v1898_v30  ;;  %v2561_v29 = vadd.f32 %v2560_v1, %v1900_v7  ;;  %v1911_v8 = vmul.f32 %v6198_v10, %v6198_v10  ;;  %v1912_v9 = vmul.f32 %v6199_v2, %v6199_v2  ;;  %v6206_v1 = vld [vmem:[#allocation316_spill] sm:$0xff] }
 0x23e   :  { %v2181_v0 = vadd.f32 %v2180_v31, %v1901_v46  ;;  %v2435_v51 = vadd.f32 %v2434_v12, %v1903_v55  ;;  %v1913_v30 = vmul.f32 %v6200_v35, %v6200_v35  ;;  %v1914_v7 = vmul.f32 %v6201_v47, %v6201_v47  ;;  %v6204_v46 = vld [vmem:[#allocation314_spill] sm:$0xff]  ;;  %v6205_v55 = vld [vmem:[#allocation315_spill] sm:$0xff]  ;;  %v6215_v47 = vld [vmem:[#allocation325_spill] sm:$0xff] }
 0x23f   :  { %v2308_v61 = vadd.f32 %v2307_v22, %v1902_v23  ;;  %v2562_v32 = vadd.f32 %v2561_v29, %v1904_v57  ;;  %v1915_v6 = vmul.f32 %v6202_v63, %v6202_v63  ;;  %v1916_v54 = vmul.f32 %v6203_v3, %v6203_v3  ;;  %v6210_v29 = vld [vmem:[#allocation320_spill] sm:$0xff] }
 0x240   :  { %v2182_v39 = vadd.f32 %v2181_v0, %v1905_v4  ;;  %v2436_v41 = vadd.f32 %v2435_v51, %v1907_v37  ;;  %v1917_v23 = vmul.f32 %v6204_v46, %v6204_v46  ;;  %v1918_v57 = vmul.f32 %v6205_v55, %v6205_v55  ;;  %v6208_v4 = vld [vmem:[#allocation318_spill] sm:$0xff]  ;;  %v6209_v37 = vld [vmem:[#allocation319_spill] sm:$0xff]  ;;  %v6219_v55 = vld [vmem:[#allocation329_spill] sm:$0xff] }
 0x241   :  { %v2309_v62 = vadd.f32 %v2308_v61, %v1906_v48  ;;  %v2563_v18 = vadd.f32 %v2562_v32, %v1908_v15  ;;  %v1919_v28 = vmul.f32 %v6206_v1, %v6206_v1  ;;  %v1920_v60 = vmul.f32 %v6207_v40, %v6207_v40  ;;  %v6214_v32 = vld [vmem:[#allocation324_spill] sm:$0xff] }
 0x242   :  { %v2183_v34 = vadd.f32 %v2182_v39, %v1909_v49  ;;  %v2437_v22 = vadd.f32 %v2436_v41, %v1911_v8  ;;  %v1921_v48 = vmul.f32 %v6208_v4, %v6208_v4  ;;  %v1922_v15 = vmul.f32 %v6209_v37, %v6209_v37  ;;  %v6212_v49 = vld [vmem:[#allocation322_spill] sm:$0xff]  ;;  %v6213_v8 = vld [vmem:[#allocation323_spill] sm:$0xff]  ;;  %v6223_v37 = vld [vmem:[#allocation333_spill] sm:$0xff] }
 0x243   :  { %v2310_v31 = vadd.f32 %v2309_v62, %v1910_v38  ;;  %v2564_v12 = vadd.f32 %v2563_v18, %v1912_v9  ;;  %v1923_v33 = vmul.f32 %v6210_v29, %v6210_v29  ;;  %v1924_v10 = vmul.f32 %v6211_v13, %v6211_v13  ;;  %v6218_v18 = vld [vmem:[#allocation328_spill] sm:$0xff] }
 0x244   :  { %v2184_v2 = vadd.f32 %v2183_v34, %v1913_v30  ;;  %v2438_v61 = vadd.f32 %v2437_v22, %v1915_v6  ;;  %v1925_v38 = vmul.f32 %v6212_v49, %v6212_v49  ;;  %v1926_v9 = vmul.f32 %v6213_v8, %v6213_v8  ;;  %v6216_v30 = vld [vmem:[#allocation326_spill] sm:$0xff]  ;;  %v6217_v6 = vld [vmem:[#allocation327_spill] sm:$0xff]  ;;  %v6227_v8 = vld [vmem:[#allocation337_spill] sm:$0xff] }
 0x245   :  { %v2311_v0 = vadd.f32 %v2310_v31, %v1914_v7  ;;  %v2565_v51 = vadd.f32 %v2564_v12, %v1916_v54  ;;  %v1927_v35 = vmul.f32 %v6214_v32, %v6214_v32  ;;  %v1928_v63 = vmul.f32 %v6215_v47, %v6215_v47  ;;  %v6222_v12 = vld [vmem:[#allocation331_spill] sm:$0xff] }
 0x246   :  { %v2185_v3 = vadd.f32 %v2184_v2, %v1917_v23  ;;  %v2439_v62 = vadd.f32 %v2438_v61, %v1919_v28  ;;  %v1929_v7 = vmul.f32 %v6216_v30, %v6216_v30  ;;  %v1930_v54 = vmul.f32 %v6217_v6, %v6217_v6  ;;  %v6220_v23 = vld [vmem:[#allocation101_spill] sm:$0xff]  ;;  %v6221_v28 = vld [vmem:[#allocation330_spill] sm:$0xff] }
 0x247   :  { %v2312_v39 = vadd.f32 %v2311_v0, %v1918_v57  ;;  %v2566_v41 = vadd.f32 %v2565_v51, %v1920_v60  ;;  %v1931_v46 = vmul.f32 %v6218_v18, %v6218_v18  ;;  %v1932_v1 = vmul.f32 %v6219_v55, %v6219_v55  ;;  %v6226_v51 = vld [vmem:[#allocation336_spill] sm:$0xff]  ;;  %v6231_v6 = vld [vmem:[#allocation341_spill] sm:$0xff] }
 0x248   :  { %v2186_v40 = vadd.f32 %v2185_v3, %v1921_v48  ;;  %v2440_v31 = vadd.f32 %v2439_v62, %v1923_v33  ;;  %v1933_v57 = vmul.f32 %v6220_v23, %v6220_v23  ;;  %v1934_v60 = vmul.f32 %v6221_v28, %v6221_v28  ;;  %v6224_v48 = vld [vmem:[#allocation334_spill] sm:$0xff]  ;;  %v6225_v33 = vld [vmem:[#allocation335_spill] sm:$0xff]  ;;  %v6235_v28 = vld [vmem:[#allocation345_spill] sm:$0xff] }
 0x249   :  { %v2313_v34 = vadd.f32 %v2312_v39, %v1922_v15  ;;  %v2567_v22 = vadd.f32 %v2566_v41, %v1924_v10  ;;  %v1935_v4 = vmul.f32 %v6222_v12, %v6222_v12  ;;  %v1936_v29 = vmul.f32 %v6223_v37, %v6223_v37  ;;  %v6230_v41 = vld [vmem:[#allocation340_spill] sm:$0xff] }
 0x24a   :  { %v2187_v13 = vadd.f32 %v2186_v40, %v1925_v38  ;;  %v2441_v0 = vadd.f32 %v2440_v31, %v1927_v35  ;;  %v1937_v15 = vmul.f32 %v6224_v48, %v6224_v48  ;;  %v1938_v10 = vmul.f32 %v6225_v33, %v6225_v33  ;;  %v6228_v38 = vld [vmem:[#allocation338_spill] sm:$0xff]  ;;  %v6229_v35 = vld [vmem:[#allocation339_spill] sm:$0xff]  ;;  %v6239_v33 = vld [vmem:[#allocation349_spill] sm:$0xff] }
 0x24b   :  { %v2314_v2 = vadd.f32 %v2313_v34, %v1926_v9  ;;  %v2568_v61 = vadd.f32 %v2567_v22, %v1928_v63  ;;  %v1939_v49 = vmul.f32 %v6226_v51, %v6226_v51  ;;  %v1940_v32 = vmul.f32 %v6227_v8, %v6227_v8  ;;  %v6234_v22 = vld [vmem:[#allocation344_spill] sm:$0xff] }
 0x24c   :  { %v2188_v47 = vadd.f32 %v2187_v13, %v1929_v7  ;;  %v2442_v39 = vadd.f32 %v2441_v0, %v1931_v46  ;;  %v1941_v9 = vmul.f32 %v6228_v38, %v6228_v38  ;;  %v1942_v63 = vmul.f32 %v6229_v35, %v6229_v35  ;;  %v6232_v7 = vld [vmem:[#allocation342_spill] sm:$0xff]  ;;  %v6233_v46 = vld [vmem:[#allocation343_spill] sm:$0xff]  ;;  %v6243_v35 = vld [vmem:[#allocation353_spill] sm:$0xff] }
 0x24d   :  { %v2315_v3 = vadd.f32 %v2314_v2, %v1930_v54  ;;  %v2569_v62 = vadd.f32 %v2568_v61, %v1932_v1  ;;  %v1943_v30 = vmul.f32 %v6230_v41, %v6230_v41  ;;  %v1944_v18 = vmul.f32 %v6231_v6, %v6231_v6  ;;  %v6238_v61 = vld [vmem:[#allocation348_spill] sm:$0xff] }
 0x24e   :  { %v2189_v55 = vadd.f32 %v2188_v47, %v1933_v57  ;;  %v2443_v34 = vadd.f32 %v2442_v39, %v1935_v4  ;;  %v1945_v54 = vmul.f32 %v6232_v7, %v6232_v7  ;;  %v1946_v1 = vmul.f32 %v6233_v46, %v6233_v46  ;;  %v6236_v57 = vld [vmem:[#allocation346_spill] sm:$0xff]  ;;  %v6237_v4 = vld [vmem:[#allocation347_spill] sm:$0xff] }
 0x24f   :  { %v2316_v40 = vadd.f32 %v2315_v3, %v1934_v60  ;;  %v2570_v31 = vadd.f32 %v2569_v62, %v1936_v29  ;;  %v1947_v23 = vmul.f32 %v6234_v22, %v6234_v22  ;;  %v1948_v12 = vmul.f32 %v6235_v28, %v6235_v28  ;;  %v6242_v62 = vld [vmem:[#allocation352_spill] sm:$0xff]  ;;  %v6247_v46 = vld [vmem:[#allocation110_spill] sm:$0xff] }
 0x250   :  { %v2190_v37 = vadd.f32 %v2189_v55, %v1937_v15  ;;  %v2444_v2 = vadd.f32 %v2443_v34, %v1939_v49  ;;  %v1949_v60 = vmul.f32 %v6236_v57, %v6236_v57  ;;  %v1950_v29 = vmul.f32 %v6237_v4, %v6237_v4  ;;  %v6240_v15 = vld [vmem:[#allocation350_spill] sm:$0xff]  ;;  %v6241_v49 = vld [vmem:[#allocation351_spill] sm:$0xff]  ;;  %v6251_v4 = vld [vmem:[#allocation361_spill] sm:$0xff] }
 0x251   :  { %v2317_v13 = vadd.f32 %v2316_v40, %v1938_v10  ;;  %v2571_v0 = vadd.f32 %v2570_v31, %v1940_v32  ;;  %v1951_v48 = vmul.f32 %v6238_v61, %v6238_v61  ;;  %v1952_v51 = vmul.f32 %v6239_v33, %v6239_v33  ;;  %v6246_v31 = vld [vmem:[#allocation356_spill] sm:$0xff] }
 0x252   :  { %v2191_v8 = vadd.f32 %v2190_v37, %v1941_v9  ;;  %v2445_v3 = vadd.f32 %v2444_v2, %v1943_v30  ;;  %v1953_v10 = vmul.f32 %v6240_v15, %v6240_v15  ;;  %v1954_v32 = vmul.f32 %v6241_v49, %v6241_v49  ;;  %v6244_v9 = vld [vmem:[#allocation354_spill] sm:$0xff]  ;;  %v6245_v30 = vld [vmem:[#allocation355_spill] sm:$0xff]  ;;  %v6255_v49 = vld [vmem:[#allocation365_spill] sm:$0xff] }
 0x253   :  { %v2318_v47 = vadd.f32 %v2317_v13, %v1942_v63  ;;  %v2572_v39 = vadd.f32 %v2571_v0, %v1944_v18  ;;  %v1955_v38 = vmul.f32 %v6242_v62, %v6242_v62  ;;  %v1956_v41 = vmul.f32 %v6243_v35, %v6243_v35  ;;  %v6250_v0 = vld [vmem:[#allocation360_spill] sm:$0xff] }
 0x254   :  { %v2192_v6 = vadd.f32 %v2191_v8, %v1945_v54  ;;  %v2446_v40 = vadd.f32 %v2445_v3, %v1947_v23  ;;  %v1957_v63 = vmul.f32 %v6244_v9, %v6244_v9  ;;  %v1958_v18 = vmul.f32 %v6245_v30, %v6245_v30  ;;  %v6248_v54 = vld [vmem:[#allocation357_spill] sm:$0xff]  ;;  %v6249_v23 = vld [vmem:[#allocation358_spill] sm:$0xff] }
 0x255   :  { %v2319_v55 = vadd.f32 %v2318_v47, %v1946_v1  ;;  %v2573_v34 = vadd.f32 %v2572_v39, %v1948_v12  ;;  %v1959_v7 = vmul.f32 %v6246_v31, %v6246_v31  ;;  %v1960_v22 = vmul.f32 %v6247_v46, %v6247_v46  ;;  %v6254_v39 = vld [vmem:[#allocation364_spill] sm:$0xff]  ;;  %v6259_v30 = vld [vmem:[#allocation113_spill] sm:$0xff] }
 0x256   :  { %v2193_v28 = vadd.f32 %v2192_v6, %v1949_v60  ;;  %v2447_v13 = vadd.f32 %v2446_v40, %v1951_v48  ;;  %v1961_v1 = vmul.f32 %v6248_v54, %v6248_v54  ;;  %v1962_v12 = vmul.f32 %v6249_v23, %v6249_v23  ;;  %v6252_v60 = vld [vmem:[#allocation362_spill] sm:$0xff]  ;;  %v6253_v48 = vld [vmem:[#allocation363_spill] sm:$0xff] }
 0x257   :  { %v2320_v37 = vadd.f32 %v2319_v55, %v1950_v29  ;;  %v2574_v2 = vadd.f32 %v2573_v34, %v1952_v51  ;;  %v1963_v57 = vmul.f32 %v6250_v0, %v6250_v0  ;;  %v1964_v61 = vmul.f32 %v6251_v4, %v6251_v4  ;;  %v6258_v34 = vld [vmem:[#allocation368_spill] sm:$0xff]  ;;  %v6263_v23 = vld [vmem:[#allocation371_spill] sm:$0xff] }
 0x258   :  { %v2194_v33 = vadd.f32 %v2193_v28, %v1953_v10  ;;  %v2448_v47 = vadd.f32 %v2447_v13, %v1955_v38  ;;  %v1965_v29 = vmul.f32 %v6252_v60, %v6252_v60  ;;  %v1966_v51 = vmul.f32 %v6253_v48, %v6253_v48  ;;  %v6256_v10 = vld [vmem:[#allocation366_spill] sm:$0xff]  ;;  %v6257_v38 = vld [vmem:[#allocation367_spill] sm:$0xff] }
 0x259   :  { %v2321_v8 = vadd.f32 %v2320_v37, %v1954_v32  ;;  %v2575_v3 = vadd.f32 %v2574_v2, %v1956_v41  ;;  %v1967_v15 = vmul.f32 %v6254_v39, %v6254_v39  ;;  %v1968_v62 = vmul.f32 %v6255_v49, %v6255_v49  ;;  %v6262_v2 = vld [vmem:[#allocation114_spill] sm:$0xff] }
 0x25a   :  { %v2195_v35 = vadd.f32 %v2194_v33, %v1957_v63  ;;  %v2449_v55 = vadd.f32 %v2448_v47, %v1959_v7  ;;  %v1969_v32 = vmul.f32 %v6256_v10, %v6256_v10  ;;  %v1970_v41 = vmul.f32 %v6257_v38, %v6257_v38  ;;  %v6260_v63 = vld [vmem:[#allocation369_spill] sm:$0xff]  ;;  %v6261_v7 = vld [vmem:[#allocation370_spill] sm:$0xff] }
 0x25b   :  { %v2322_v6 = vadd.f32 %v2321_v8, %v1958_v18  ;;  %v2576_v40 = vadd.f32 %v2575_v3, %v1960_v22  ;;  %v1971_v9 = vmul.f32 %v6258_v34, %v6258_v34  ;;  %v1972_v31 = vmul.f32 %v6259_v30, %v6259_v30  ;;  %v6266_v3 = vld [vmem:[#allocation373_spill] sm:$0xff]  ;;  %v6267_v48 = vld [vmem:[#allocation374_spill] sm:$0xff] }
 0x25c   :  { %v2196_v46 = vadd.f32 %v2195_v35, %v1961_v1  ;;  %v2450_v37 = vadd.f32 %v2449_v55, %v1963_v57  ;;  %v1973_v18 = vmul.f32 %v6260_v63, %v6260_v63  ;;  %v1974_v22 = vmul.f32 %v6261_v7, %v6261_v7  ;;  %v6264_v1 = vld [vmem:[#allocation372_spill] sm:$0xff]  ;;  %v6265_v57 = vld [vmem:[#allocation115_spill] sm:$0xff]  ;;  %v6271_v38 = vld [vmem:[#allocation118_spill] sm:$0xff] }
 0x25d   :  { %v2323_v28 = vadd.f32 %v2322_v6, %v1962_v12  ;;  %v2577_v13 = vadd.f32 %v2576_v40, %v1964_v61  ;;  %v1975_v54 = vmul.f32 %v6262_v2, %v6262_v2  ;;  %v1976_v0 = vmul.f32 %v6263_v23, %v6263_v23  ;;  %v6270_v40 = vld [vmem:[#allocation376_spill] sm:$0xff]  ;;  %v6275_v7 = vld [vmem:[#allocation379_spill] sm:$0xff] }
 0x25e   :  { %v2197_v4 = vadd.f32 %v2196_v46, %v1965_v29  ;;  %v2451_v8 = vadd.f32 %v2450_v37, %v1967_v15  ;;  %v1977_v12 = vmul.f32 %v6264_v1, %v6264_v1  ;;  %v1978_v61 = vmul.f32 %v6265_v57, %v6265_v57  ;;  %v6268_v29 = vld [vmem:[#allocation117_spill] sm:$0xff]  ;;  %v6269_v15 = vld [vmem:[#allocation375_spill] sm:$0xff]  ;;  %v6279_v57 = vld [vmem:[#allocation12_spill] sm:$0xff] }
 0x25f   :  { %v2324_v33 = vadd.f32 %v2323_v28, %v1966_v51  ;;  %v2578_v47 = vadd.f32 %v2577_v13, %v1968_v62  ;;  %v1979_v60 = vmul.f32 %v6266_v3, %v6266_v3  ;;  %v1980_v39 = vmul.f32 %v6267_v48, %v6267_v48  ;;  %v6274_v13 = vld [vmem:[#allocation119_spill] sm:$0xff] }
 0x260   :  { %v2198_v49 = vadd.f32 %v2197_v4, %v1969_v32  ;;  %v2452_v6 = vadd.f32 %v2451_v8, %v1971_v9  ;;  %v1981_v51 = vmul.f32 %v6268_v29, %v6268_v29  ;;  %v1982_v62 = vmul.f32 %v6269_v15, %v6269_v15  ;;  %v6272_v32 = vld [vmem:[#allocation377_spill] sm:$0xff]  ;;  %v6273_v9 = vld [vmem:[#allocation378_spill] sm:$0xff] }
 0x261   :  { %v2325_v35 = vadd.f32 %v2324_v33, %v1970_v41  ;;  %v2579_v55 = vadd.f32 %v2578_v47, %v1972_v31  ;;  %v1983_v10 = vmul.f32 %v6270_v40, %v6270_v40  ;;  %v1984_v34 = vmul.f32 %v6271_v38, %v6271_v38  ;;  %v6278_v47 = vld [vmem:[#allocation15_spill] sm:$0xff]  ;;  %v6283_v15 = vld [vmem:[#allocation14_spill] sm:$0xff] }
 0x262   :  { %v2199_v30 = vadd.f32 %v2198_v49, %v1973_v18  ;;  %v2453_v28 = vadd.f32 %v2452_v6, %v1975_v54  ;;  %v1985_v41 = vmul.f32 %v6272_v32, %v6272_v32  ;;  %v1986_v31 = vmul.f32 %v6273_v9, %v6273_v9  ;;  %v6276_v18 = vld [vmem:[#allocation380_spill] sm:$0xff]  ;;  %v6277_v54 = vld [vmem:[#allocation11_spill] sm:$0xff]  ;;  %v6287_v9 = vld [vmem:[#allocation22_spill] sm:$0xff] }
 0x263   :  { %v2326_v46 = vadd.f32 %v2325_v35, %v1974_v22  ;;  %v2580_v37 = vadd.f32 %v2579_v55, %v1976_v0  ;;  %v1987_v63 = vmul.f32 %v6274_v13, %v6274_v13  ;;  %v1988_v2 = vmul.f32 %v6275_v7, %v6275_v7  ;;  %v6282_v55 = vld [vmem:[#allocation17_spill] sm:$0xff] }
 0x264   :  { %v2200_v23 = vadd.f32 %v2199_v30, %v1977_v12  ;;  %v2454_v33 = vadd.f32 %v2453_v28, %v1979_v60  ;;  %v1989_v22 = vmul.f32 %v6276_v18, %v6276_v18  ;;  %v1990_v0 = vmul.f32 %v6277_v54, %v6277_v54  ;;  %v6280_v12 = vld [vmem:[#allocation16_spill] sm:$0xff]  ;;  %v6281_v60 = vld [vmem:[#allocation13_spill] sm:$0xff]  ;;  %v6291_v54 = vld [vmem:[#allocation34_spill] sm:$0xff] }
 0x265   :  { %v2327_v4 = vadd.f32 %v2326_v46, %v1978_v61  ;;  %v2581_v8 = vadd.f32 %v2580_v37, %v1980_v39  ;;  %v1991_v1 = vmul.f32 %v6278_v47, %v6278_v47  ;;  %v1992_v3 = vmul.f32 %v6279_v57, %v6279_v57  ;;  %v6286_v37 = vld [vmem:[#allocation19_spill] sm:$0xff] }
 0x266   :  { %v2201_v48 = vadd.f32 %v2200_v23, %v1981_v51  ;;  %v2455_v35 = vadd.f32 %v2454_v33, %v1983_v10  ;;  %v1993_v61 = vmul.f32 %v6280_v12, %v6280_v12  ;;  %v1994_v39 = vmul.f32 %v6281_v60, %v6281_v60  ;;  %v6284_v51 = vld [vmem:[#allocation18_spill] sm:$0xff]  ;;  %v6285_v10 = vld [vmem:[#allocation120_spill] sm:$0xff]  ;;  %v6295_v60 = vld [vmem:[#allocation49_spill] sm:$0xff] }
 0x267   :  { %v2328_v49 = vadd.f32 %v2327_v4, %v1982_v62  ;;  %v2582_v6 = vadd.f32 %v2581_v8, %v1984_v34  ;;  %v1995_v29 = vmul.f32 %v6282_v55, %v6282_v55  ;;  %v1996_v40 = vmul.f32 %v6283_v15, %v6283_v15  ;;  %v6290_v8 = vld [vmem:[#allocation31_spill] sm:$0xff] }
 0x268   :  { %v2202_v38 = vadd.f32 %v2201_v48, %v1985_v41  ;;  %v2456_v46 = vadd.f32 %v2455_v35, %v1987_v63  ;;  %v1997_v62 = vmul.f32 %v6284_v51, %v6284_v51  ;;  %v1998_v34 = vmul.f32 %v6285_v10, %v6285_v10  ;;  %v6288_v41 = vld [vmem:[#allocation25_spill] sm:$0xff] }
 0x269   :  { %v2329_v30 = vadd.f32 %v2328_v49, %v1986_v31  ;;  %v2583_v28 = vadd.f32 %v2582_v6, %v1988_v2  ;;  %v1999_v32 = vmul.f32 %v6286_v37, %v6286_v37  ;;  %v2000_v13 = vmul.f32 %v6287_v9, %v6287_v9  ;;  %v6289_v63 = vld [vmem:[#allocation121_spill] sm:$0xff]  ;;  %v6294_v6 = vld [vmem:[#allocation43_spill] sm:$0xff] }
 0x26a   :  { %v2203_v7 = vadd.f32 %v2202_v38, %v1989_v22  ;;  %v2457_v4 = vadd.f32 %v2456_v46, %v1991_v1  ;;  %v2001_v31 = vmul.f32 %v6288_v41, %v6288_v41  ;;  %v2002_v2 = vmul.f32 %v6289_v63, %v6289_v63  ;;  %v6292_v22 = vld [vmem:[#allocation40_spill] sm:$0xff]  ;;  %v6293_v1 = vld [vmem:[#allocation122_spill] sm:$0xff]  ;;  %v6299_v10 = vld [vmem:[#allocation61_spill] sm:$0xff] }
 0x26b   :  { %v2330_v23 = vadd.f32 %v2329_v30, %v1990_v0  ;;  %v2584_v33 = vadd.f32 %v2583_v28, %v1992_v3  ;;  %v2003_v18 = vmul.f32 %v6290_v8, %v6290_v8  ;;  %v2004_v47 = vmul.f32 %v6291_v54, %v6291_v54  ;;  %v6298_v28 = vld [vmem:[#allocation58_spill] sm:$0xff] }
 0x26c   :  { %v2204_v57 = vadd.f32 %v2203_v7, %v1993_v61  ;;  %v2458_v49 = vadd.f32 %v2457_v4, %v1995_v29  ;;  %v2005_v0 = vmul.f32 %v6292_v22, %v6292_v22  ;;  %v2006_v3 = vmul.f32 %v6293_v1, %v6293_v1  ;;  %v6296_v61 = vld [vmem:[#allocation52_spill] sm:$0xff]  ;;  %v6297_v29 = vld [vmem:[#allocation123_spill] sm:$0xff]  ;;  %v6303_v63 = vld [vmem:[#allocation70_spill] sm:$0xff] }
 0x26d   :  { %v2331_v48 = vadd.f32 %v2330_v23, %v1994_v39  ;;  %v2585_v35 = vadd.f32 %v2584_v33, %v1996_v40  ;;  %v2007_v12 = vmul.f32 %v6294_v6, %v6294_v6  ;;  %v2008_v55 = vmul.f32 %v6295_v60, %v6295_v60  ;;  %v6302_v33 = vld [vmem:[#allocation67_spill] sm:$0xff]  ;;  %v6307_v1 = vld [vmem:[#allocation82_spill] sm:$0xff] }
 0x26e   :  { %v2205_v15 = vadd.f32 %v2204_v57, %v1997_v62  ;;  %v2459_v30 = vadd.f32 %v2458_v49, %v1999_v32  ;;  %v2009_v39 = vmul.f32 %v6296_v61, %v6296_v61  ;;  %v2010_v40 = vmul.f32 %v6297_v29, %v6297_v29  ;;  %v6300_v62 = vld [vmem:[#allocation64_spill] sm:$0xff] }
 0x26f   :  { %v2332_v38 = vadd.f32 %v2331_v48, %v1998_v34  ;;  %v2586_v46 = vadd.f32 %v2585_v35, %v2000_v13  ;;  %v2011_v51 = vmul.f32 %v6298_v28, %v6298_v28  ;;  %v2012_v37 = vmul.f32 %v6299_v10, %v6299_v10  ;;  %v6301_v32 = vld [vmem:[#allocation124_spill] sm:$0xff]  ;;  %v6306_v35 = vld [vmem:[#allocation79_spill] sm:$0xff] }
 0x270   :  { %v2206_v9 = vadd.f32 %v2205_v15, %v2001_v31  ;;  %v2460_v23 = vadd.f32 %v2459_v30, %v2003_v18  ;;  %v2013_v34 = vmul.f32 %v6300_v62, %v6300_v62  ;;  %v2014_v13 = vmul.f32 %v6301_v32, %v6301_v32  ;;  %v6304_v31 = vld [vmem:[#allocation76_spill] sm:$0xff]  ;;  %v6305_v18 = vld [vmem:[#allocation126_spill] sm:$0xff] }
 0x271   :  { %v2333_v7 = vadd.f32 %v2332_v38, %v2002_v2  ;;  %v2587_v4 = vadd.f32 %v2586_v46, %v2004_v47  ;;  %v2015_v41 = vmul.f32 %v6302_v33, %v6302_v33  ;;  %v2016_v8 = vmul.f32 %v6303_v63, %v6303_v63  ;;  %v6310_v46 = vld [vmem:[#allocation127_spill] sm:$0xff]  ;;  %v6311_v29 = vld [vmem:[#allocation20_spill] sm:$0xff] }
 0x272   :  { %v2207_v54 = vadd.f32 %v2206_v9, %v2005_v0  ;;  %v2461_v48 = vadd.f32 %v2460_v23, %v2007_v12  ;;  %v2017_v2 = vmul.f32 %v6304_v31, %v6304_v31  ;;  %v2018_v47 = vmul.f32 %v6305_v18, %v6305_v18  ;;  %v6308_v0 = vld [vmem:[#allocation85_spill] sm:$0xff]  ;;  %v6315_v32 = vld [vmem:[#allocation128_spill] sm:$0xff]  ;;  %v6319_v18 = vld [vmem:[#allocation27_spill] sm:$0xff] }
 0x273   :  { %v2334_v57 = vadd.f32 %v2333_v7, %v2006_v3  ;;  %v2588_v49 = vadd.f32 %v2587_v4, %v2008_v55  ;;  %v2019_v22 = vmul.f32 %v6306_v35, %v6306_v35  ;;  %v2020_v6 = vmul.f32 %v6307_v1, %v6307_v1  ;;  %v6309_v12 = vld [vmem:[#allocation89_spill] sm:$0xff]  ;;  %v6314_v4 = vld [vmem:[#allocation23_spill] sm:$0xff] }
 0x274   :  { %v2208_v60 = vadd.f32 %v2207_v54, %v2009_v39  ;;  %v2462_v38 = vadd.f32 %v2461_v48, %v2011_v51  ;;  %v2021_v3 = vmul.f32 %v6308_v0, %v6308_v0  ;;  %v2022_v55 = vmul.f32 %v6309_v12, %v6309_v12  ;;  %v6312_v39 = vld [vmem:[#allocation21_spill] sm:$0xff]  ;;  %v6313_v51 = vld [vmem:[#allocation98_spill] sm:$0xff] }
 0x275   :  { %v2335_v15 = vadd.f32 %v2334_v57, %v2010_v40  ;;  %v2589_v30 = vadd.f32 %v2588_v49, %v2012_v37  ;;  %v2023_v61 = vmul.f32 %v6310_v46, %v6310_v46  ;;  %v2024_v28 = vmul.f32 %v6311_v29, %v6311_v29  ;;  %v6318_v49 = vld [vmem:[#allocation26_spill] sm:$0xff]  ;;  %v6323_v12 = vld [vmem:[#allocation125_spill] sm:$0xff] }
 0x276   :  { %v2209_v10 = vadd.f32 %v2208_v60, %v2013_v34  ;;  %v2463_v7 = vadd.f32 %v2462_v38, %v2015_v41  ;;  %v2025_v40 = vmul.f32 %v6312_v39, %v6312_v39  ;;  %v2026_v37 = vmul.f32 %v6313_v51, %v6313_v51  ;;  %v6316_v34 = vld [vmem:[#allocation24_spill] sm:$0xff]  ;;  %v6317_v41 = vld [vmem:[#allocation107_spill] sm:$0xff]  ;;  %v6327_v51 = vld [vmem:[#allocation134_spill] sm:$0xff] }
 0x277   :  { %v2336_v9 = vadd.f32 %v2335_v15, %v2014_v13  ;;  %v2590_v23 = vadd.f32 %v2589_v30, %v2016_v8  ;;  %v2027_v62 = vmul.f32 %v6314_v4, %v6314_v4  ;;  %v2028_v33 = vmul.f32 %v6315_v32, %v6315_v32  ;;  %v6322_v30 = vld [vmem:[#allocation30_spill] sm:$0xff] }
 0x278   :  { %v2210_v63 = vadd.f32 %v2209_v10, %v2017_v2  ;;  %v2464_v57 = vadd.f32 %v2463_v7, %v2019_v22  ;;  %v2029_v13 = vmul.f32 %v6316_v34, %v6316_v34  ;;  %v2030_v8 = vmul.f32 %v6317_v41, %v6317_v41  ;;  %v6320_v2 = vld [vmem:[#allocation116_spill] sm:$0xff]  ;;  %v6321_v22 = vld [vmem:[#allocation29_spill] sm:$0xff]  ;;  %v6331_v41 = vld [vmem:[#allocation38_spill] sm:$0xff] }
 0x279   :  { %v2337_v54 = vadd.f32 %v2336_v9, %v2018_v47  ;;  %v2591_v48 = vadd.f32 %v2590_v23, %v2020_v6  ;;  %v2031_v31 = vmul.f32 %v6318_v49, %v6318_v49  ;;  %v2032_v35 = vmul.f32 %v6319_v18, %v6319_v18  ;;  %v6326_v23 = vld [vmem:[#allocation33_spill] sm:$0xff] }
 0x27a   :  { %v2211_v1 = vadd.f32 %v2210_v63, %v2021_v3  ;;  %v2465_v15 = vadd.f32 %v2464_v57, %v2023_v61  ;;  %v2033_v47 = vmul.f32 %v6320_v2, %v6320_v2  ;;  %v2034_v6 = vmul.f32 %v6321_v22, %v6321_v22  ;;  %v6324_v3 = vld [vmem:[#allocation129_spill] sm:$0xff]  ;;  %v6325_v61 = vld [vmem:[#allocation32_spill] sm:$0xff] }
 0x27b   :  { %v2338_v60 = vadd.f32 %v2337_v54, %v2022_v55  ;;  %v2592_v38 = vadd.f32 %v2591_v48, %v2024_v28  ;;  %v2035_v0 = vmul.f32 %v6322_v30, %v6322_v30  ;;  %v2036_v46 = vmul.f32 %v6323_v12, %v6323_v12  ;;  %v6330_v48 = vld [vmem:[#allocation143_spill] sm:$0xff]  ;;  %v6335_v22 = vld [vmem:[#allocation161_spill] sm:$0xff] }
 0x27c   :  { %v2212_v29 = vadd.f32 %v2211_v1, %v2025_v40  ;;  %v2466_v9 = vadd.f32 %v2465_v15, %v2027_v62  ;;  %v2037_v55 = vmul.f32 %v6324_v3, %v6324_v3  ;;  %v2038_v28 = vmul.f32 %v6325_v61, %v6325_v61  ;;  %v6328_v40 = vld [vmem:[#allocation35_spill] sm:$0xff]  ;;  %v6329_v62 = vld [vmem:[#allocation130_spill] sm:$0xff] }
 0x27d   :  { %v2339_v10 = vadd.f32 %v2338_v60, %v2026_v37  ;;  %v2593_v7 = vadd.f32 %v2592_v38, %v2028_v33  ;;  %v2039_v39 = vmul.f32 %v6326_v23, %v6326_v23  ;;  %v2040_v4 = vmul.f32 %v6327_v51, %v6327_v51  ;;  %v6334_v38 = vld [vmem:[#allocation41_spill] sm:$0xff]  ;;  %v6339_v61 = vld [vmem:[#allocation47_spill] sm:$0xff] }
 0x27e   :  { %v2213_v32 = vadd.f32 %v2212_v29, %v2029_v13  ;;  %v2467_v54 = vadd.f32 %v2466_v9, %v2031_v31  ;;  %v2041_v37 = vmul.f32 %v6328_v40, %v6328_v40  ;;  %v2042_v33 = vmul.f32 %v6329_v62, %v6329_v62  ;;  %v6332_v13 = vld [vmem:[#allocation131_spill] sm:$0xff]  ;;  %v6333_v31 = vld [vmem:[#allocation152_spill] sm:$0xff] }
 0x27f   :  { %v2340_v63 = vadd.f32 %v2339_v10, %v2030_v8  ;;  %v2594_v57 = vadd.f32 %v2593_v7, %v2032_v35  ;;  %v2043_v34 = vmul.f32 %v6330_v48, %v6330_v48  ;;  %v2044_v49 = vmul.f32 %v6331_v41, %v6331_v41  ;;  %v6338_v7 = vld [vmem:[#allocation170_spill] sm:$0xff]  ;;  %v6343_v62 = vld [vmem:[#allocation135_spill] sm:$0xff] }
 0x280   :  { %v2214_v18 = vadd.f32 %v2213_v32, %v2033_v47  ;;  %v2468_v60 = vadd.f32 %v2467_v54, %v2035_v0  ;;  %v2045_v8 = vmul.f32 %v6332_v13, %v6332_v13  ;;  %v2046_v35 = vmul.f32 %v6333_v31, %v6333_v31  ;;  %v6336_v47 = vld [vmem:[#allocation132_spill] sm:$0xff] }
 0x281   :  { %v2341_v1 = vadd.f32 %v2340_v63, %v2034_v6  ;;  %v2595_v15 = vadd.f32 %v2594_v57, %v2036_v46  ;;  %v2047_v2 = vmul.f32 %v6334_v38, %v6334_v38  ;;  %v2048_v30 = vmul.f32 %v6335_v22, %v6335_v22  ;;  %v6337_v0 = vld [vmem:[#allocation44_spill] sm:$0xff]  ;;  %v6342_v57 = vld [vmem:[#allocation50_spill] sm:$0xff] }
 0x282   :  { %v2215_v12 = vadd.f32 %v2214_v18, %v2037_v55  ;;  %v2469_v10 = vadd.f32 %v2468_v60, %v2039_v39  ;;  %v2049_v6 = vmul.f32 %v6336_v47, %v6336_v47  ;;  %v2050_v46 = vmul.f32 %v6337_v0, %v6337_v0  ;;  %v6340_v55 = vld [vmem:[#allocation133_spill] sm:$0xff]  ;;  %v6341_v39 = vld [vmem:[#allocation179_spill] sm:$0xff]  ;;  %v6347_v31 = vld [vmem:[#allocation136_spill] sm:$0xff] }
 0x283   :  { %v2342_v29 = vadd.f32 %v2341_v1, %v2038_v28  ;;  %v2596_v9 = vadd.f32 %v2595_v15, %v2040_v4  ;;  %v2051_v3 = vmul.f32 %v6338_v7, %v6338_v7  ;;  %v2052_v23 = vmul.f32 %v6339_v61, %v6339_v61  ;;  %v6346_v15 = vld [vmem:[#allocation197_spill] sm:$0xff] }
 0x284   :  { %v2216_v51 = vadd.f32 %v2215_v12, %v2041_v37  ;;  %v2470_v63 = vadd.f32 %v2469_v10, %v2043_v34  ;;  %v2053_v28 = vmul.f32 %v6340_v55, %v6340_v55  ;;  %v2054_v4 = vmul.f32 %v6341_v39, %v6341_v39  ;;  %v6344_v37 = vld [vmem:[#allocation188_spill] sm:$0xff]  ;;  %v6345_v34 = vld [vmem:[#allocation53_spill] sm:$0xff] }
 0x285   :  { %v2343_v32 = vadd.f32 %v2342_v29, %v2042_v33  ;;  %v2597_v54 = vadd.f32 %v2596_v9, %v2044_v49  ;;  %v2055_v40 = vmul.f32 %v6342_v57, %v6342_v57  ;;  %v2056_v48 = vmul.f32 %v6343_v62, %v6343_v62  ;;  %v6350_v9 = vld [vmem:[#allocation59_spill] sm:$0xff]  ;;  %v6351_v0 = vld [vmem:[#allocation137_spill] sm:$0xff]  ;;  %v6355_v39 = vld [vmem:[#allocation224_spill] sm:$0xff] }
 0x286   :  { %v2217_v41 = vadd.f32 %v2216_v51, %v2045_v8  ;;  %v2471_v1 = vadd.f32 %v2470_v63, %v2047_v2  ;;  %v2057_v33 = vmul.f32 %v6344_v37, %v6344_v37  ;;  %v2058_v49 = vmul.f32 %v6345_v34, %v6345_v34  ;;  %v6348_v8 = vld [vmem:[#allocation56_spill] sm:$0xff]  ;;  %v6349_v2 = vld [vmem:[#allocation206_spill] sm:$0xff] }
 0x287   :  { %v2344_v18 = vadd.f32 %v2343_v32, %v2046_v35  ;;  %v2598_v60 = vadd.f32 %v2597_v54, %v2048_v30  ;;  %v2059_v13 = vmul.f32 %v6346_v15, %v6346_v15  ;;  %v2060_v38 = vmul.f32 %v6347_v31, %v6347_v31  ;;  %v6354_v54 = vld [vmem:[#allocation138_spill] sm:$0xff]  ;;  %v6359_v34 = vld [vmem:[#allocation68_spill] sm:$0xff] }
 0x288   :  { %v2218_v22 = vadd.f32 %v2217_v41, %v2049_v6  ;;  %v2472_v29 = vadd.f32 %v2471_v1, %v2051_v3  ;;  %v2061_v35 = vmul.f32 %v6348_v8, %v6348_v8  ;;  %v2062_v30 = vmul.f32 %v6349_v2, %v6349_v2  ;;  %v6352_v6 = vld [vmem:[#allocation215_spill] sm:$0xff]  ;;  %v6353_v3 = vld [vmem:[#allocation62_spill] sm:$0xff]  ;;  %v6362_v8 = vld [vmem:[#allocation140_spill] sm:$0xff] }
 0x289   :  { %v2345_v12 = vadd.f32 %v2344_v18, %v2050_v46  ;;  %v2599_v10 = vadd.f32 %v2598_v60, %v2052_v23  ;;  %v2063_v47 = vmul.f32 %v6350_v9, %v6350_v9  ;;  %v2064_v7 = vmul.f32 %v6351_v0, %v6351_v0  ;;  %v6358_v60 = vld [vmem:[#allocation139_spill] sm:$0xff] }
 0x28a   :  { %v2219_v61 = vadd.f32 %v2218_v22, %v2053_v28  ;;  %v2473_v32 = vadd.f32 %v2472_v29, %v2055_v40  ;;  %v2065_v46 = vmul.f32 %v6352_v6, %v6352_v6  ;;  %v2066_v23 = vmul.f32 %v6353_v3, %v6353_v3  ;;  %v6356_v28 = vld [vmem:[#allocation65_spill] sm:$0xff] }
 0x28b   :  { %v2346_v51 = vadd.f32 %v2345_v12, %v2054_v4  ;;  %v2600_v63 = vadd.f32 %v2599_v10, %v2056_v48  ;;  %v2067_v55 = vmul.f32 %v6354_v54, %v6354_v54  ;;  %v2068_v57 = vmul.f32 %v6355_v39, %v6355_v39  ;;  %v6357_v40 = vld [vmem:[#allocation233_spill] sm:$0xff] }
 0x28c   :  { %v2220_v62 = vadd.f32 %v2219_v61, %v2057_v33  ;;  %v2474_v18 = vadd.f32 %v2473_v32, %v2059_v13  ;;  %v2069_v4 = vmul.f32 %v6356_v28, %v6356_v28  ;;  %v2070_v48 = vmul.f32 %v6357_v40, %v6357_v40  ;;  %v6360_v33 = vld [vmem:[#allocation242_spill] sm:$0xff] }
 0x28d   :  { %v2347_v41 = vadd.f32 %v2346_v51, %v2058_v49  ;;  %v2601_v1 = vadd.f32 %v2600_v63, %v2060_v38  ;;  %v2071_v37 = vmul.f32 %v6358_v60, %v6358_v60  ;;  %v2072_v15 = vmul.f32 %v6359_v34, %v6359_v34  ;;  %v6361_v38 = vld [vmem:[#allocation71_spill] sm:$0xff]  ;;  %v6368_v34 = vld [vmem:[#allocation269_spill] sm:$0xff] }
 0x28e   :  { %v2221_v31 = vadd.f32 %v2220_v62, %v2061_v35  ;;  %v2475_v12 = vadd.f32 %v2474_v18, %v2063_v47  ;;  %v2073_v49 = vmul.f32 %v6360_v33, %v6360_v33  ;;  %v2074_v13 = vmul.f32 %v4447_v59, %v4447_v59 }
 0x28f   :  { %v2348_v22 = vadd.f32 %v2347_v41, %v2062_v30  ;;  %v2602_v29 = vadd.f32 %v2601_v1, %v2064_v7  ;;  %v2075_v10 = vmul.f32 %v6361_v38, %v6361_v38  ;;  %v2076_v2 = vmul.f32 %v6362_v8, %v6362_v8 }
 0x290   :  { %v2222_v9 = vadd.f32 %v2221_v31, %v2065_v46  ;;  %v2476_v61 = vadd.f32 %v2475_v12, %v2067_v55  ;;  %v2077_v35 = vmul.f32 %v4461_v53, %v4461_v53  ;;  %v2078_v30 = vmul.f32 %v4463_v56, %v4463_v56  ;;  %v6363_v53 = vld [vmem:[#allocation251_spill] sm:$0xff]  ;;  %v6364_v56 = vld [vmem:[#allocation74_spill] sm:$0xff] }
 0x291   :  { %v2349_v0 = vadd.f32 %v2348_v22, %v2066_v23  ;;  %v2603_v51 = vadd.f32 %v2602_v29, %v2068_v57  ;;  %v2079_v47 = vmul.f32 %v4465_v50, %v4465_v50  ;;  %v2080_v59 = vmul.f32 %v4475_v11, %v4475_v11  ;;  %v6365_v57 = vld [vmem:[#allocation36_spill] sm:$0xff] }
 0x292   :  { %v2223_v7 = vadd.f32 %v2222_v9, %v2069_v4  ;;  %v2477_v63 = vadd.f32 %v2476_v61, %v2071_v37  ;;  %v2081_v46 = vmul.f32 %v4477_v42, %v4477_v42  ;;  %v2082_v3 = vmul.f32 %v4479_v45, %v4479_v45  ;;  %v6366_v42 = vld [vmem:[#allocation260_spill] sm:$0xff]  ;;  %v6367_v45 = vld [vmem:[#allocation77_spill] sm:$0xff] }
 0x293   :  { %v2350_v32 = vadd.f32 %v2349_v0, %v2070_v48  ;;  %v2604_v6 = vadd.f32 %v2603_v51, %v2072_v15  ;;  %v2083_v23 = vmul.f32 %v6363_v53, %v6363_v53  ;;  %v2084_v54 = vmul.f32 %v6364_v56, %v6364_v56 }
 0x294   :  { %v2224_v50 = vadd.f32 %v2223_v7, %v2073_v49  ;;  %v2478_v39 = vadd.f32 %v2477_v63, %v2075_v10  ;;  %v2085_v62 = vmul.f32 %v6365_v57, %v6365_v57  ;;  %v2086_v41 = vmul.f32 %v4503_v26, %v4503_v26 }
 0x295   :  { %v2351_v55 = vadd.f32 %v2350_v32, %v2074_v13  ;;  %v2605_v11 = vadd.f32 %v2604_v6, %v2076_v2  ;;  %v2087_v18 = vmul.f32 %v6366_v42, %v6366_v42  ;;  %v2088_v1 = vmul.f32 %v6367_v45, %v6367_v45 }
 0x296   :  { %v2225_v28 = vadd.f32 %v2224_v50, %v2077_v35  ;;  %v2479_v40 = vadd.f32 %v2478_v39, %v2079_v47  ;;  %v2089_v60 = vmul.f32 %v4517_v24, %v4517_v24  ;;  %v2090_v37 = vmul.f32 %v4519_v19, %v4519_v19 }
 0x297   :  { %v2352_v4 = vadd.f32 %v2351_v55, %v2078_v30  ;;  %v2606_v48 = vadd.f32 %v2605_v11, %v2080_v59  ;;  %v2091_v15 = vmul.f32 %v6368_v34, %v6368_v34  ;;  %v2092_v26 = vmul.f32 %v4531_v58, %v4531_v58 }
 0x298   :  { %v2226_v31 = vadd.f32 %v2225_v28, %v2081_v46  ;;  %v2480_v12 = vadd.f32 %v2479_v40, %v2083_v23  ;;  %v2093_v33 = vmul.f32 %v4533_v43, %v4533_v43  ;;  %v2094_v49 = vmul.f32 %v4535_v27, %v4535_v27 }
 0x299   :  { %v2353_v22 = vadd.f32 %v2352_v4, %v2082_v3  ;;  %v2607_v29 = vadd.f32 %v2606_v48, %v2084_v54  ;;  %v2095_v24 = vmul.f32 %v4543_v16, %v4543_v16  ;;  %v2096_v19 = vmul.f32 %v4545_v20, %v4545_v20 }
 0x29a   :  { %v2227_v13 = vadd.f32 %v2226_v31, %v2085_v62  ;;  %v2481_v10 = vadd.f32 %v2480_v12, %v2087_v18  ;;  %v2097_v8 = vmul.f32 %v4547_v36, %v4547_v36  ;;  %v2098_v2 = vmul.f32 %v4555_v5, %v4555_v5 }
 0x29b   :  { %v2354_v38 = vadd.f32 %v2353_v22, %v2086_v41  ;;  %v2608_v58 = vadd.f32 %v2607_v29, %v2088_v1  ;;  %v2099_v43 = vmul.f32 %v4557_v17, %v4557_v17  ;;  %v2100_v27 = vmul.f32 %v4559_v25, %v4559_v25 }
 0x29c   :  { %v2228_v16 = vadd.f32 %v2227_v13, %v2089_v60  ;;  %v2482_v0 = vadd.f32 %v2481_v10, %v2091_v15  ;;  %v2101_v61 = vmul.f32 %v4567_v14, %v4567_v14  ;;  %v2102_v51 = vmul.f32 %v4569_v52, %v4569_v52 }
 0x29d   :  { %v2355_v9 = vadd.f32 %v2354_v38, %v2090_v37  ;;  %v2609_v20 = vadd.f32 %v2608_v58, %v2092_v26  ;;  %v2103_v36 = vmul.f32 %v4571_v21, %v4571_v21  ;;  %v2104_v25 = vmul.f32 %v4579_v44, %v4579_v44 }
 0x29e   :  { %v2229_v5 = vadd.f32 %v2228_v16, %v2093_v33  ;;  %v2483_v30 = vadd.f32 %v2482_v0, %v2095_v24 }
 0x29f   :  { %v2356_v35 = vadd.f32 %v2355_v9, %v2094_v49  ;;  %v2610_v17 = vadd.f32 %v2609_v20, %v2096_v19 }
 0x2a0   :  { %v2230_v47 = vadd.f32 %v2229_v5, %v2097_v8  ;;  %v2484_v7 = vadd.f32 %v2483_v30, %v2099_v43 }
 0x2a1   :  { %v2357_v59 = vadd.f32 %v2356_v35, %v2098_v2  ;;  %v2611_v32 = vadd.f32 %v2610_v17, %v2100_v27 }
 0x2a2   :  { %v2231_v63 = vadd.f32 %v2230_v47, %v2101_v61  ;;  %v2485_v14 = vadd.f32 %v2484_v7, %v2103_v36 }
 0x2a3   :  { %v2358_v6 = vadd.f32 %v2357_v59, %v2102_v51  ;;  %v2612_v46 = vadd.f32 %v2611_v32, %v2104_v25 }
 0x2a5   :  { %v2614_v3 = vadd.f32 %v2358_v6, %v2231_v63 }
 0x2a7   :  { %v2615_v52 = vadd.f32 %v2614_v3, %v2485_v14 }
 0x2a9   :  { %v2616_v21 = vadd.f32 %v2615_v52, %v2612_v46 }
 0x2ab   :  { %2618 = vst [vmem:[#allocation7] sm:$0xff] %v2616_v21 }
 0x2ac   :  { %2696 = shalt.err (!%p2693_p6)
}
 0x2ad   :  { %s2697_s10 = scalar_lea.hbm %s5286_s2, 128 }
 0x2ae   :  { %p2698_p7 = scmp.ne.s32.totalorder %s5286_s2, %s2697_s10  ;;  %p2701_p8 = scmp.lt.u32.totalorder %s2697_s10, %s5286_s2 }
 0x2b0   :  { %p2703_p9 = pnand %p2701_p8, %p2698_p7 }
 0x2b2   :  { %2706 = shalt.err (!%p2703_p9)
}
 0x2b3   :  { %2628 = dma.vmem_to_hbm [thread:$0]  %s2626_s6, 128, %s5286_s2, [#allocation4]  }
 0x2b4   :  { %2711 = dma.done.wait [#allocation4], 128  }
 0x2b5   :  { %2712 = vsyncadd [#allocation4], 4294967168 }
 0x2b6   :  { %2632 = vsyncpa [#allocation3], 1 }
 0x2b7   :  { %2633 = vsyncpa [#allocation6], 1 }
 0x2b8   :  { %2634 = vsyncpa [#allocation4], 1 }

</bundles_post_ra>
